<compile_context>
chip_gen: v5e
topology: v5e:2x2
jax: 0.10.0
libtpu: 0.0.40
codegen_flags: <defaults>
</compile_context>

<pallas_src>
import functools

import numpy as np
import jax
import jax.numpy as jnp
from jax import lax
from jax.experimental import pallas as pl
from jax.experimental.pallas import tpu as pltpu

N_QUBITS = 4
N_STATES = 16            # 2 ** N_QUBITS
N_LAYERS = 2
DATA_REUPLOAD = True
W_INPUT = True
W_OUTPUT = False         # see note above

_CHUNK = 1024            # 8 sublanes * 128 lanes = one full f32 vreg of batch
_MAX_CHUNKS_PER_STEP = 8 # up to 8192 batch elements per grid step (~128 KiB/buffer)


def _cdiv(a, b):
    return -(-a // b)


def _cz_negated_indices():
    """Basis indices whose amplitude the CZ ring negates (odd b_w*b_{w+1} parity)."""
    neg = []
    for i in range(N_STATES):
        bits = [(i >> (N_QUBITS - 1 - w)) & 1 for w in range(N_QUBITS)]
        par = sum(bits[w] & bits[(w + 1) % N_QUBITS] for w in range(N_QUBITS)) & 1
        if par:
            neg.append(i)
    return tuple(neg)


_CZ_NEG = _cz_negated_indices()          # == (3, 6, 9, 12) for 4 qubits


def _pairs(w):
    """(i, j=i^m) amplitude pairs for wire w (wire 0 = MSB of the basis index)."""
    m = 1 << (N_QUBITS - 1 - w)
    return [(i, i | m) for i in range(N_STATES) if not (i & m)]


# --- trace-time symbolic-zero arithmetic (None == exactly-zero slab) ---------
def _mul(a, b):
    if a is None or b is None:
        return None
    return a * b


def _add(a, b):
    if a is None:
        return b
    if b is None:
        return a
    return a + b


def _sub(a, b):
    if b is None:
        return a
    if a is None:
        return -b
    return a - b


def _neg(a):
    return None if a is None else -a


# ----------------------------------------------------------------------------
# Pallas kernel: angle prep + statevector evolution + probability reduction.
# ----------------------------------------------------------------------------
def quantum_kernel(coef_ref, x_ref, out_ref, *, n_layers, data_reupload, chunks):
    shape = (8, 128)

    def splat(idx):
        # SMEM scalar -> materialize one (8,128) vreg, reused across all pairs.
        return jnp.full(shape, coef_ref[idx], jnp.float32)

    def half_angles(w, c):
        # theta = atan(w_in[w] * x_w); cos/sin(theta/2) without an atan op:
        #   r  = sqrt(1 + t^2)          (= 1/cos(theta))
        #   u  = t / (1 + r)            (= tan(theta/2), cancellation-free)
        #   ch = rsqrt(1 + u^2)         (= cos(theta/2) > 0)
        #   sh = u * ch                 (= sin(theta/2))
        t = x_ref[w, c, :, :] * coef_ref[w]
        r = jnp.sqrt(1.0 + t * t)
        u = t / (1.0 + r)
        ch = lax.rsqrt(1.0 + u * u)
        sh = u * ch
        return ch, sh

    def rx_apply(ar, ai, w, ch, sh):
        for i, j in _pairs(w):
            air, aii, ajr, aji = ar[i], ai[i], ar[j], ai[j]
            ar[i] = _add(_mul(ch, air), _mul(sh, aji))
            ai[i] = _sub(_mul(ch, aii), _mul(sh, ajr))
            ar[j] = _add(_mul(ch, ajr), _mul(sh, aii))
            ai[j] = _sub(_mul(ch, aji), _mul(sh, air))

    def ryrz_apply(ar, ai, w, cy, sy, cz, sz):
        # RY (real) then RZ (phase): 24 real ops / pair instead of dense 28.
        for i, j in _pairs(w):
            air, aii, ajr, aji = ar[i], ai[i], ar[j], ai[j]
            bir = _sub(_mul(cy, air), _mul(sy, ajr))
            bii = _sub(_mul(cy, aii), _mul(sy, aji))
            bjr = _add(_mul(sy, air), _mul(cy, ajr))
            bji = _add(_mul(sy, aii), _mul(cy, aji))
            ar[i] = _add(_mul(cz, bir), _mul(sz, bii))   # * (cz - i sz)
            ai[i] = _sub(_mul(cz, bii), _mul(sz, bir))
            ar[j] = _sub(_mul(cz, bjr), _mul(sz, bji))   # * (cz + i sz)
            ai[j] = _add(_mul(cz, bji), _mul(sz, bjr))

    def ry_apply(ar, ai, w, cy, sy):
        for i, j in _pairs(w):
            air, aii, ajr, aji = ar[i], ai[i], ar[j], ai[j]
            ar[i] = _sub(_mul(cy, air), _mul(sy, ajr))
            ai[i] = _sub(_mul(cy, aii), _mul(sy, aji))
            ar[j] = _add(_mul(sy, air), _mul(cy, ajr))
            ai[j] = _add(_mul(sy, aii), _mul(cy, aji))

    def run_chunk(c):
        ar = [None] * N_STATES        # None == known-zero slab at trace time
        ai = [None] * N_STATES
        for l in range(n_layers):
            last = (l == n_layers - 1)
            # Final layer: trailing gates that are diagonal (RZ, CZ ring) or
            # act only on the traced-out wires {2,3} (RX2/3, RY2/3) cannot
            # change probs over wires [0,1] -> only wires 0,1 survive.
            n_active = 2 if last else N_QUBITS
            if l == 0 or data_reupload:
                w_start = 0
                if l == 0:
                    # RX on wire 0 applied to |0..0>: only two amplitudes appear.
                    ch, sh = half_angles(0, c)
                    ar[0] = ch
                    ai[1 << (N_QUBITS - 1)] = -sh
                    w_start = 1
                for w in range(w_start, n_active):
                    ch, sh = half_angles(w, c)
                    rx_apply(ar, ai, w, ch, sh)
            for w in range(n_active):
                base = N_QUBITS + (l * N_QUBITS + w) * 4
                cy, sy = splat(base + 0), splat(base + 1)
                if last:
                    ry_apply(ar, ai, w, cy, sy)
                else:
                    cz, sz = splat(base + 2), splat(base + 3)
                    ryrz_apply(ar, ai, w, cy, sy, cz, sz)
            if not last:
                for i in _CZ_NEG:        # fused CZ ring = 8 sign flips
                    ar[i] = _neg(ar[i])
                    ai[i] = _neg(ai[i])
        # probs over wires [0,1] (the two MSBs): group k = basis_index >> 2.
        # w_output is None in this configuration -> out = 90 * (1 + p) / 2.
        for k in range(4):
            acc = None
            for i in range(4 * k, 4 * k + 4):
                acc = _add(acc, _add(_mul(ar[i], ar[i]), _mul(ai[i], ai[i])))
            if acc is None:
                acc = jnp.zeros(shape, jnp.float32)
            out_ref[k, c, :, :] = (45.0 * (1.0 + acc)).astype(out_ref.dtype)

    for c in range(chunks):              # chunks is static -> fully unrolled
        run_chunk(c)


# ----------------------------------------------------------------------------
# Wrapper: coefficient table + batch layout + pallas_call.
# ----------------------------------------------------------------------------
def _coef_table(w_input, y_weights, z_weights):
    """1-D f32 SMEM table: [w_input(4)] + per layer/wire [cy, sy, cz, sz]."""
    win = (jnp.ones((N_QUBITS,), jnp.float32) if w_input is None
           else w_input.astype(jnp.float32))
    cy = jnp.cos(0.5 * y_weights)
    sy = jnp.sin(0.5 * y_weights)
    cz = jnp.cos(0.5 * z_weights)
    sz = jnp.sin(0.5 * z_weights)
    per = jnp.stack([cy, sy, cz, sz], axis=-1).reshape(-1)     # (L*4*4,)
    return jnp.concatenate([win, per]).astype(jnp.float32)


def quantum_net_forward(inputs, w_input, y_weights, z_weights,
                        *, n_layers=N_LAYERS, data_reupload=DATA_REUPLOAD):
    B = inputs.shape[0]
    coef = _coef_table(w_input, y_weights, z_weights)

    # Batch is always padded to full (8, 128) vreg chunks; up to 8 chunks per
    # grid step so per-step overhead is amortized for large batches.
    n_chunks = max(1, _cdiv(B, _CHUNK))
    grid = _cdiv(n_chunks, _MAX_CHUNKS_PER_STEP)
    chunks = _cdiv(n_chunks, grid)
    M = grid * chunks
    Bp = M * _CHUNK

    x_t = inputs.astype(jnp.float32).T                          # (4, B)
    if Bp != B:
        x_t = jnp.pad(x_t, ((0, 0), (0, Bp - B)))
    x4 = x_t.reshape(N_QUBITS, M, 8, 128)                       # batch -> (chunk, 8, 128)

    out4 = pl.pallas_call(
        functools.partial(quantum_kernel, n_layers=n_layers,
                          data_reupload=data_reupload, chunks=chunks),
        out_shape=jax.ShapeDtypeStruct((4, M, 8, 128), jnp.float32),
        grid_spec=pltpu.PrefetchScalarGridSpec(
            num_scalar_prefetch=0,
            grid=(grid,),
            in_specs=[
                pl.BlockSpec(memory_space=pltpu.MemorySpace.SMEM),          # gate coeffs
                pl.BlockSpec((N_QUBITS, chunks, 8, 128), lambda i: (0, i, 0, 0)),
            ],
            out_specs=pl.BlockSpec((4, chunks, 8, 128), lambda i: (0, i, 0, 0)),
        ),
        compiler_params=pltpu.CompilerParams(
            dimension_semantics=("parallel",)),
    )(coef, x4)

    return out4.reshape(4, Bp)[:, :B].T                         # (B, 4)


# ----------------------------------------------------------------------------
# Pure-numpy reference (independent complex128 statevector simulation).
# ----------------------------------------------------------------------------
def _reference_numpy(inputs, w_input, yw, zw, n_layers, data_reupload):
    B = inputs.shape[0]
    x = np.arctan(inputs.astype(np.float64) * w_input.astype(np.float64))
    outs = np.zeros((B, 4), np.float64)

    def apply_1q(state, U, wire):
        psi = state.reshape((2,) * N_QUBITS)
        psi = np.tensordot(U, psi, axes=([1], [wire]))
        psi = np.moveaxis(psi, 0, wire)
        return psi.reshape(N_STATES)

    idx = np.arange(N_STATES)
    for b in range(B):
        state = np.zeros(N_STATES, np.complex128)
        state[0] = 1.0
        for l in range(n_layers):
            if l == 0 or data_reupload:
                for w in range(N_QUBITS):
                    t = x[b, w]
                    U = np.array([[np.cos(t / 2), -1j * np.sin(t / 2)],
                                  [-1j * np.sin(t / 2), np.cos(t / 2)]])
                    state = apply_1q(state, U, w)
            for w in range(N_QUBITS):
                t = float(yw[l, w])
                U = np.array([[np.cos(t / 2), -np.sin(t / 2)],
                              [np.sin(t / 2), np.cos(t / 2)]], np.complex128)
                state = apply_1q(state, U, w)
            for w in range(N_QUBITS):
                t = float(zw[l, w])
                U = np.array([[np.exp(-1j * t / 2), 0],
                              [0, np.exp(1j * t / 2)]])
                state = apply_1q(state, U, w)
            for w in range(N_QUBITS):
                b1 = (idx >> (N_QUBITS - 1 - w)) & 1
                b2 = (idx >> (N_QUBITS - 1 - ((w + 1) % N_QUBITS))) & 1
                state = state * np.where((b1 & b2) == 1, -1.0, 1.0)
        p = (np.abs(state) ** 2).reshape(4, 4).sum(axis=1)
        outs[b] = 90.0 * (1.0 + p) / 2.0
    return outs


if __name__ == "__main__":
    key = jax.random.PRNGKey(0)
    k_in, k_wi, k_y, k_z, k_in2 = jax.random.split(key, 5)

    # nn.init.normal_(w_input, mean=0.0)
    w_input = jax.random.normal(k_wi, (N_QUBITS,), jnp.float32) if W_INPUT else None
    # PennyLane TorchLayer default init: uniform(0, 2*pi)
    y_weights = jax.random.uniform(k_y, (N_LAYERS, N_QUBITS), jnp.float32,
                                   0.0, 2.0 * np.pi)
    z_weights = jax.random.uniform(k_z, (N_LAYERS, N_QUBITS), jnp.float32,
                                   0.0, 2.0 * np.pi)

    # Small-batch check (single chunk, single grid step).
    B = 8
    inputs = jax.random.normal(k_in, (B, N_QUBITS), jnp.float32)
    out = jax.block_until_ready(
        quantum_net_forward(inputs, w_input, y_weights, z_weights))
    assert out.shape == (B, 4), out.shape
    ref = _reference_numpy(np.asarray(inputs), np.asarray(w_input),
                           np.asarray(y_weights), np.asarray(z_weights),
                           N_LAYERS, DATA_REUPLOAD)
    err = np.abs(np.asarray(out, np.float64) - ref).max()
    assert np.allclose(np.asarray(out), ref, atol=1e-3, rtol=1e-3), f"max err {err}"

    # Multi-chunk check: exercises the in-kernel chunk loop (2 x 1024 batch).
    B2 = 1040
    inputs2 = jax.random.normal(k_in2, (B2, N_QUBITS), jnp.float32)
    out2 = jax.block_until_ready(
        quantum_net_forward(inputs2, w_input, y_weights, z_weights))
    assert out2.shape == (B2, 4), out2.shape
    sel = np.concatenate([np.arange(8), np.arange(B2 - 8, B2)])
    ref2 = _reference_numpy(np.asarray(inputs2)[sel], np.asarray(w_input),
                            np.asarray(y_weights), np.asarray(z_weights),
                            N_LAYERS, DATA_REUPLOAD)
    err2 = np.abs(np.asarray(out2, np.float64)[sel] - ref2).max()
    assert np.allclose(np.asarray(out2)[sel], ref2, atol=1e-3, rtol=1e-3), \
        f"max err {err2}"

    print("KERNEL_OK")
</pallas_src>

<mosaic_0001>
module attributes {stable_mosaic.version = 11 : i64} {
  func.func @quantum_kernel(%arg0: i32, %arg1: memref<36xf32, #tpu.memory_space<smem>>, %arg2: memref<4x1x8x128xf32, #tpu.memory_space<vmem>>, %arg3: memref<4x1x8x128xf32, #tpu.memory_space<vmem>>) attributes {dimension_semantics = [#tpu.dimension_semantics<parallel>], iteration_bounds = array<i64: 1>, scalar_prefetch = 0 : i64, scratch_operands = 0 : i64, tpu.core_type = #tpu.core_type<tc>, window_params = [{transform_indices = @transform_0, window_bounds = array<i64: 36>}, {transform_indices = @transform_1, window_bounds = array<i64: 4, 1, 8, 128>}, {transform_indices = @transform_2, window_bounds = array<i64: 4, 1, 8, 128>}]} {
    %c0 = arith.constant 0 : index
    %c0_0 = arith.constant 0 : index
    %c0_1 = arith.constant 0 : index
    %c0_2 = arith.constant 0 : index
    %0 = vector.load %arg2[%c0, %c0_0, %c0_1, %c0_2] : memref<4x1x8x128xf32, #tpu.memory_space<vmem>>, vector<1x1x8x128xf32>
    %1 = vector.shape_cast %0 : vector<1x1x8x128xf32> to vector<8x128xf32>
    %c0_3 = arith.constant 0 : index
    %2 = memref.load %arg1[%c0_3] : memref<36xf32, #tpu.memory_space<smem>>
    %3 = vector.broadcast %2 : f32 to vector<8x128xf32>
    %4 = arith.mulf %1, %3 : vector<8x128xf32>
    %5 = arith.mulf %4, %4 : vector<8x128xf32>
    %cst = arith.constant 1.000000e+00 : f32
    %6 = vector.broadcast %cst : f32 to vector<8x128xf32>
    %7 = arith.addf %6, %5 : vector<8x128xf32>
    %8 = math.sqrt %7 : vector<8x128xf32>
    %cst_4 = arith.constant 1.000000e+00 : f32
    %9 = vector.broadcast %cst_4 : f32 to vector<8x128xf32>
    %10 = arith.addf %9, %8 : vector<8x128xf32>
    %11 = arith.divf %4, %10 : vector<8x128xf32>
    %12 = arith.mulf %11, %11 : vector<8x128xf32>
    %cst_5 = arith.constant 1.000000e+00 : f32
    %13 = vector.broadcast %cst_5 : f32 to vector<8x128xf32>
    %14 = arith.addf %13, %12 : vector<8x128xf32>
    %15 = math.rsqrt %14 : vector<8x128xf32>
    %16 = arith.mulf %11, %15 : vector<8x128xf32>
    %cst_6 = arith.constant 0.000000e+00 : f32
    %17 = vector.broadcast %cst_6 : f32 to vector<8x128xf32>
    %18 = arith.subf %17, %16 : vector<8x128xf32>
    %c1 = arith.constant 1 : index
    %c0_7 = arith.constant 0 : index
    %c0_8 = arith.constant 0 : index
    %c0_9 = arith.constant 0 : index
    %19 = vector.load %arg2[%c1, %c0_7, %c0_8, %c0_9] : memref<4x1x8x128xf32, #tpu.memory_space<vmem>>, vector<1x1x8x128xf32>
    %20 = vector.shape_cast %19 : vector<1x1x8x128xf32> to vector<8x128xf32>
    %c1_10 = arith.constant 1 : index
    %21 = memref.load %arg1[%c1_10] : memref<36xf32, #tpu.memory_space<smem>>
    %22 = vector.broadcast %21 : f32 to vector<8x128xf32>
    %23 = arith.mulf %20, %22 : vector<8x128xf32>
    %24 = arith.mulf %23, %23 : vector<8x128xf32>
    %cst_11 = arith.constant 1.000000e+00 : f32
    %25 = vector.broadcast %cst_11 : f32 to vector<8x128xf32>
    %26 = arith.addf %25, %24 : vector<8x128xf32>
    %27 = math.sqrt %26 : vector<8x128xf32>
    %cst_12 = arith.constant 1.000000e+00 : f32
    %28 = vector.broadcast %cst_12 : f32 to vector<8x128xf32>
    %29 = arith.addf %28, %27 : vector<8x128xf32>
    %30 = arith.divf %23, %29 : vector<8x128xf32>
    %31 = arith.mulf %30, %30 : vector<8x128xf32>
    %cst_13 = arith.constant 1.000000e+00 : f32
    %32 = vector.broadcast %cst_13 : f32 to vector<8x128xf32>
    %33 = arith.addf %32, %31 : vector<8x128xf32>
    %34 = math.rsqrt %33 : vector<8x128xf32>
    %35 = arith.mulf %30, %34 : vector<8x128xf32>
    %36 = arith.mulf %34, %15 : vector<8x128xf32>
    %37 = arith.mulf %35, %15 : vector<8x128xf32>
    %cst_14 = arith.constant 0.000000e+00 : f32
    %38 = vector.broadcast %cst_14 : f32 to vector<8x128xf32>
    %39 = arith.subf %38, %37 : vector<8x128xf32>
    %40 = arith.mulf %34, %18 : vector<8x128xf32>
    %41 = arith.mulf %35, %18 : vector<8x128xf32>
    %c2 = arith.constant 2 : index
    %c0_15 = arith.constant 0 : index
    %c0_16 = arith.constant 0 : index
    %c0_17 = arith.constant 0 : index
    %42 = vector.load %arg2[%c2, %c0_15, %c0_16, %c0_17] : memref<4x1x8x128xf32, #tpu.memory_space<vmem>>, vector<1x1x8x128xf32>
    %43 = vector.shape_cast %42 : vector<1x1x8x128xf32> to vector<8x128xf32>
    %c2_18 = arith.constant 2 : index
    %44 = memref.load %arg1[%c2_18] : memref<36xf32, #tpu.memory_space<smem>>
    %45 = vector.broadcast %44 : f32 to vector<8x128xf32>
    %46 = arith.mulf %43, %45 : vector<8x128xf32>
    %47 = arith.mulf %46, %46 : vector<8x128xf32>
    %cst_19 = arith.constant 1.000000e+00 : f32
    %48 = vector.broadcast %cst_19 : f32 to vector<8x128xf32>
    %49 = arith.addf %48, %47 : vector<8x128xf32>
    %50 = math.sqrt %49 : vector<8x128xf32>
    %cst_20 = arith.constant 1.000000e+00 : f32
    %51 = vector.broadcast %cst_20 : f32 to vector<8x128xf32>
    %52 = arith.addf %51, %50 : vector<8x128xf32>
    %53 = arith.divf %46, %52 : vector<8x128xf32>
    %54 = arith.mulf %53, %53 : vector<8x128xf32>
    %cst_21 = arith.constant 1.000000e+00 : f32
    %55 = vector.broadcast %cst_21 : f32 to vector<8x128xf32>
    %56 = arith.addf %55, %54 : vector<8x128xf32>
    %57 = math.rsqrt %56 : vector<8x128xf32>
    %58 = arith.mulf %53, %57 : vector<8x128xf32>
    %59 = arith.mulf %57, %36 : vector<8x128xf32>
    %60 = arith.mulf %58, %36 : vector<8x128xf32>
    %cst_22 = arith.constant 0.000000e+00 : f32
    %61 = vector.broadcast %cst_22 : f32 to vector<8x128xf32>
    %62 = arith.subf %61, %60 : vector<8x128xf32>
    %63 = arith.mulf %57, %39 : vector<8x128xf32>
    %64 = arith.mulf %58, %39 : vector<8x128xf32>
    %65 = arith.mulf %57, %40 : vector<8x128xf32>
    %66 = arith.mulf %58, %40 : vector<8x128xf32>
    %67 = arith.mulf %57, %41 : vector<8x128xf32>
    %68 = arith.mulf %58, %41 : vector<8x128xf32>
    %cst_23 = arith.constant 0.000000e+00 : f32
    %69 = vector.broadcast %cst_23 : f32 to vector<8x128xf32>
    %70 = arith.subf %69, %68 : vector<8x128xf32>
    %c3 = arith.constant 3 : index
    %c0_24 = arith.constant 0 : index
    %c0_25 = arith.constant 0 : index
    %c0_26 = arith.constant 0 : index
    %71 = vector.load %arg2[%c3, %c0_24, %c0_25, %c0_26] : memref<4x1x8x128xf32, #tpu.memory_space<vmem>>, vector<1x1x8x128xf32>
    %72 = vector.shape_cast %71 : vector<1x1x8x128xf32> to vector<8x128xf32>
    %c3_27 = arith.constant 3 : index
    %73 = memref.load %arg1[%c3_27] : memref<36xf32, #tpu.memory_space<smem>>
    %74 = vector.broadcast %73 : f32 to vector<8x128xf32>
    %75 = arith.mulf %72, %74 : vector<8x128xf32>
    %76 = arith.mulf %75, %75 : vector<8x128xf32>
    %cst_28 = arith.constant 1.000000e+00 : f32
    %77 = vector.broadcast %cst_28 : f32 to vector<8x128xf32>
    %78 = arith.addf %77, %76 : vector<8x128xf32>
    %79 = math.sqrt %78 : vector<8x128xf32>
    %cst_29 = arith.constant 1.000000e+00 : f32
    %80 = vector.broadcast %cst_29 : f32 to vector<8x128xf32>
    %81 = arith.addf %80, %79 : vector<8x128xf32>
    %82 = arith.divf %75, %81 : vector<8x128xf32>
    %83 = arith.mulf %82, %82 : vector<8x128xf32>
    %cst_30 = arith.constant 1.000000e+00 : f32
    %84 = vector.broadcast %cst_30 : f32 to vector<8x128xf32>
    %85 = arith.addf %84, %83 : vector<8x128xf32>
    %86 = math.rsqrt %85 : vector<8x128xf32>
    %87 = arith.mulf %82, %86 : vector<8x128xf32>
    %88 = arith.mulf %86, %59 : vector<8x128xf32>
    %89 = arith.mulf %87, %59 : vector<8x128xf32>
    %cst_31 = arith.constant 0.000000e+00 : f32
    %90 = vector.broadcast %cst_31 : f32 to vector<8x128xf32>
    %91 = arith.subf %90, %89 : vector<8x128xf32>
    %92 = arith.mulf %86, %62 : vector<8x128xf32>
    %93 = arith.mulf %87, %62 : vector<8x128xf32>
    %94 = arith.mulf %86, %63 : vector<8x128xf32>
    %95 = arith.mulf %87, %63 : vector<8x128xf32>
    %96 = arith.mulf %86, %64 : vector<8x128xf32>
    %97 = arith.mulf %87, %64 : vector<8x128xf32>
    %cst_32 = arith.constant 0.000000e+00 : f32
    %98 = vector.broadcast %cst_32 : f32 to vector<8x128xf32>
    %99 = arith.subf %98, %97 : vector<8x128xf32>
    %100 = arith.mulf %86, %65 : vector<8x128xf32>
    %101 = arith.mulf %87, %65 : vector<8x128xf32>
    %102 = arith.mulf %86, %66 : vector<8x128xf32>
    %103 = arith.mulf %87, %66 : vector<8x128xf32>
    %cst_33 = arith.constant 0.000000e+00 : f32
    %104 = vector.broadcast %cst_33 : f32 to vector<8x128xf32>
    %105 = arith.subf %104, %103 : vector<8x128xf32>
    %106 = arith.mulf %86, %67 : vector<8x128xf32>
    %107 = arith.mulf %87, %67 : vector<8x128xf32>
    %cst_34 = arith.constant 0.000000e+00 : f32
    %108 = vector.broadcast %cst_34 : f32 to vector<8x128xf32>
    %109 = arith.subf %108, %107 : vector<8x128xf32>
    %110 = arith.mulf %86, %70 : vector<8x128xf32>
    %111 = arith.mulf %87, %70 : vector<8x128xf32>
    %c4 = arith.constant 4 : index
    %112 = memref.load %arg1[%c4] : memref<36xf32, #tpu.memory_space<smem>>
    %113 = vector.broadcast %112 : f32 to vector<8x128xf32>
    %c5 = arith.constant 5 : index
    %114 = memref.load %arg1[%c5] : memref<36xf32, #tpu.memory_space<smem>>
    %115 = vector.broadcast %114 : f32 to vector<8x128xf32>
    %c6 = arith.constant 6 : index
    %116 = memref.load %arg1[%c6] : memref<36xf32, #tpu.memory_space<smem>>
    %117 = vector.broadcast %116 : f32 to vector<8x128xf32>
    %c7 = arith.constant 7 : index
    %118 = memref.load %arg1[%c7] : memref<36xf32, #tpu.memory_space<smem>>
    %119 = vector.broadcast %118 : f32 to vector<8x128xf32>
    %120 = arith.mulf %113, %88 : vector<8x128xf32>
    %121 = arith.mulf %115, %100 : vector<8x128xf32>
    %cst_35 = arith.constant 0.000000e+00 : f32
    %122 = vector.broadcast %cst_35 : f32 to vector<8x128xf32>
    %123 = arith.subf %122, %121 : vector<8x128xf32>
    %124 = arith.mulf %115, %88 : vector<8x128xf32>
    %125 = arith.mulf %113, %100 : vector<8x128xf32>
    %126 = arith.mulf %117, %120 : vector<8x128xf32>
    %127 = arith.mulf %119, %123 : vector<8x128xf32>
    %128 = arith.addf %126, %127 : vector<8x128xf32>
    %129 = arith.mulf %117, %123 : vector<8x128xf32>
    %130 = arith.mulf %119, %120 : vector<8x128xf32>
    %131 = arith.subf %129, %130 : vector<8x128xf32>
    %132 = arith.mulf %117, %124 : vector<8x128xf32>
    %133 = arith.mulf %119, %125 : vector<8x128xf32>
    %134 = arith.subf %132, %133 : vector<8x128xf32>
    %135 = arith.mulf %117, %125 : vector<8x128xf32>
    %136 = arith.mulf %119, %124 : vector<8x128xf32>
    %137 = arith.addf %135, %136 : vector<8x128xf32>
    %138 = arith.mulf %115, %101 : vector<8x128xf32>
    %cst_36 = arith.constant 0.000000e+00 : f32
    %139 = vector.broadcast %cst_36 : f32 to vector<8x128xf32>
    %140 = arith.subf %139, %138 : vector<8x128xf32>
    %141 = arith.mulf %113, %91 : vector<8x128xf32>
    %142 = arith.mulf %113, %101 : vector<8x128xf32>
    %143 = arith.mulf %115, %91 : vector<8x128xf32>
    %144 = arith.mulf %117, %140 : vector<8x128xf32>
    %145 = arith.mulf %119, %141 : vector<8x128xf32>
    %146 = arith.addf %144, %145 : vector<8x128xf32>
    %147 = arith.mulf %117, %141 : vector<8x128xf32>
    %148 = arith.mulf %119, %140 : vector<8x128xf32>
    %149 = arith.subf %147, %148 : vector<8x128xf32>
    %150 = arith.mulf %117, %142 : vector<8x128xf32>
    %151 = arith.mulf %119, %143 : vector<8x128xf32>
    %152 = arith.subf %150, %151 : vector<8x128xf32>
    %153 = arith.mulf %117, %143 : vector<8x128xf32>
    %154 = arith.mulf %119, %142 : vector<8x128xf32>
    %155 = arith.addf %153, %154 : vector<8x128xf32>
    %156 = arith.mulf %115, %102 : vector<8x128xf32>
    %cst_37 = arith.constant 0.000000e+00 : f32
    %157 = vector.broadcast %cst_37 : f32 to vector<8x128xf32>
    %158 = arith.subf %157, %156 : vector<8x128xf32>
    %159 = arith.mulf %113, %92 : vector<8x128xf32>
    %160 = arith.mulf %113, %102 : vector<8x128xf32>
    %161 = arith.mulf %115, %92 : vector<8x128xf32>
    %162 = arith.mulf %117, %158 : vector<8x128xf32>
    %163 = arith.mulf %119, %159 : vector<8x128xf32>
    %164 = arith.addf %162, %163 : vector<8x128xf32>
    %165 = arith.mulf %117, %159 : vector<8x128xf32>
    %166 = arith.mulf %119, %158 : vector<8x128xf32>
    %167 = arith.subf %165, %166 : vector<8x128xf32>
    %168 = arith.mulf %117, %160 : vector<8x128xf32>
    %169 = arith.mulf %119, %161 : vector<8x128xf32>
    %170 = arith.subf %168, %169 : vector<8x128xf32>
    %171 = arith.mulf %117, %161 : vector<8x128xf32>
    %172 = arith.mulf %119, %160 : vector<8x128xf32>
    %173 = arith.addf %171, %172 : vector<8x128xf32>
    %174 = arith.mulf %113, %93 : vector<8x128xf32>
    %175 = arith.mulf %115, %105 : vector<8x128xf32>
    %cst_38 = arith.constant 0.000000e+00 : f32
    %176 = vector.broadcast %cst_38 : f32 to vector<8x128xf32>
    %177 = arith.subf %176, %175 : vector<8x128xf32>
    %178 = arith.mulf %115, %93 : vector<8x128xf32>
    %179 = arith.mulf %113, %105 : vector<8x128xf32>
    %180 = arith.mulf %117, %174 : vector<8x128xf32>
    %181 = arith.mulf %119, %177 : vector<8x128xf32>
    %182 = arith.addf %180, %181 : vector<8x128xf32>
    %183 = arith.mulf %117, %177 : vector<8x128xf32>
    %184 = arith.mulf %119, %174 : vector<8x128xf32>
    %185 = arith.subf %183, %184 : vector<8x128xf32>
    %186 = arith.mulf %117, %178 : vector<8x128xf32>
    %187 = arith.mulf %119, %179 : vector<8x128xf32>
    %188 = arith.subf %186, %187 : vector<8x128xf32>
    %189 = arith.mulf %117, %179 : vector<8x128xf32>
    %190 = arith.mulf %119, %178 : vector<8x128xf32>
    %191 = arith.addf %189, %190 : vector<8x128xf32>
    %192 = arith.mulf %115, %106 : vector<8x128xf32>
    %cst_39 = arith.constant 0.000000e+00 : f32
    %193 = vector.broadcast %cst_39 : f32 to vector<8x128xf32>
    %194 = arith.subf %193, %192 : vector<8x128xf32>
    %195 = arith.mulf %113, %94 : vector<8x128xf32>
    %196 = arith.mulf %113, %106 : vector<8x128xf32>
    %197 = arith.mulf %115, %94 : vector<8x128xf32>
    %198 = arith.mulf %117, %194 : vector<8x128xf32>
    %199 = arith.mulf %119, %195 : vector<8x128xf32>
    %200 = arith.addf %198, %199 : vector<8x128xf32>
    %201 = arith.mulf %117, %195 : vector<8x128xf32>
    %202 = arith.mulf %119, %194 : vector<8x128xf32>
    %203 = arith.subf %201, %202 : vector<8x128xf32>
    %204 = arith.mulf %117, %196 : vector<8x128xf32>
    %205 = arith.mulf %119, %197 : vector<8x128xf32>
    %206 = arith.subf %204, %205 : vector<8x128xf32>
    %207 = arith.mulf %117, %197 : vector<8x128xf32>
    %208 = arith.mulf %119, %196 : vector<8x128xf32>
    %209 = arith.addf %207, %208 : vector<8x128xf32>
    %210 = arith.mulf %113, %95 : vector<8x128xf32>
    %211 = arith.mulf %115, %109 : vector<8x128xf32>
    %cst_40 = arith.constant 0.000000e+00 : f32
    %212 = vector.broadcast %cst_40 : f32 to vector<8x128xf32>
    %213 = arith.subf %212, %211 : vector<8x128xf32>
    %214 = arith.mulf %115, %95 : vector<8x128xf32>
    %215 = arith.mulf %113, %109 : vector<8x128xf32>
    %216 = arith.mulf %117, %210 : vector<8x128xf32>
    %217 = arith.mulf %119, %213 : vector<8x128xf32>
    %218 = arith.addf %216, %217 : vector<8x128xf32>
    %219 = arith.mulf %117, %213 : vector<8x128xf32>
    %220 = arith.mulf %119, %210 : vector<8x128xf32>
    %221 = arith.subf %219, %220 : vector<8x128xf32>
    %222 = arith.mulf %117, %214 : vector<8x128xf32>
    %223 = arith.mulf %119, %215 : vector<8x128xf32>
    %224 = arith.subf %222, %223 : vector<8x128xf32>
    %225 = arith.mulf %117, %215 : vector<8x128xf32>
    %226 = arith.mulf %119, %214 : vector<8x128xf32>
    %227 = arith.addf %225, %226 : vector<8x128xf32>
    %228 = arith.mulf %113, %96 : vector<8x128xf32>
    %229 = arith.mulf %115, %110 : vector<8x128xf32>
    %cst_41 = arith.constant 0.000000e+00 : f32
    %230 = vector.broadcast %cst_41 : f32 to vector<8x128xf32>
    %231 = arith.subf %230, %229 : vector<8x128xf32>
    %232 = arith.mulf %115, %96 : vector<8x128xf32>
    %233 = arith.mulf %113, %110 : vector<8x128xf32>
    %234 = arith.mulf %117, %228 : vector<8x128xf32>
    %235 = arith.mulf %119, %231 : vector<8x128xf32>
    %236 = arith.addf %234, %235 : vector<8x128xf32>
    %237 = arith.mulf %117, %231 : vector<8x128xf32>
    %238 = arith.mulf %119, %228 : vector<8x128xf32>
    %239 = arith.subf %237, %238 : vector<8x128xf32>
    %240 = arith.mulf %117, %232 : vector<8x128xf32>
    %241 = arith.mulf %119, %233 : vector<8x128xf32>
    %242 = arith.subf %240, %241 : vector<8x128xf32>
    %243 = arith.mulf %117, %233 : vector<8x128xf32>
    %244 = arith.mulf %119, %232 : vector<8x128xf32>
    %245 = arith.addf %243, %244 : vector<8x128xf32>
    %246 = arith.mulf %115, %111 : vector<8x128xf32>
    %cst_42 = arith.constant 0.000000e+00 : f32
    %247 = vector.broadcast %cst_42 : f32 to vector<8x128xf32>
    %248 = arith.subf %247, %246 : vector<8x128xf32>
    %249 = arith.mulf %113, %99 : vector<8x128xf32>
    %250 = arith.mulf %113, %111 : vector<8x128xf32>
    %251 = arith.mulf %115, %99 : vector<8x128xf32>
    %252 = arith.mulf %117, %248 : vector<8x128xf32>
    %253 = arith.mulf %119, %249 : vector<8x128xf32>
    %254 = arith.addf %252, %253 : vector<8x128xf32>
    %255 = arith.mulf %117, %249 : vector<8x128xf32>
    %256 = arith.mulf %119, %248 : vector<8x128xf32>
    %257 = arith.subf %255, %256 : vector<8x128xf32>
    %258 = arith.mulf %117, %250 : vector<8x128xf32>
    %259 = arith.mulf %119, %251 : vector<8x128xf32>
    %260 = arith.subf %258, %259 : vector<8x128xf32>
    %261 = arith.mulf %117, %251 : vector<8x128xf32>
    %262 = arith.mulf %119, %250 : vector<8x128xf32>
    %263 = arith.addf %261, %262 : vector<8x128xf32>
    %c8 = arith.constant 8 : index
    %264 = memref.load %arg1[%c8] : memref<36xf32, #tpu.memory_space<smem>>
    %265 = vector.broadcast %264 : f32 to vector<8x128xf32>
    %c9 = arith.constant 9 : index
    %266 = memref.load %arg1[%c9] : memref<36xf32, #tpu.memory_space<smem>>
    %267 = vector.broadcast %266 : f32 to vector<8x128xf32>
    %c10 = arith.constant 10 : index
    %268 = memref.load %arg1[%c10] : memref<36xf32, #tpu.memory_space<smem>>
    %269 = vector.broadcast %268 : f32 to vector<8x128xf32>
    %c11 = arith.constant 11 : index
    %270 = memref.load %arg1[%c11] : memref<36xf32, #tpu.memory_space<smem>>
    %271 = vector.broadcast %270 : f32 to vector<8x128xf32>
    %272 = arith.mulf %265, %128 : vector<8x128xf32>
    %273 = arith.mulf %267, %200 : vector<8x128xf32>
    %274 = arith.subf %272, %273 : vector<8x128xf32>
    %275 = arith.mulf %265, %131 : vector<8x128xf32>
    %276 = arith.mulf %267, %203 : vector<8x128xf32>
    %277 = arith.subf %275, %276 : vector<8x128xf32>
    %278 = arith.mulf %267, %128 : vector<8x128xf32>
    %279 = arith.mulf %265, %200 : vector<8x128xf32>
    %280 = arith.addf %278, %279 : vector<8x128xf32>
    %281 = arith.mulf %267, %131 : vector<8x128xf32>
    %282 = arith.mulf %265, %203 : vector<8x128xf32>
    %283 = arith.addf %281, %282 : vector<8x128xf32>
    %284 = arith.mulf %269, %274 : vector<8x128xf32>
    %285 = arith.mulf %271, %277 : vector<8x128xf32>
    %286 = arith.addf %284, %285 : vector<8x128xf32>
    %287 = arith.mulf %269, %277 : vector<8x128xf32>
    %288 = arith.mulf %271, %274 : vector<8x128xf32>
    %289 = arith.subf %287, %288 : vector<8x128xf32>
    %290 = arith.mulf %269, %280 : vector<8x128xf32>
    %291 = arith.mulf %271, %283 : vector<8x128xf32>
    %292 = arith.subf %290, %291 : vector<8x128xf32>
    %293 = arith.mulf %269, %283 : vector<8x128xf32>
    %294 = arith.mulf %271, %280 : vector<8x128xf32>
    %295 = arith.addf %293, %294 : vector<8x128xf32>
    %296 = arith.mulf %265, %146 : vector<8x128xf32>
    %297 = arith.mulf %267, %218 : vector<8x128xf32>
    %298 = arith.subf %296, %297 : vector<8x128xf32>
    %299 = arith.mulf %265, %149 : vector<8x128xf32>
    %300 = arith.mulf %267, %221 : vector<8x128xf32>
    %301 = arith.subf %299, %300 : vector<8x128xf32>
    %302 = arith.mulf %267, %146 : vector<8x128xf32>
    %303 = arith.mulf %265, %218 : vector<8x128xf32>
    %304 = arith.addf %302, %303 : vector<8x128xf32>
    %305 = arith.mulf %267, %149 : vector<8x128xf32>
    %306 = arith.mulf %265, %221 : vector<8x128xf32>
    %307 = arith.addf %305, %306 : vector<8x128xf32>
    %308 = arith.mulf %269, %298 : vector<8x128xf32>
    %309 = arith.mulf %271, %301 : vector<8x128xf32>
    %310 = arith.addf %308, %309 : vector<8x128xf32>
    %311 = arith.mulf %269, %301 : vector<8x128xf32>
    %312 = arith.mulf %271, %298 : vector<8x128xf32>
    %313 = arith.subf %311, %312 : vector<8x128xf32>
    %314 = arith.mulf %269, %304 : vector<8x128xf32>
    %315 = arith.mulf %271, %307 : vector<8x128xf32>
    %316 = arith.subf %314, %315 : vector<8x128xf32>
    %317 = arith.mulf %269, %307 : vector<8x128xf32>
    %318 = arith.mulf %271, %304 : vector<8x128xf32>
    %319 = arith.addf %317, %318 : vector<8x128xf32>
    %320 = arith.mulf %265, %164 : vector<8x128xf32>
    %321 = arith.mulf %267, %236 : vector<8x128xf32>
    %322 = arith.subf %320, %321 : vector<8x128xf32>
    %323 = arith.mulf %265, %167 : vector<8x128xf32>
    %324 = arith.mulf %267, %239 : vector<8x128xf32>
    %325 = arith.subf %323, %324 : vector<8x128xf32>
    %326 = arith.mulf %267, %164 : vector<8x128xf32>
    %327 = arith.mulf %265, %236 : vector<8x128xf32>
    %328 = arith.addf %326, %327 : vector<8x128xf32>
    %329 = arith.mulf %267, %167 : vector<8x128xf32>
    %330 = arith.mulf %265, %239 : vector<8x128xf32>
    %331 = arith.addf %329, %330 : vector<8x128xf32>
    %332 = arith.mulf %269, %322 : vector<8x128xf32>
    %333 = arith.mulf %271, %325 : vector<8x128xf32>
    %334 = arith.addf %332, %333 : vector<8x128xf32>
    %335 = arith.mulf %269, %325 : vector<8x128xf32>
    %336 = arith.mulf %271, %322 : vector<8x128xf32>
    %337 = arith.subf %335, %336 : vector<8x128xf32>
    %338 = arith.mulf %269, %328 : vector<8x128xf32>
    %339 = arith.mulf %271, %331 : vector<8x128xf32>
    %340 = arith.subf %338, %339 : vector<8x128xf32>
    %341 = arith.mulf %269, %331 : vector<8x128xf32>
    %342 = arith.mulf %271, %328 : vector<8x128xf32>
    %343 = arith.addf %341, %342 : vector<8x128xf32>
    %344 = arith.mulf %265, %182 : vector<8x128xf32>
    %345 = arith.mulf %267, %254 : vector<8x128xf32>
    %346 = arith.subf %344, %345 : vector<8x128xf32>
    %347 = arith.mulf %265, %185 : vector<8x128xf32>
    %348 = arith.mulf %267, %257 : vector<8x128xf32>
    %349 = arith.subf %347, %348 : vector<8x128xf32>
    %350 = arith.mulf %267, %182 : vector<8x128xf32>
    %351 = arith.mulf %265, %254 : vector<8x128xf32>
    %352 = arith.addf %350, %351 : vector<8x128xf32>
    %353 = arith.mulf %267, %185 : vector<8x128xf32>
    %354 = arith.mulf %265, %257 : vector<8x128xf32>
    %355 = arith.addf %353, %354 : vector<8x128xf32>
    %356 = arith.mulf %269, %346 : vector<8x128xf32>
    %357 = arith.mulf %271, %349 : vector<8x128xf32>
    %358 = arith.addf %356, %357 : vector<8x128xf32>
    %359 = arith.mulf %269, %349 : vector<8x128xf32>
    %360 = arith.mulf %271, %346 : vector<8x128xf32>
    %361 = arith.subf %359, %360 : vector<8x128xf32>
    %362 = arith.mulf %269, %352 : vector<8x128xf32>
    %363 = arith.mulf %271, %355 : vector<8x128xf32>
    %364 = arith.subf %362, %363 : vector<8x128xf32>
    %365 = arith.mulf %269, %355 : vector<8x128xf32>
    %366 = arith.mulf %271, %352 : vector<8x128xf32>
    %367 = arith.addf %365, %366 : vector<8x128xf32>
    %368 = arith.mulf %265, %134 : vector<8x128xf32>
    %369 = arith.mulf %267, %206 : vector<8x128xf32>
    %370 = arith.subf %368, %369 : vector<8x128xf32>
    %371 = arith.mulf %265, %137 : vector<8x128xf32>
    %372 = arith.mulf %267, %209 : vector<8x128xf32>
    %373 = arith.subf %371, %372 : vector<8x128xf32>
    %374 = arith.mulf %267, %134 : vector<8x128xf32>
    %375 = arith.mulf %265, %206 : vector<8x128xf32>
    %376 = arith.addf %374, %375 : vector<8x128xf32>
    %377 = arith.mulf %267, %137 : vector<8x128xf32>
    %378 = arith.mulf %265, %209 : vector<8x128xf32>
    %379 = arith.addf %377, %378 : vector<8x128xf32>
    %380 = arith.mulf %269, %370 : vector<8x128xf32>
    %381 = arith.mulf %271, %373 : vector<8x128xf32>
    %382 = arith.addf %380, %381 : vector<8x128xf32>
    %383 = arith.mulf %269, %373 : vector<8x128xf32>
    %384 = arith.mulf %271, %370 : vector<8x128xf32>
    %385 = arith.subf %383, %384 : vector<8x128xf32>
    %386 = arith.mulf %269, %376 : vector<8x128xf32>
    %387 = arith.mulf %271, %379 : vector<8x128xf32>
    %388 = arith.subf %386, %387 : vector<8x128xf32>
    %389 = arith.mulf %269, %379 : vector<8x128xf32>
    %390 = arith.mulf %271, %376 : vector<8x128xf32>
    %391 = arith.addf %389, %390 : vector<8x128xf32>
    %392 = arith.mulf %265, %152 : vector<8x128xf32>
    %393 = arith.mulf %267, %224 : vector<8x128xf32>
    %394 = arith.subf %392, %393 : vector<8x128xf32>
    %395 = arith.mulf %265, %155 : vector<8x128xf32>
    %396 = arith.mulf %267, %227 : vector<8x128xf32>
    %397 = arith.subf %395, %396 : vector<8x128xf32>
    %398 = arith.mulf %267, %152 : vector<8x128xf32>
    %399 = arith.mulf %265, %224 : vector<8x128xf32>
    %400 = arith.addf %398, %399 : vector<8x128xf32>
    %401 = arith.mulf %267, %155 : vector<8x128xf32>
    %402 = arith.mulf %265, %227 : vector<8x128xf32>
    %403 = arith.addf %401, %402 : vector<8x128xf32>
    %404 = arith.mulf %269, %394 : vector<8x128xf32>
    %405 = arith.mulf %271, %397 : vector<8x128xf32>
    %406 = arith.addf %404, %405 : vector<8x128xf32>
    %407 = arith.mulf %269, %397 : vector<8x128xf32>
    %408 = arith.mulf %271, %394 : vector<8x128xf32>
    %409 = arith.subf %407, %408 : vector<8x128xf32>
    %410 = arith.mulf %269, %400 : vector<8x128xf32>
    %411 = arith.mulf %271, %403 : vector<8x128xf32>
    %412 = arith.subf %410, %411 : vector<8x128xf32>
    %413 = arith.mulf %269, %403 : vector<8x128xf32>
    %414 = arith.mulf %271, %400 : vector<8x128xf32>
    %415 = arith.addf %413, %414 : vector<8x128xf32>
    %416 = arith.mulf %265, %170 : vector<8x128xf32>
    %417 = arith.mulf %267, %242 : vector<8x128xf32>
    %418 = arith.subf %416, %417 : vector<8x128xf32>
    %419 = arith.mulf %265, %173 : vector<8x128xf32>
    %420 = arith.mulf %267, %245 : vector<8x128xf32>
    %421 = arith.subf %419, %420 : vector<8x128xf32>
    %422 = arith.mulf %267, %170 : vector<8x128xf32>
    %423 = arith.mulf %265, %242 : vector<8x128xf32>
    %424 = arith.addf %422, %423 : vector<8x128xf32>
    %425 = arith.mulf %267, %173 : vector<8x128xf32>
    %426 = arith.mulf %265, %245 : vector<8x128xf32>
    %427 = arith.addf %425, %426 : vector<8x128xf32>
    %428 = arith.mulf %269, %418 : vector<8x128xf32>
    %429 = arith.mulf %271, %421 : vector<8x128xf32>
    %430 = arith.addf %428, %429 : vector<8x128xf32>
    %431 = arith.mulf %269, %421 : vector<8x128xf32>
    %432 = arith.mulf %271, %418 : vector<8x128xf32>
    %433 = arith.subf %431, %432 : vector<8x128xf32>
    %434 = arith.mulf %269, %424 : vector<8x128xf32>
    %435 = arith.mulf %271, %427 : vector<8x128xf32>
    %436 = arith.subf %434, %435 : vector<8x128xf32>
    %437 = arith.mulf %269, %427 : vector<8x128xf32>
    %438 = arith.mulf %271, %424 : vector<8x128xf32>
    %439 = arith.addf %437, %438 : vector<8x128xf32>
    %440 = arith.mulf %265, %188 : vector<8x128xf32>
    %441 = arith.mulf %267, %260 : vector<8x128xf32>
    %442 = arith.subf %440, %441 : vector<8x128xf32>
    %443 = arith.mulf %265, %191 : vector<8x128xf32>
    %444 = arith.mulf %267, %263 : vector<8x128xf32>
    %445 = arith.subf %443, %444 : vector<8x128xf32>
    %446 = arith.mulf %267, %188 : vector<8x128xf32>
    %447 = arith.mulf %265, %260 : vector<8x128xf32>
    %448 = arith.addf %446, %447 : vector<8x128xf32>
    %449 = arith.mulf %267, %191 : vector<8x128xf32>
    %450 = arith.mulf %265, %263 : vector<8x128xf32>
    %451 = arith.addf %449, %450 : vector<8x128xf32>
    %452 = arith.mulf %269, %442 : vector<8x128xf32>
    %453 = arith.mulf %271, %445 : vector<8x128xf32>
    %454 = arith.addf %452, %453 : vector<8x128xf32>
    %455 = arith.mulf %269, %445 : vector<8x128xf32>
    %456 = arith.mulf %271, %442 : vector<8x128xf32>
    %457 = arith.subf %455, %456 : vector<8x128xf32>
    %458 = arith.mulf %269, %448 : vector<8x128xf32>
    %459 = arith.mulf %271, %451 : vector<8x128xf32>
    %460 = arith.subf %458, %459 : vector<8x128xf32>
    %461 = arith.mulf %269, %451 : vector<8x128xf32>
    %462 = arith.mulf %271, %448 : vector<8x128xf32>
    %463 = arith.addf %461, %462 : vector<8x128xf32>
    %c12 = arith.constant 12 : index
    %464 = memref.load %arg1[%c12] : memref<36xf32, #tpu.memory_space<smem>>
    %465 = vector.broadcast %464 : f32 to vector<8x128xf32>
    %c13 = arith.constant 13 : index
    %466 = memref.load %arg1[%c13] : memref<36xf32, #tpu.memory_space<smem>>
    %467 = vector.broadcast %466 : f32 to vector<8x128xf32>
    %c14 = arith.constant 14 : index
    %468 = memref.load %arg1[%c14] : memref<36xf32, #tpu.memory_space<smem>>
    %469 = vector.broadcast %468 : f32 to vector<8x128xf32>
    %c15 = arith.constant 15 : index
    %470 = memref.load %arg1[%c15] : memref<36xf32, #tpu.memory_space<smem>>
    %471 = vector.broadcast %470 : f32 to vector<8x128xf32>
    %472 = arith.mulf %465, %286 : vector<8x128xf32>
    %473 = arith.mulf %467, %334 : vector<8x128xf32>
    %474 = arith.subf %472, %473 : vector<8x128xf32>
    %475 = arith.mulf %465, %289 : vector<8x128xf32>
    %476 = arith.mulf %467, %337 : vector<8x128xf32>
    %477 = arith.subf %475, %476 : vector<8x128xf32>
    %478 = arith.mulf %467, %286 : vector<8x128xf32>
    %479 = arith.mulf %465, %334 : vector<8x128xf32>
    %480 = arith.addf %478, %479 : vector<8x128xf32>
    %481 = arith.mulf %467, %289 : vector<8x128xf32>
    %482 = arith.mulf %465, %337 : vector<8x128xf32>
    %483 = arith.addf %481, %482 : vector<8x128xf32>
    %484 = arith.mulf %469, %474 : vector<8x128xf32>
    %485 = arith.mulf %471, %477 : vector<8x128xf32>
    %486 = arith.addf %484, %485 : vector<8x128xf32>
    %487 = arith.mulf %469, %477 : vector<8x128xf32>
    %488 = arith.mulf %471, %474 : vector<8x128xf32>
    %489 = arith.subf %487, %488 : vector<8x128xf32>
    %490 = arith.mulf %469, %480 : vector<8x128xf32>
    %491 = arith.mulf %471, %483 : vector<8x128xf32>
    %492 = arith.subf %490, %491 : vector<8x128xf32>
    %493 = arith.mulf %469, %483 : vector<8x128xf32>
    %494 = arith.mulf %471, %480 : vector<8x128xf32>
    %495 = arith.addf %493, %494 : vector<8x128xf32>
    %496 = arith.mulf %465, %310 : vector<8x128xf32>
    %497 = arith.mulf %467, %358 : vector<8x128xf32>
    %498 = arith.subf %496, %497 : vector<8x128xf32>
    %499 = arith.mulf %465, %313 : vector<8x128xf32>
    %500 = arith.mulf %467, %361 : vector<8x128xf32>
    %501 = arith.subf %499, %500 : vector<8x128xf32>
    %502 = arith.mulf %467, %310 : vector<8x128xf32>
    %503 = arith.mulf %465, %358 : vector<8x128xf32>
    %504 = arith.addf %502, %503 : vector<8x128xf32>
    %505 = arith.mulf %467, %313 : vector<8x128xf32>
    %506 = arith.mulf %465, %361 : vector<8x128xf32>
    %507 = arith.addf %505, %506 : vector<8x128xf32>
    %508 = arith.mulf %469, %498 : vector<8x128xf32>
    %509 = arith.mulf %471, %501 : vector<8x128xf32>
    %510 = arith.addf %508, %509 : vector<8x128xf32>
    %511 = arith.mulf %469, %501 : vector<8x128xf32>
    %512 = arith.mulf %471, %498 : vector<8x128xf32>
    %513 = arith.subf %511, %512 : vector<8x128xf32>
    %514 = arith.mulf %469, %504 : vector<8x128xf32>
    %515 = arith.mulf %471, %507 : vector<8x128xf32>
    %516 = arith.subf %514, %515 : vector<8x128xf32>
    %517 = arith.mulf %469, %507 : vector<8x128xf32>
    %518 = arith.mulf %471, %504 : vector<8x128xf32>
    %519 = arith.addf %517, %518 : vector<8x128xf32>
    %520 = arith.mulf %465, %292 : vector<8x128xf32>
    %521 = arith.mulf %467, %340 : vector<8x128xf32>
    %522 = arith.subf %520, %521 : vector<8x128xf32>
    %523 = arith.mulf %465, %295 : vector<8x128xf32>
    %524 = arith.mulf %467, %343 : vector<8x128xf32>
    %525 = arith.subf %523, %524 : vector<8x128xf32>
    %526 = arith.mulf %467, %292 : vector<8x128xf32>
    %527 = arith.mulf %465, %340 : vector<8x128xf32>
    %528 = arith.addf %526, %527 : vector<8x128xf32>
    %529 = arith.mulf %467, %295 : vector<8x128xf32>
    %530 = arith.mulf %465, %343 : vector<8x128xf32>
    %531 = arith.addf %529, %530 : vector<8x128xf32>
    %532 = arith.mulf %469, %522 : vector<8x128xf32>
    %533 = arith.mulf %471, %525 : vector<8x128xf32>
    %534 = arith.addf %532, %533 : vector<8x128xf32>
    %535 = arith.mulf %469, %525 : vector<8x128xf32>
    %536 = arith.mulf %471, %522 : vector<8x128xf32>
    %537 = arith.subf %535, %536 : vector<8x128xf32>
    %538 = arith.mulf %469, %528 : vector<8x128xf32>
    %539 = arith.mulf %471, %531 : vector<8x128xf32>
    %540 = arith.subf %538, %539 : vector<8x128xf32>
    %541 = arith.mulf %469, %531 : vector<8x128xf32>
    %542 = arith.mulf %471, %528 : vector<8x128xf32>
    %543 = arith.addf %541, %542 : vector<8x128xf32>
    %544 = arith.mulf %465, %316 : vector<8x128xf32>
    %545 = arith.mulf %467, %364 : vector<8x128xf32>
    %546 = arith.subf %544, %545 : vector<8x128xf32>
    %547 = arith.mulf %465, %319 : vector<8x128xf32>
    %548 = arith.mulf %467, %367 : vector<8x128xf32>
    %549 = arith.subf %547, %548 : vector<8x128xf32>
    %550 = arith.mulf %467, %316 : vector<8x128xf32>
    %551 = arith.mulf %465, %364 : vector<8x128xf32>
    %552 = arith.addf %550, %551 : vector<8x128xf32>
    %553 = arith.mulf %467, %319 : vector<8x128xf32>
    %554 = arith.mulf %465, %367 : vector<8x128xf32>
    %555 = arith.addf %553, %554 : vector<8x128xf32>
    %556 = arith.mulf %469, %546 : vector<8x128xf32>
    %557 = arith.mulf %471, %549 : vector<8x128xf32>
    %558 = arith.addf %556, %557 : vector<8x128xf32>
    %559 = arith.mulf %469, %549 : vector<8x128xf32>
    %560 = arith.mulf %471, %546 : vector<8x128xf32>
    %561 = arith.subf %559, %560 : vector<8x128xf32>
    %562 = arith.mulf %469, %552 : vector<8x128xf32>
    %563 = arith.mulf %471, %555 : vector<8x128xf32>
    %564 = arith.subf %562, %563 : vector<8x128xf32>
    %565 = arith.mulf %469, %555 : vector<8x128xf32>
    %566 = arith.mulf %471, %552 : vector<8x128xf32>
    %567 = arith.addf %565, %566 : vector<8x128xf32>
    %568 = arith.mulf %465, %382 : vector<8x128xf32>
    %569 = arith.mulf %467, %430 : vector<8x128xf32>
    %570 = arith.subf %568, %569 : vector<8x128xf32>
    %571 = arith.mulf %465, %385 : vector<8x128xf32>
    %572 = arith.mulf %467, %433 : vector<8x128xf32>
    %573 = arith.subf %571, %572 : vector<8x128xf32>
    %574 = arith.mulf %467, %382 : vector<8x128xf32>
    %575 = arith.mulf %465, %430 : vector<8x128xf32>
    %576 = arith.addf %574, %575 : vector<8x128xf32>
    %577 = arith.mulf %467, %385 : vector<8x128xf32>
    %578 = arith.mulf %465, %433 : vector<8x128xf32>
    %579 = arith.addf %577, %578 : vector<8x128xf32>
    %580 = arith.mulf %469, %570 : vector<8x128xf32>
    %581 = arith.mulf %471, %573 : vector<8x128xf32>
    %582 = arith.addf %580, %581 : vector<8x128xf32>
    %583 = arith.mulf %469, %573 : vector<8x128xf32>
    %584 = arith.mulf %471, %570 : vector<8x128xf32>
    %585 = arith.subf %583, %584 : vector<8x128xf32>
    %586 = arith.mulf %469, %576 : vector<8x128xf32>
    %587 = arith.mulf %471, %579 : vector<8x128xf32>
    %588 = arith.subf %586, %587 : vector<8x128xf32>
    %589 = arith.mulf %469, %579 : vector<8x128xf32>
    %590 = arith.mulf %471, %576 : vector<8x128xf32>
    %591 = arith.addf %589, %590 : vector<8x128xf32>
    %592 = arith.mulf %465, %406 : vector<8x128xf32>
    %593 = arith.mulf %467, %454 : vector<8x128xf32>
    %594 = arith.subf %592, %593 : vector<8x128xf32>
    %595 = arith.mulf %465, %409 : vector<8x128xf32>
    %596 = arith.mulf %467, %457 : vector<8x128xf32>
    %597 = arith.subf %595, %596 : vector<8x128xf32>
    %598 = arith.mulf %467, %406 : vector<8x128xf32>
    %599 = arith.mulf %465, %454 : vector<8x128xf32>
    %600 = arith.addf %598, %599 : vector<8x128xf32>
    %601 = arith.mulf %467, %409 : vector<8x128xf32>
    %602 = arith.mulf %465, %457 : vector<8x128xf32>
    %603 = arith.addf %601, %602 : vector<8x128xf32>
    %604 = arith.mulf %469, %594 : vector<8x128xf32>
    %605 = arith.mulf %471, %597 : vector<8x128xf32>
    %606 = arith.addf %604, %605 : vector<8x128xf32>
    %607 = arith.mulf %469, %597 : vector<8x128xf32>
    %608 = arith.mulf %471, %594 : vector<8x128xf32>
    %609 = arith.subf %607, %608 : vector<8x128xf32>
    %610 = arith.mulf %469, %600 : vector<8x128xf32>
    %611 = arith.mulf %471, %603 : vector<8x128xf32>
    %612 = arith.subf %610, %611 : vector<8x128xf32>
    %613 = arith.mulf %469, %603 : vector<8x128xf32>
    %614 = arith.mulf %471, %600 : vector<8x128xf32>
    %615 = arith.addf %613, %614 : vector<8x128xf32>
    %616 = arith.mulf %465, %388 : vector<8x128xf32>
    %617 = arith.mulf %467, %436 : vector<8x128xf32>
    %618 = arith.subf %616, %617 : vector<8x128xf32>
    %619 = arith.mulf %465, %391 : vector<8x128xf32>
    %620 = arith.mulf %467, %439 : vector<8x128xf32>
    %621 = arith.subf %619, %620 : vector<8x128xf32>
    %622 = arith.mulf %467, %388 : vector<8x128xf32>
    %623 = arith.mulf %465, %436 : vector<8x128xf32>
    %624 = arith.addf %622, %623 : vector<8x128xf32>
    %625 = arith.mulf %467, %391 : vector<8x128xf32>
    %626 = arith.mulf %465, %439 : vector<8x128xf32>
    %627 = arith.addf %625, %626 : vector<8x128xf32>
    %628 = arith.mulf %469, %618 : vector<8x128xf32>
    %629 = arith.mulf %471, %621 : vector<8x128xf32>
    %630 = arith.addf %628, %629 : vector<8x128xf32>
    %631 = arith.mulf %469, %621 : vector<8x128xf32>
    %632 = arith.mulf %471, %618 : vector<8x128xf32>
    %633 = arith.subf %631, %632 : vector<8x128xf32>
    %634 = arith.mulf %469, %624 : vector<8x128xf32>
    %635 = arith.mulf %471, %627 : vector<8x128xf32>
    %636 = arith.subf %634, %635 : vector<8x128xf32>
    %637 = arith.mulf %469, %627 : vector<8x128xf32>
    %638 = arith.mulf %471, %624 : vector<8x128xf32>
    %639 = arith.addf %637, %638 : vector<8x128xf32>
    %640 = arith.mulf %465, %412 : vector<8x128xf32>
    %641 = arith.mulf %467, %460 : vector<8x128xf32>
    %642 = arith.subf %640, %641 : vector<8x128xf32>
    %643 = arith.mulf %465, %415 : vector<8x128xf32>
    %644 = arith.mulf %467, %463 : vector<8x128xf32>
    %645 = arith.subf %643, %644 : vector<8x128xf32>
    %646 = arith.mulf %467, %412 : vector<8x128xf32>
    %647 = arith.mulf %465, %460 : vector<8x128xf32>
    %648 = arith.addf %646, %647 : vector<8x128xf32>
    %649 = arith.mulf %467, %415 : vector<8x128xf32>
    %650 = arith.mulf %465, %463 : vector<8x128xf32>
    %651 = arith.addf %649, %650 : vector<8x128xf32>
    %652 = arith.mulf %469, %642 : vector<8x128xf32>
    %653 = arith.mulf %471, %645 : vector<8x128xf32>
    %654 = arith.addf %652, %653 : vector<8x128xf32>
    %655 = arith.mulf %469, %645 : vector<8x128xf32>
    %656 = arith.mulf %471, %642 : vector<8x128xf32>
    %657 = arith.subf %655, %656 : vector<8x128xf32>
    %658 = arith.mulf %469, %648 : vector<8x128xf32>
    %659 = arith.mulf %471, %651 : vector<8x128xf32>
    %660 = arith.subf %658, %659 : vector<8x128xf32>
    %661 = arith.mulf %469, %651 : vector<8x128xf32>
    %662 = arith.mulf %471, %648 : vector<8x128xf32>
    %663 = arith.addf %661, %662 : vector<8x128xf32>
    %c16 = arith.constant 16 : index
    %664 = memref.load %arg1[%c16] : memref<36xf32, #tpu.memory_space<smem>>
    %665 = vector.broadcast %664 : f32 to vector<8x128xf32>
    %c17 = arith.constant 17 : index
    %666 = memref.load %arg1[%c17] : memref<36xf32, #tpu.memory_space<smem>>
    %667 = vector.broadcast %666 : f32 to vector<8x128xf32>
    %c18 = arith.constant 18 : index
    %668 = memref.load %arg1[%c18] : memref<36xf32, #tpu.memory_space<smem>>
    %669 = vector.broadcast %668 : f32 to vector<8x128xf32>
    %c19 = arith.constant 19 : index
    %670 = memref.load %arg1[%c19] : memref<36xf32, #tpu.memory_space<smem>>
    %671 = vector.broadcast %670 : f32 to vector<8x128xf32>
    %672 = arith.mulf %665, %486 : vector<8x128xf32>
    %673 = arith.mulf %667, %510 : vector<8x128xf32>
    %674 = arith.subf %672, %673 : vector<8x128xf32>
    %675 = arith.mulf %665, %489 : vector<8x128xf32>
    %676 = arith.mulf %667, %513 : vector<8x128xf32>
    %677 = arith.subf %675, %676 : vector<8x128xf32>
    %678 = arith.mulf %667, %486 : vector<8x128xf32>
    %679 = arith.mulf %665, %510 : vector<8x128xf32>
    %680 = arith.addf %678, %679 : vector<8x128xf32>
    %681 = arith.mulf %667, %489 : vector<8x128xf32>
    %682 = arith.mulf %665, %513 : vector<8x128xf32>
    %683 = arith.addf %681, %682 : vector<8x128xf32>
    %684 = arith.mulf %669, %674 : vector<8x128xf32>
    %685 = arith.mulf %671, %677 : vector<8x128xf32>
    %686 = arith.addf %684, %685 : vector<8x128xf32>
    %687 = arith.mulf %669, %677 : vector<8x128xf32>
    %688 = arith.mulf %671, %674 : vector<8x128xf32>
    %689 = arith.subf %687, %688 : vector<8x128xf32>
    %690 = arith.mulf %669, %680 : vector<8x128xf32>
    %691 = arith.mulf %671, %683 : vector<8x128xf32>
    %692 = arith.subf %690, %691 : vector<8x128xf32>
    %693 = arith.mulf %669, %683 : vector<8x128xf32>
    %694 = arith.mulf %671, %680 : vector<8x128xf32>
    %695 = arith.addf %693, %694 : vector<8x128xf32>
    %696 = arith.mulf %665, %492 : vector<8x128xf32>
    %697 = arith.mulf %667, %516 : vector<8x128xf32>
    %698 = arith.subf %696, %697 : vector<8x128xf32>
    %699 = arith.mulf %665, %495 : vector<8x128xf32>
    %700 = arith.mulf %667, %519 : vector<8x128xf32>
    %701 = arith.subf %699, %700 : vector<8x128xf32>
    %702 = arith.mulf %667, %492 : vector<8x128xf32>
    %703 = arith.mulf %665, %516 : vector<8x128xf32>
    %704 = arith.addf %702, %703 : vector<8x128xf32>
    %705 = arith.mulf %667, %495 : vector<8x128xf32>
    %706 = arith.mulf %665, %519 : vector<8x128xf32>
    %707 = arith.addf %705, %706 : vector<8x128xf32>
    %708 = arith.mulf %669, %698 : vector<8x128xf32>
    %709 = arith.mulf %671, %701 : vector<8x128xf32>
    %710 = arith.addf %708, %709 : vector<8x128xf32>
    %711 = arith.mulf %669, %701 : vector<8x128xf32>
    %712 = arith.mulf %671, %698 : vector<8x128xf32>
    %713 = arith.subf %711, %712 : vector<8x128xf32>
    %714 = arith.mulf %669, %704 : vector<8x128xf32>
    %715 = arith.mulf %671, %707 : vector<8x128xf32>
    %716 = arith.subf %714, %715 : vector<8x128xf32>
    %717 = arith.mulf %669, %707 : vector<8x128xf32>
    %718 = arith.mulf %671, %704 : vector<8x128xf32>
    %719 = arith.addf %717, %718 : vector<8x128xf32>
    %720 = arith.mulf %665, %534 : vector<8x128xf32>
    %721 = arith.mulf %667, %558 : vector<8x128xf32>
    %722 = arith.subf %720, %721 : vector<8x128xf32>
    %723 = arith.mulf %665, %537 : vector<8x128xf32>
    %724 = arith.mulf %667, %561 : vector<8x128xf32>
    %725 = arith.subf %723, %724 : vector<8x128xf32>
    %726 = arith.mulf %667, %534 : vector<8x128xf32>
    %727 = arith.mulf %665, %558 : vector<8x128xf32>
    %728 = arith.addf %726, %727 : vector<8x128xf32>
    %729 = arith.mulf %667, %537 : vector<8x128xf32>
    %730 = arith.mulf %665, %561 : vector<8x128xf32>
    %731 = arith.addf %729, %730 : vector<8x128xf32>
    %732 = arith.mulf %669, %722 : vector<8x128xf32>
    %733 = arith.mulf %671, %725 : vector<8x128xf32>
    %734 = arith.addf %732, %733 : vector<8x128xf32>
    %735 = arith.mulf %669, %725 : vector<8x128xf32>
    %736 = arith.mulf %671, %722 : vector<8x128xf32>
    %737 = arith.subf %735, %736 : vector<8x128xf32>
    %738 = arith.mulf %669, %728 : vector<8x128xf32>
    %739 = arith.mulf %671, %731 : vector<8x128xf32>
    %740 = arith.subf %738, %739 : vector<8x128xf32>
    %741 = arith.mulf %669, %731 : vector<8x128xf32>
    %742 = arith.mulf %671, %728 : vector<8x128xf32>
    %743 = arith.addf %741, %742 : vector<8x128xf32>
    %744 = arith.mulf %665, %540 : vector<8x128xf32>
    %745 = arith.mulf %667, %564 : vector<8x128xf32>
    %746 = arith.subf %744, %745 : vector<8x128xf32>
    %747 = arith.mulf %665, %543 : vector<8x128xf32>
    %748 = arith.mulf %667, %567 : vector<8x128xf32>
    %749 = arith.subf %747, %748 : vector<8x128xf32>
    %750 = arith.mulf %667, %540 : vector<8x128xf32>
    %751 = arith.mulf %665, %564 : vector<8x128xf32>
    %752 = arith.addf %750, %751 : vector<8x128xf32>
    %753 = arith.mulf %667, %543 : vector<8x128xf32>
    %754 = arith.mulf %665, %567 : vector<8x128xf32>
    %755 = arith.addf %753, %754 : vector<8x128xf32>
    %756 = arith.mulf %669, %746 : vector<8x128xf32>
    %757 = arith.mulf %671, %749 : vector<8x128xf32>
    %758 = arith.addf %756, %757 : vector<8x128xf32>
    %759 = arith.mulf %669, %749 : vector<8x128xf32>
    %760 = arith.mulf %671, %746 : vector<8x128xf32>
    %761 = arith.subf %759, %760 : vector<8x128xf32>
    %762 = arith.mulf %669, %752 : vector<8x128xf32>
    %763 = arith.mulf %671, %755 : vector<8x128xf32>
    %764 = arith.subf %762, %763 : vector<8x128xf32>
    %765 = arith.mulf %669, %755 : vector<8x128xf32>
    %766 = arith.mulf %671, %752 : vector<8x128xf32>
    %767 = arith.addf %765, %766 : vector<8x128xf32>
    %768 = arith.mulf %665, %582 : vector<8x128xf32>
    %769 = arith.mulf %667, %606 : vector<8x128xf32>
    %770 = arith.subf %768, %769 : vector<8x128xf32>
    %771 = arith.mulf %665, %585 : vector<8x128xf32>
    %772 = arith.mulf %667, %609 : vector<8x128xf32>
    %773 = arith.subf %771, %772 : vector<8x128xf32>
    %774 = arith.mulf %667, %582 : vector<8x128xf32>
    %775 = arith.mulf %665, %606 : vector<8x128xf32>
    %776 = arith.addf %774, %775 : vector<8x128xf32>
    %777 = arith.mulf %667, %585 : vector<8x128xf32>
    %778 = arith.mulf %665, %609 : vector<8x128xf32>
    %779 = arith.addf %777, %778 : vector<8x128xf32>
    %780 = arith.mulf %669, %770 : vector<8x128xf32>
    %781 = arith.mulf %671, %773 : vector<8x128xf32>
    %782 = arith.addf %780, %781 : vector<8x128xf32>
    %783 = arith.mulf %669, %773 : vector<8x128xf32>
    %784 = arith.mulf %671, %770 : vector<8x128xf32>
    %785 = arith.subf %783, %784 : vector<8x128xf32>
    %786 = arith.mulf %669, %776 : vector<8x128xf32>
    %787 = arith.mulf %671, %779 : vector<8x128xf32>
    %788 = arith.subf %786, %787 : vector<8x128xf32>
    %789 = arith.mulf %669, %779 : vector<8x128xf32>
    %790 = arith.mulf %671, %776 : vector<8x128xf32>
    %791 = arith.addf %789, %790 : vector<8x128xf32>
    %792 = arith.mulf %665, %588 : vector<8x128xf32>
    %793 = arith.mulf %667, %612 : vector<8x128xf32>
    %794 = arith.subf %792, %793 : vector<8x128xf32>
    %795 = arith.mulf %665, %591 : vector<8x128xf32>
    %796 = arith.mulf %667, %615 : vector<8x128xf32>
    %797 = arith.subf %795, %796 : vector<8x128xf32>
    %798 = arith.mulf %667, %588 : vector<8x128xf32>
    %799 = arith.mulf %665, %612 : vector<8x128xf32>
    %800 = arith.addf %798, %799 : vector<8x128xf32>
    %801 = arith.mulf %667, %591 : vector<8x128xf32>
    %802 = arith.mulf %665, %615 : vector<8x128xf32>
    %803 = arith.addf %801, %802 : vector<8x128xf32>
    %804 = arith.mulf %669, %794 : vector<8x128xf32>
    %805 = arith.mulf %671, %797 : vector<8x128xf32>
    %806 = arith.addf %804, %805 : vector<8x128xf32>
    %807 = arith.mulf %669, %797 : vector<8x128xf32>
    %808 = arith.mulf %671, %794 : vector<8x128xf32>
    %809 = arith.subf %807, %808 : vector<8x128xf32>
    %810 = arith.mulf %669, %800 : vector<8x128xf32>
    %811 = arith.mulf %671, %803 : vector<8x128xf32>
    %812 = arith.subf %810, %811 : vector<8x128xf32>
    %813 = arith.mulf %669, %803 : vector<8x128xf32>
    %814 = arith.mulf %671, %800 : vector<8x128xf32>
    %815 = arith.addf %813, %814 : vector<8x128xf32>
    %816 = arith.mulf %665, %630 : vector<8x128xf32>
    %817 = arith.mulf %667, %654 : vector<8x128xf32>
    %818 = arith.subf %816, %817 : vector<8x128xf32>
    %819 = arith.mulf %665, %633 : vector<8x128xf32>
    %820 = arith.mulf %667, %657 : vector<8x128xf32>
    %821 = arith.subf %819, %820 : vector<8x128xf32>
    %822 = arith.mulf %667, %630 : vector<8x128xf32>
    %823 = arith.mulf %665, %654 : vector<8x128xf32>
    %824 = arith.addf %822, %823 : vector<8x128xf32>
    %825 = arith.mulf %667, %633 : vector<8x128xf32>
    %826 = arith.mulf %665, %657 : vector<8x128xf32>
    %827 = arith.addf %825, %826 : vector<8x128xf32>
    %828 = arith.mulf %669, %818 : vector<8x128xf32>
    %829 = arith.mulf %671, %821 : vector<8x128xf32>
    %830 = arith.addf %828, %829 : vector<8x128xf32>
    %831 = arith.mulf %669, %821 : vector<8x128xf32>
    %832 = arith.mulf %671, %818 : vector<8x128xf32>
    %833 = arith.subf %831, %832 : vector<8x128xf32>
    %834 = arith.mulf %669, %824 : vector<8x128xf32>
    %835 = arith.mulf %671, %827 : vector<8x128xf32>
    %836 = arith.subf %834, %835 : vector<8x128xf32>
    %837 = arith.mulf %669, %827 : vector<8x128xf32>
    %838 = arith.mulf %671, %824 : vector<8x128xf32>
    %839 = arith.addf %837, %838 : vector<8x128xf32>
    %840 = arith.mulf %665, %636 : vector<8x128xf32>
    %841 = arith.mulf %667, %660 : vector<8x128xf32>
    %842 = arith.subf %840, %841 : vector<8x128xf32>
    %843 = arith.mulf %665, %639 : vector<8x128xf32>
    %844 = arith.mulf %667, %663 : vector<8x128xf32>
    %845 = arith.subf %843, %844 : vector<8x128xf32>
    %846 = arith.mulf %667, %636 : vector<8x128xf32>
    %847 = arith.mulf %665, %660 : vector<8x128xf32>
    %848 = arith.addf %846, %847 : vector<8x128xf32>
    %849 = arith.mulf %667, %639 : vector<8x128xf32>
    %850 = arith.mulf %665, %663 : vector<8x128xf32>
    %851 = arith.addf %849, %850 : vector<8x128xf32>
    %852 = arith.mulf %669, %842 : vector<8x128xf32>
    %853 = arith.mulf %671, %845 : vector<8x128xf32>
    %854 = arith.addf %852, %853 : vector<8x128xf32>
    %855 = arith.mulf %669, %845 : vector<8x128xf32>
    %856 = arith.mulf %671, %842 : vector<8x128xf32>
    %857 = arith.subf %855, %856 : vector<8x128xf32>
    %858 = arith.mulf %669, %848 : vector<8x128xf32>
    %859 = arith.mulf %671, %851 : vector<8x128xf32>
    %860 = arith.subf %858, %859 : vector<8x128xf32>
    %861 = arith.mulf %669, %851 : vector<8x128xf32>
    %862 = arith.mulf %671, %848 : vector<8x128xf32>
    %863 = arith.addf %861, %862 : vector<8x128xf32>
    %cst_43 = arith.constant 0.000000e+00 : f32
    %864 = vector.broadcast %cst_43 : f32 to vector<8x128xf32>
    %865 = arith.subf %864, %716 : vector<8x128xf32>
    %cst_44 = arith.constant 0.000000e+00 : f32
    %866 = vector.broadcast %cst_44 : f32 to vector<8x128xf32>
    %867 = arith.subf %866, %719 : vector<8x128xf32>
    %cst_45 = arith.constant 0.000000e+00 : f32
    %868 = vector.broadcast %cst_45 : f32 to vector<8x128xf32>
    %869 = arith.subf %868, %758 : vector<8x128xf32>
    %cst_46 = arith.constant 0.000000e+00 : f32
    %870 = vector.broadcast %cst_46 : f32 to vector<8x128xf32>
    %871 = arith.subf %870, %761 : vector<8x128xf32>
    %cst_47 = arith.constant 0.000000e+00 : f32
    %872 = vector.broadcast %cst_47 : f32 to vector<8x128xf32>
    %873 = arith.subf %872, %788 : vector<8x128xf32>
    %cst_48 = arith.constant 0.000000e+00 : f32
    %874 = vector.broadcast %cst_48 : f32 to vector<8x128xf32>
    %875 = arith.subf %874, %791 : vector<8x128xf32>
    %cst_49 = arith.constant 0.000000e+00 : f32
    %876 = vector.broadcast %cst_49 : f32 to vector<8x128xf32>
    %877 = arith.subf %876, %830 : vector<8x128xf32>
    %cst_50 = arith.constant 0.000000e+00 : f32
    %878 = vector.broadcast %cst_50 : f32 to vector<8x128xf32>
    %879 = arith.subf %878, %833 : vector<8x128xf32>
    %c0_51 = arith.constant 0 : index
    %c0_52 = arith.constant 0 : index
    %c0_53 = arith.constant 0 : index
    %c0_54 = arith.constant 0 : index
    %880 = vector.load %arg2[%c0_51, %c0_52, %c0_53, %c0_54] : memref<4x1x8x128xf32, #tpu.memory_space<vmem>>, vector<1x1x8x128xf32>
    %881 = vector.shape_cast %880 : vector<1x1x8x128xf32> to vector<8x128xf32>
    %c0_55 = arith.constant 0 : index
    %882 = memref.load %arg1[%c0_55] : memref<36xf32, #tpu.memory_space<smem>>
    %883 = vector.broadcast %882 : f32 to vector<8x128xf32>
    %884 = arith.mulf %881, %883 : vector<8x128xf32>
    %885 = arith.mulf %884, %884 : vector<8x128xf32>
    %cst_56 = arith.constant 1.000000e+00 : f32
    %886 = vector.broadcast %cst_56 : f32 to vector<8x128xf32>
    %887 = arith.addf %886, %885 : vector<8x128xf32>
    %888 = math.sqrt %887 : vector<8x128xf32>
    %cst_57 = arith.constant 1.000000e+00 : f32
    %889 = vector.broadcast %cst_57 : f32 to vector<8x128xf32>
    %890 = arith.addf %889, %888 : vector<8x128xf32>
    %891 = arith.divf %884, %890 : vector<8x128xf32>
    %892 = arith.mulf %891, %891 : vector<8x128xf32>
    %cst_58 = arith.constant 1.000000e+00 : f32
    %893 = vector.broadcast %cst_58 : f32 to vector<8x128xf32>
    %894 = arith.addf %893, %892 : vector<8x128xf32>
    %895 = math.rsqrt %894 : vector<8x128xf32>
    %896 = arith.mulf %891, %895 : vector<8x128xf32>
    %897 = arith.mulf %895, %686 : vector<8x128xf32>
    %898 = arith.mulf %896, %785 : vector<8x128xf32>
    %899 = arith.addf %897, %898 : vector<8x128xf32>
    %900 = arith.mulf %895, %689 : vector<8x128xf32>
    %901 = arith.mulf %896, %782 : vector<8x128xf32>
    %902 = arith.subf %900, %901 : vector<8x128xf32>
    %903 = arith.mulf %895, %782 : vector<8x128xf32>
    %904 = arith.mulf %896, %689 : vector<8x128xf32>
    %905 = arith.addf %903, %904 : vector<8x128xf32>
    %906 = arith.mulf %895, %785 : vector<8x128xf32>
    %907 = arith.mulf %896, %686 : vector<8x128xf32>
    %908 = arith.subf %906, %907 : vector<8x128xf32>
    %909 = arith.mulf %895, %692 : vector<8x128xf32>
    %910 = arith.mulf %896, %875 : vector<8x128xf32>
    %911 = arith.addf %909, %910 : vector<8x128xf32>
    %912 = arith.mulf %895, %695 : vector<8x128xf32>
    %913 = arith.mulf %896, %873 : vector<8x128xf32>
    %914 = arith.subf %912, %913 : vector<8x128xf32>
    %915 = arith.mulf %895, %873 : vector<8x128xf32>
    %916 = arith.mulf %896, %695 : vector<8x128xf32>
    %917 = arith.addf %915, %916 : vector<8x128xf32>
    %918 = arith.mulf %895, %875 : vector<8x128xf32>
    %919 = arith.mulf %896, %692 : vector<8x128xf32>
    %920 = arith.subf %918, %919 : vector<8x128xf32>
    %921 = arith.mulf %895, %710 : vector<8x128xf32>
    %922 = arith.mulf %896, %809 : vector<8x128xf32>
    %923 = arith.addf %921, %922 : vector<8x128xf32>
    %924 = arith.mulf %895, %713 : vector<8x128xf32>
    %925 = arith.mulf %896, %806 : vector<8x128xf32>
    %926 = arith.subf %924, %925 : vector<8x128xf32>
    %927 = arith.mulf %895, %806 : vector<8x128xf32>
    %928 = arith.mulf %896, %713 : vector<8x128xf32>
    %929 = arith.addf %927, %928 : vector<8x128xf32>
    %930 = arith.mulf %895, %809 : vector<8x128xf32>
    %931 = arith.mulf %896, %710 : vector<8x128xf32>
    %932 = arith.subf %930, %931 : vector<8x128xf32>
    %933 = arith.mulf %895, %865 : vector<8x128xf32>
    %934 = arith.mulf %896, %815 : vector<8x128xf32>
    %935 = arith.addf %933, %934 : vector<8x128xf32>
    %936 = arith.mulf %895, %867 : vector<8x128xf32>
    %937 = arith.mulf %896, %812 : vector<8x128xf32>
    %938 = arith.subf %936, %937 : vector<8x128xf32>
    %939 = arith.mulf %895, %812 : vector<8x128xf32>
    %940 = arith.mulf %896, %867 : vector<8x128xf32>
    %941 = arith.addf %939, %940 : vector<8x128xf32>
    %942 = arith.mulf %895, %815 : vector<8x128xf32>
    %943 = arith.mulf %896, %865 : vector<8x128xf32>
    %944 = arith.subf %942, %943 : vector<8x128xf32>
    %945 = arith.mulf %895, %734 : vector<8x128xf32>
    %946 = arith.mulf %896, %879 : vector<8x128xf32>
    %947 = arith.addf %945, %946 : vector<8x128xf32>
    %948 = arith.mulf %895, %737 : vector<8x128xf32>
    %949 = arith.mulf %896, %877 : vector<8x128xf32>
    %950 = arith.subf %948, %949 : vector<8x128xf32>
    %951 = arith.mulf %895, %877 : vector<8x128xf32>
    %952 = arith.mulf %896, %737 : vector<8x128xf32>
    %953 = arith.addf %951, %952 : vector<8x128xf32>
    %954 = arith.mulf %895, %879 : vector<8x128xf32>
    %955 = arith.mulf %896, %734 : vector<8x128xf32>
    %956 = arith.subf %954, %955 : vector<8x128xf32>
    %957 = arith.mulf %895, %740 : vector<8x128xf32>
    %958 = arith.mulf %896, %839 : vector<8x128xf32>
    %959 = arith.addf %957, %958 : vector<8x128xf32>
    %960 = arith.mulf %895, %743 : vector<8x128xf32>
    %961 = arith.mulf %896, %836 : vector<8x128xf32>
    %962 = arith.subf %960, %961 : vector<8x128xf32>
    %963 = arith.mulf %895, %836 : vector<8x128xf32>
    %964 = arith.mulf %896, %743 : vector<8x128xf32>
    %965 = arith.addf %963, %964 : vector<8x128xf32>
    %966 = arith.mulf %895, %839 : vector<8x128xf32>
    %967 = arith.mulf %896, %740 : vector<8x128xf32>
    %968 = arith.subf %966, %967 : vector<8x128xf32>
    %969 = arith.mulf %895, %869 : vector<8x128xf32>
    %970 = arith.mulf %896, %857 : vector<8x128xf32>
    %971 = arith.addf %969, %970 : vector<8x128xf32>
    %972 = arith.mulf %895, %871 : vector<8x128xf32>
    %973 = arith.mulf %896, %854 : vector<8x128xf32>
    %974 = arith.subf %972, %973 : vector<8x128xf32>
    %975 = arith.mulf %895, %854 : vector<8x128xf32>
    %976 = arith.mulf %896, %871 : vector<8x128xf32>
    %977 = arith.addf %975, %976 : vector<8x128xf32>
    %978 = arith.mulf %895, %857 : vector<8x128xf32>
    %979 = arith.mulf %896, %869 : vector<8x128xf32>
    %980 = arith.subf %978, %979 : vector<8x128xf32>
    %981 = arith.mulf %895, %764 : vector<8x128xf32>
    %982 = arith.mulf %896, %863 : vector<8x128xf32>
    %983 = arith.addf %981, %982 : vector<8x128xf32>
    %984 = arith.mulf %895, %767 : vector<8x128xf32>
    %985 = arith.mulf %896, %860 : vector<8x128xf32>
    %986 = arith.subf %984, %985 : vector<8x128xf32>
    %987 = arith.mulf %895, %860 : vector<8x128xf32>
    %988 = arith.mulf %896, %767 : vector<8x128xf32>
    %989 = arith.addf %987, %988 : vector<8x128xf32>
    %990 = arith.mulf %895, %863 : vector<8x128xf32>
    %991 = arith.mulf %896, %764 : vector<8x128xf32>
    %992 = arith.subf %990, %991 : vector<8x128xf32>
    %c1_59 = arith.constant 1 : index
    %c0_60 = arith.constant 0 : index
    %c0_61 = arith.constant 0 : index
    %c0_62 = arith.constant 0 : index
    %993 = vector.load %arg2[%c1_59, %c0_60, %c0_61, %c0_62] : memref<4x1x8x128xf32, #tpu.memory_space<vmem>>, vector<1x1x8x128xf32>
    %994 = vector.shape_cast %993 : vector<1x1x8x128xf32> to vector<8x128xf32>
    %c1_63 = arith.constant 1 : index
    %995 = memref.load %arg1[%c1_63] : memref<36xf32, #tpu.memory_space<smem>>
    %996 = vector.broadcast %995 : f32 to vector<8x128xf32>
    %997 = arith.mulf %994, %996 : vector<8x128xf32>
    %998 = arith.mulf %997, %997 : vector<8x128xf32>
    %cst_64 = arith.constant 1.000000e+00 : f32
    %999 = vector.broadcast %cst_64 : f32 to vector<8x128xf32>
    %1000 = arith.addf %999, %998 : vector<8x128xf32>
    %1001 = math.sqrt %1000 : vector<8x128xf32>
    %cst_65 = arith.constant 1.000000e+00 : f32
    %1002 = vector.broadcast %cst_65 : f32 to vector<8x128xf32>
    %1003 = arith.addf %1002, %1001 : vector<8x128xf32>
    %1004 = arith.divf %997, %1003 : vector<8x128xf32>
    %1005 = arith.mulf %1004, %1004 : vector<8x128xf32>
    %cst_66 = arith.constant 1.000000e+00 : f32
    %1006 = vector.broadcast %cst_66 : f32 to vector<8x128xf32>
    %1007 = arith.addf %1006, %1005 : vector<8x128xf32>
    %1008 = math.rsqrt %1007 : vector<8x128xf32>
    %1009 = arith.mulf %1004, %1008 : vector<8x128xf32>
    %1010 = arith.mulf %1008, %899 : vector<8x128xf32>
    %1011 = arith.mulf %1009, %950 : vector<8x128xf32>
    %1012 = arith.addf %1010, %1011 : vector<8x128xf32>
    %1013 = arith.mulf %1008, %902 : vector<8x128xf32>
    %1014 = arith.mulf %1009, %947 : vector<8x128xf32>
    %1015 = arith.subf %1013, %1014 : vector<8x128xf32>
    %1016 = arith.mulf %1008, %947 : vector<8x128xf32>
    %1017 = arith.mulf %1009, %902 : vector<8x128xf32>
    %1018 = arith.addf %1016, %1017 : vector<8x128xf32>
    %1019 = arith.mulf %1008, %950 : vector<8x128xf32>
    %1020 = arith.mulf %1009, %899 : vector<8x128xf32>
    %1021 = arith.subf %1019, %1020 : vector<8x128xf32>
    %1022 = arith.mulf %1008, %911 : vector<8x128xf32>
    %1023 = arith.mulf %1009, %962 : vector<8x128xf32>
    %1024 = arith.addf %1022, %1023 : vector<8x128xf32>
    %1025 = arith.mulf %1008, %914 : vector<8x128xf32>
    %1026 = arith.mulf %1009, %959 : vector<8x128xf32>
    %1027 = arith.subf %1025, %1026 : vector<8x128xf32>
    %1028 = arith.mulf %1008, %959 : vector<8x128xf32>
    %1029 = arith.mulf %1009, %914 : vector<8x128xf32>
    %1030 = arith.addf %1028, %1029 : vector<8x128xf32>
    %1031 = arith.mulf %1008, %962 : vector<8x128xf32>
    %1032 = arith.mulf %1009, %911 : vector<8x128xf32>
    %1033 = arith.subf %1031, %1032 : vector<8x128xf32>
    %1034 = arith.mulf %1008, %923 : vector<8x128xf32>
    %1035 = arith.mulf %1009, %974 : vector<8x128xf32>
    %1036 = arith.addf %1034, %1035 : vector<8x128xf32>
    %1037 = arith.mulf %1008, %926 : vector<8x128xf32>
    %1038 = arith.mulf %1009, %971 : vector<8x128xf32>
    %1039 = arith.subf %1037, %1038 : vector<8x128xf32>
    %1040 = arith.mulf %1008, %971 : vector<8x128xf32>
    %1041 = arith.mulf %1009, %926 : vector<8x128xf32>
    %1042 = arith.addf %1040, %1041 : vector<8x128xf32>
    %1043 = arith.mulf %1008, %974 : vector<8x128xf32>
    %1044 = arith.mulf %1009, %923 : vector<8x128xf32>
    %1045 = arith.subf %1043, %1044 : vector<8x128xf32>
    %1046 = arith.mulf %1008, %935 : vector<8x128xf32>
    %1047 = arith.mulf %1009, %986 : vector<8x128xf32>
    %1048 = arith.addf %1046, %1047 : vector<8x128xf32>
    %1049 = arith.mulf %1008, %938 : vector<8x128xf32>
    %1050 = arith.mulf %1009, %983 : vector<8x128xf32>
    %1051 = arith.subf %1049, %1050 : vector<8x128xf32>
    %1052 = arith.mulf %1008, %983 : vector<8x128xf32>
    %1053 = arith.mulf %1009, %938 : vector<8x128xf32>
    %1054 = arith.addf %1052, %1053 : vector<8x128xf32>
    %1055 = arith.mulf %1008, %986 : vector<8x128xf32>
    %1056 = arith.mulf %1009, %935 : vector<8x128xf32>
    %1057 = arith.subf %1055, %1056 : vector<8x128xf32>
    %1058 = arith.mulf %1008, %905 : vector<8x128xf32>
    %1059 = arith.mulf %1009, %956 : vector<8x128xf32>
    %1060 = arith.addf %1058, %1059 : vector<8x128xf32>
    %1061 = arith.mulf %1008, %908 : vector<8x128xf32>
    %1062 = arith.mulf %1009, %953 : vector<8x128xf32>
    %1063 = arith.subf %1061, %1062 : vector<8x128xf32>
    %1064 = arith.mulf %1008, %953 : vector<8x128xf32>
    %1065 = arith.mulf %1009, %908 : vector<8x128xf32>
    %1066 = arith.addf %1064, %1065 : vector<8x128xf32>
    %1067 = arith.mulf %1008, %956 : vector<8x128xf32>
    %1068 = arith.mulf %1009, %905 : vector<8x128xf32>
    %1069 = arith.subf %1067, %1068 : vector<8x128xf32>
    %1070 = arith.mulf %1008, %917 : vector<8x128xf32>
    %1071 = arith.mulf %1009, %968 : vector<8x128xf32>
    %1072 = arith.addf %1070, %1071 : vector<8x128xf32>
    %1073 = arith.mulf %1008, %920 : vector<8x128xf32>
    %1074 = arith.mulf %1009, %965 : vector<8x128xf32>
    %1075 = arith.subf %1073, %1074 : vector<8x128xf32>
    %1076 = arith.mulf %1008, %965 : vector<8x128xf32>
    %1077 = arith.mulf %1009, %920 : vector<8x128xf32>
    %1078 = arith.addf %1076, %1077 : vector<8x128xf32>
    %1079 = arith.mulf %1008, %968 : vector<8x128xf32>
    %1080 = arith.mulf %1009, %917 : vector<8x128xf32>
    %1081 = arith.subf %1079, %1080 : vector<8x128xf32>
    %1082 = arith.mulf %1008, %929 : vector<8x128xf32>
    %1083 = arith.mulf %1009, %980 : vector<8x128xf32>
    %1084 = arith.addf %1082, %1083 : vector<8x128xf32>
    %1085 = arith.mulf %1008, %932 : vector<8x128xf32>
    %1086 = arith.mulf %1009, %977 : vector<8x128xf32>
    %1087 = arith.subf %1085, %1086 : vector<8x128xf32>
    %1088 = arith.mulf %1008, %977 : vector<8x128xf32>
    %1089 = arith.mulf %1009, %932 : vector<8x128xf32>
    %1090 = arith.addf %1088, %1089 : vector<8x128xf32>
    %1091 = arith.mulf %1008, %980 : vector<8x128xf32>
    %1092 = arith.mulf %1009, %929 : vector<8x128xf32>
    %1093 = arith.subf %1091, %1092 : vector<8x128xf32>
    %1094 = arith.mulf %1008, %941 : vector<8x128xf32>
    %1095 = arith.mulf %1009, %992 : vector<8x128xf32>
    %1096 = arith.addf %1094, %1095 : vector<8x128xf32>
    %1097 = arith.mulf %1008, %944 : vector<8x128xf32>
    %1098 = arith.mulf %1009, %989 : vector<8x128xf32>
    %1099 = arith.subf %1097, %1098 : vector<8x128xf32>
    %1100 = arith.mulf %1008, %989 : vector<8x128xf32>
    %1101 = arith.mulf %1009, %944 : vector<8x128xf32>
    %1102 = arith.addf %1100, %1101 : vector<8x128xf32>
    %1103 = arith.mulf %1008, %992 : vector<8x128xf32>
    %1104 = arith.mulf %1009, %941 : vector<8x128xf32>
    %1105 = arith.subf %1103, %1104 : vector<8x128xf32>
    %c20 = arith.constant 20 : index
    %1106 = memref.load %arg1[%c20] : memref<36xf32, #tpu.memory_space<smem>>
    %1107 = vector.broadcast %1106 : f32 to vector<8x128xf32>
    %c21 = arith.constant 21 : index
    %1108 = memref.load %arg1[%c21] : memref<36xf32, #tpu.memory_space<smem>>
    %1109 = vector.broadcast %1108 : f32 to vector<8x128xf32>
    %1110 = arith.mulf %1107, %1012 : vector<8x128xf32>
    %1111 = arith.mulf %1109, %1060 : vector<8x128xf32>
    %1112 = arith.subf %1110, %1111 : vector<8x128xf32>
    %1113 = arith.mulf %1107, %1015 : vector<8x128xf32>
    %1114 = arith.mulf %1109, %1063 : vector<8x128xf32>
    %1115 = arith.subf %1113, %1114 : vector<8x128xf32>
    %1116 = arith.mulf %1109, %1012 : vector<8x128xf32>
    %1117 = arith.mulf %1107, %1060 : vector<8x128xf32>
    %1118 = arith.addf %1116, %1117 : vector<8x128xf32>
    %1119 = arith.mulf %1109, %1015 : vector<8x128xf32>
    %1120 = arith.mulf %1107, %1063 : vector<8x128xf32>
    %1121 = arith.addf %1119, %1120 : vector<8x128xf32>
    %1122 = arith.mulf %1107, %1024 : vector<8x128xf32>
    %1123 = arith.mulf %1109, %1072 : vector<8x128xf32>
    %1124 = arith.subf %1122, %1123 : vector<8x128xf32>
    %1125 = arith.mulf %1107, %1027 : vector<8x128xf32>
    %1126 = arith.mulf %1109, %1075 : vector<8x128xf32>
    %1127 = arith.subf %1125, %1126 : vector<8x128xf32>
    %1128 = arith.mulf %1109, %1024 : vector<8x128xf32>
    %1129 = arith.mulf %1107, %1072 : vector<8x128xf32>
    %1130 = arith.addf %1128, %1129 : vector<8x128xf32>
    %1131 = arith.mulf %1109, %1027 : vector<8x128xf32>
    %1132 = arith.mulf %1107, %1075 : vector<8x128xf32>
    %1133 = arith.addf %1131, %1132 : vector<8x128xf32>
    %1134 = arith.mulf %1107, %1036 : vector<8x128xf32>
    %1135 = arith.mulf %1109, %1084 : vector<8x128xf32>
    %1136 = arith.subf %1134, %1135 : vector<8x128xf32>
    %1137 = arith.mulf %1107, %1039 : vector<8x128xf32>
    %1138 = arith.mulf %1109, %1087 : vector<8x128xf32>
    %1139 = arith.subf %1137, %1138 : vector<8x128xf32>
    %1140 = arith.mulf %1109, %1036 : vector<8x128xf32>
    %1141 = arith.mulf %1107, %1084 : vector<8x128xf32>
    %1142 = arith.addf %1140, %1141 : vector<8x128xf32>
    %1143 = arith.mulf %1109, %1039 : vector<8x128xf32>
    %1144 = arith.mulf %1107, %1087 : vector<8x128xf32>
    %1145 = arith.addf %1143, %1144 : vector<8x128xf32>
    %1146 = arith.mulf %1107, %1048 : vector<8x128xf32>
    %1147 = arith.mulf %1109, %1096 : vector<8x128xf32>
    %1148 = arith.subf %1146, %1147 : vector<8x128xf32>
    %1149 = arith.mulf %1107, %1051 : vector<8x128xf32>
    %1150 = arith.mulf %1109, %1099 : vector<8x128xf32>
    %1151 = arith.subf %1149, %1150 : vector<8x128xf32>
    %1152 = arith.mulf %1109, %1048 : vector<8x128xf32>
    %1153 = arith.mulf %1107, %1096 : vector<8x128xf32>
    %1154 = arith.addf %1152, %1153 : vector<8x128xf32>
    %1155 = arith.mulf %1109, %1051 : vector<8x128xf32>
    %1156 = arith.mulf %1107, %1099 : vector<8x128xf32>
    %1157 = arith.addf %1155, %1156 : vector<8x128xf32>
    %1158 = arith.mulf %1107, %1018 : vector<8x128xf32>
    %1159 = arith.mulf %1109, %1066 : vector<8x128xf32>
    %1160 = arith.subf %1158, %1159 : vector<8x128xf32>
    %1161 = arith.mulf %1107, %1021 : vector<8x128xf32>
    %1162 = arith.mulf %1109, %1069 : vector<8x128xf32>
    %1163 = arith.subf %1161, %1162 : vector<8x128xf32>
    %1164 = arith.mulf %1109, %1018 : vector<8x128xf32>
    %1165 = arith.mulf %1107, %1066 : vector<8x128xf32>
    %1166 = arith.addf %1164, %1165 : vector<8x128xf32>
    %1167 = arith.mulf %1109, %1021 : vector<8x128xf32>
    %1168 = arith.mulf %1107, %1069 : vector<8x128xf32>
    %1169 = arith.addf %1167, %1168 : vector<8x128xf32>
    %1170 = arith.mulf %1107, %1030 : vector<8x128xf32>
    %1171 = arith.mulf %1109, %1078 : vector<8x128xf32>
    %1172 = arith.subf %1170, %1171 : vector<8x128xf32>
    %1173 = arith.mulf %1107, %1033 : vector<8x128xf32>
    %1174 = arith.mulf %1109, %1081 : vector<8x128xf32>
    %1175 = arith.subf %1173, %1174 : vector<8x128xf32>
    %1176 = arith.mulf %1109, %1030 : vector<8x128xf32>
    %1177 = arith.mulf %1107, %1078 : vector<8x128xf32>
    %1178 = arith.addf %1176, %1177 : vector<8x128xf32>
    %1179 = arith.mulf %1109, %1033 : vector<8x128xf32>
    %1180 = arith.mulf %1107, %1081 : vector<8x128xf32>
    %1181 = arith.addf %1179, %1180 : vector<8x128xf32>
    %1182 = arith.mulf %1107, %1042 : vector<8x128xf32>
    %1183 = arith.mulf %1109, %1090 : vector<8x128xf32>
    %1184 = arith.subf %1182, %1183 : vector<8x128xf32>
    %1185 = arith.mulf %1107, %1045 : vector<8x128xf32>
    %1186 = arith.mulf %1109, %1093 : vector<8x128xf32>
    %1187 = arith.subf %1185, %1186 : vector<8x128xf32>
    %1188 = arith.mulf %1109, %1042 : vector<8x128xf32>
    %1189 = arith.mulf %1107, %1090 : vector<8x128xf32>
    %1190 = arith.addf %1188, %1189 : vector<8x128xf32>
    %1191 = arith.mulf %1109, %1045 : vector<8x128xf32>
    %1192 = arith.mulf %1107, %1093 : vector<8x128xf32>
    %1193 = arith.addf %1191, %1192 : vector<8x128xf32>
    %1194 = arith.mulf %1107, %1054 : vector<8x128xf32>
    %1195 = arith.mulf %1109, %1102 : vector<8x128xf32>
    %1196 = arith.subf %1194, %1195 : vector<8x128xf32>
    %1197 = arith.mulf %1107, %1057 : vector<8x128xf32>
    %1198 = arith.mulf %1109, %1105 : vector<8x128xf32>
    %1199 = arith.subf %1197, %1198 : vector<8x128xf32>
    %1200 = arith.mulf %1109, %1054 : vector<8x128xf32>
    %1201 = arith.mulf %1107, %1102 : vector<8x128xf32>
    %1202 = arith.addf %1200, %1201 : vector<8x128xf32>
    %1203 = arith.mulf %1109, %1057 : vector<8x128xf32>
    %1204 = arith.mulf %1107, %1105 : vector<8x128xf32>
    %1205 = arith.addf %1203, %1204 : vector<8x128xf32>
    %c24 = arith.constant 24 : index
    %1206 = memref.load %arg1[%c24] : memref<36xf32, #tpu.memory_space<smem>>
    %1207 = vector.broadcast %1206 : f32 to vector<8x128xf32>
    %c25 = arith.constant 25 : index
    %1208 = memref.load %arg1[%c25] : memref<36xf32, #tpu.memory_space<smem>>
    %1209 = vector.broadcast %1208 : f32 to vector<8x128xf32>
    %1210 = arith.mulf %1207, %1112 : vector<8x128xf32>
    %1211 = arith.mulf %1209, %1160 : vector<8x128xf32>
    %1212 = arith.subf %1210, %1211 : vector<8x128xf32>
    %1213 = arith.mulf %1207, %1115 : vector<8x128xf32>
    %1214 = arith.mulf %1209, %1163 : vector<8x128xf32>
    %1215 = arith.subf %1213, %1214 : vector<8x128xf32>
    %1216 = arith.mulf %1209, %1112 : vector<8x128xf32>
    %1217 = arith.mulf %1207, %1160 : vector<8x128xf32>
    %1218 = arith.addf %1216, %1217 : vector<8x128xf32>
    %1219 = arith.mulf %1209, %1115 : vector<8x128xf32>
    %1220 = arith.mulf %1207, %1163 : vector<8x128xf32>
    %1221 = arith.addf %1219, %1220 : vector<8x128xf32>
    %1222 = arith.mulf %1207, %1124 : vector<8x128xf32>
    %1223 = arith.mulf %1209, %1172 : vector<8x128xf32>
    %1224 = arith.subf %1222, %1223 : vector<8x128xf32>
    %1225 = arith.mulf %1207, %1127 : vector<8x128xf32>
    %1226 = arith.mulf %1209, %1175 : vector<8x128xf32>
    %1227 = arith.subf %1225, %1226 : vector<8x128xf32>
    %1228 = arith.mulf %1209, %1124 : vector<8x128xf32>
    %1229 = arith.mulf %1207, %1172 : vector<8x128xf32>
    %1230 = arith.addf %1228, %1229 : vector<8x128xf32>
    %1231 = arith.mulf %1209, %1127 : vector<8x128xf32>
    %1232 = arith.mulf %1207, %1175 : vector<8x128xf32>
    %1233 = arith.addf %1231, %1232 : vector<8x128xf32>
    %1234 = arith.mulf %1207, %1136 : vector<8x128xf32>
    %1235 = arith.mulf %1209, %1184 : vector<8x128xf32>
    %1236 = arith.subf %1234, %1235 : vector<8x128xf32>
    %1237 = arith.mulf %1207, %1139 : vector<8x128xf32>
    %1238 = arith.mulf %1209, %1187 : vector<8x128xf32>
    %1239 = arith.subf %1237, %1238 : vector<8x128xf32>
    %1240 = arith.mulf %1209, %1136 : vector<8x128xf32>
    %1241 = arith.mulf %1207, %1184 : vector<8x128xf32>
    %1242 = arith.addf %1240, %1241 : vector<8x128xf32>
    %1243 = arith.mulf %1209, %1139 : vector<8x128xf32>
    %1244 = arith.mulf %1207, %1187 : vector<8x128xf32>
    %1245 = arith.addf %1243, %1244 : vector<8x128xf32>
    %1246 = arith.mulf %1207, %1148 : vector<8x128xf32>
    %1247 = arith.mulf %1209, %1196 : vector<8x128xf32>
    %1248 = arith.subf %1246, %1247 : vector<8x128xf32>
    %1249 = arith.mulf %1207, %1151 : vector<8x128xf32>
    %1250 = arith.mulf %1209, %1199 : vector<8x128xf32>
    %1251 = arith.subf %1249, %1250 : vector<8x128xf32>
    %1252 = arith.mulf %1209, %1148 : vector<8x128xf32>
    %1253 = arith.mulf %1207, %1196 : vector<8x128xf32>
    %1254 = arith.addf %1252, %1253 : vector<8x128xf32>
    %1255 = arith.mulf %1209, %1151 : vector<8x128xf32>
    %1256 = arith.mulf %1207, %1199 : vector<8x128xf32>
    %1257 = arith.addf %1255, %1256 : vector<8x128xf32>
    %1258 = arith.mulf %1207, %1118 : vector<8x128xf32>
    %1259 = arith.mulf %1209, %1166 : vector<8x128xf32>
    %1260 = arith.subf %1258, %1259 : vector<8x128xf32>
    %1261 = arith.mulf %1207, %1121 : vector<8x128xf32>
    %1262 = arith.mulf %1209, %1169 : vector<8x128xf32>
    %1263 = arith.subf %1261, %1262 : vector<8x128xf32>
    %1264 = arith.mulf %1209, %1118 : vector<8x128xf32>
    %1265 = arith.mulf %1207, %1166 : vector<8x128xf32>
    %1266 = arith.addf %1264, %1265 : vector<8x128xf32>
    %1267 = arith.mulf %1209, %1121 : vector<8x128xf32>
    %1268 = arith.mulf %1207, %1169 : vector<8x128xf32>
    %1269 = arith.addf %1267, %1268 : vector<8x128xf32>
    %1270 = arith.mulf %1207, %1130 : vector<8x128xf32>
    %1271 = arith.mulf %1209, %1178 : vector<8x128xf32>
    %1272 = arith.subf %1270, %1271 : vector<8x128xf32>
    %1273 = arith.mulf %1207, %1133 : vector<8x128xf32>
    %1274 = arith.mulf %1209, %1181 : vector<8x128xf32>
    %1275 = arith.subf %1273, %1274 : vector<8x128xf32>
    %1276 = arith.mulf %1209, %1130 : vector<8x128xf32>
    %1277 = arith.mulf %1207, %1178 : vector<8x128xf32>
    %1278 = arith.addf %1276, %1277 : vector<8x128xf32>
    %1279 = arith.mulf %1209, %1133 : vector<8x128xf32>
    %1280 = arith.mulf %1207, %1181 : vector<8x128xf32>
    %1281 = arith.addf %1279, %1280 : vector<8x128xf32>
    %1282 = arith.mulf %1207, %1142 : vector<8x128xf32>
    %1283 = arith.mulf %1209, %1190 : vector<8x128xf32>
    %1284 = arith.subf %1282, %1283 : vector<8x128xf32>
    %1285 = arith.mulf %1207, %1145 : vector<8x128xf32>
    %1286 = arith.mulf %1209, %1193 : vector<8x128xf32>
    %1287 = arith.subf %1285, %1286 : vector<8x128xf32>
    %1288 = arith.mulf %1209, %1142 : vector<8x128xf32>
    %1289 = arith.mulf %1207, %1190 : vector<8x128xf32>
    %1290 = arith.addf %1288, %1289 : vector<8x128xf32>
    %1291 = arith.mulf %1209, %1145 : vector<8x128xf32>
    %1292 = arith.mulf %1207, %1193 : vector<8x128xf32>
    %1293 = arith.addf %1291, %1292 : vector<8x128xf32>
    %1294 = arith.mulf %1207, %1154 : vector<8x128xf32>
    %1295 = arith.mulf %1209, %1202 : vector<8x128xf32>
    %1296 = arith.subf %1294, %1295 : vector<8x128xf32>
    %1297 = arith.mulf %1207, %1157 : vector<8x128xf32>
    %1298 = arith.mulf %1209, %1205 : vector<8x128xf32>
    %1299 = arith.subf %1297, %1298 : vector<8x128xf32>
    %1300 = arith.mulf %1209, %1154 : vector<8x128xf32>
    %1301 = arith.mulf %1207, %1202 : vector<8x128xf32>
    %1302 = arith.addf %1300, %1301 : vector<8x128xf32>
    %1303 = arith.mulf %1209, %1157 : vector<8x128xf32>
    %1304 = arith.mulf %1207, %1205 : vector<8x128xf32>
    %1305 = arith.addf %1303, %1304 : vector<8x128xf32>
    %1306 = arith.mulf %1212, %1212 : vector<8x128xf32>
    %1307 = arith.mulf %1215, %1215 : vector<8x128xf32>
    %1308 = arith.addf %1306, %1307 : vector<8x128xf32>
    %1309 = arith.mulf %1224, %1224 : vector<8x128xf32>
    %1310 = arith.mulf %1227, %1227 : vector<8x128xf32>
    %1311 = arith.addf %1309, %1310 : vector<8x128xf32>
    %1312 = arith.addf %1308, %1311 : vector<8x128xf32>
    %1313 = arith.mulf %1236, %1236 : vector<8x128xf32>
    %1314 = arith.mulf %1239, %1239 : vector<8x128xf32>
    %1315 = arith.addf %1313, %1314 : vector<8x128xf32>
    %1316 = arith.addf %1312, %1315 : vector<8x128xf32>
    %1317 = arith.mulf %1248, %1248 : vector<8x128xf32>
    %1318 = arith.mulf %1251, %1251 : vector<8x128xf32>
    %1319 = arith.addf %1317, %1318 : vector<8x128xf32>
    %1320 = arith.addf %1316, %1319 : vector<8x128xf32>
    %cst_67 = arith.constant 1.000000e+00 : f32
    %1321 = vector.broadcast %cst_67 : f32 to vector<8x128xf32>
    %1322 = arith.addf %1321, %1320 : vector<8x128xf32>
    %cst_68 = arith.constant 4.500000e+01 : f32
    %1323 = vector.broadcast %cst_68 : f32 to vector<8x128xf32>
    %1324 = arith.mulf %1323, %1322 : vector<8x128xf32>
    %c0_69 = arith.constant 0 : index
    %c0_70 = arith.constant 0 : index
    %c0_71 = arith.constant 0 : index
    %c0_72 = arith.constant 0 : index
    %1325 = vector.load %arg3[%c0_69, %c0_70, %c0_71, %c0_72] : memref<4x1x8x128xf32, #tpu.memory_space<vmem>>, vector<1x1x8x128xf32>
    %1326 = vector.shape_cast %1325 : vector<1x1x8x128xf32> to vector<8x128xf32>
    %1327 = vector.shape_cast %1324 : vector<8x128xf32> to vector<1x1x8x128xf32>
    tpu.vector_store %arg3[%c0_69, %c0_70, %c0_71, %c0_72], %1327 {strides = array<i32>} : memref<4x1x8x128xf32, #tpu.memory_space<vmem>>, vector<1x1x8x128xf32>,
    %1328 = arith.mulf %1218, %1218 : vector<8x128xf32>
    %1329 = arith.mulf %1221, %1221 : vector<8x128xf32>
    %1330 = arith.addf %1328, %1329 : vector<8x128xf32>
    %1331 = arith.mulf %1230, %1230 : vector<8x128xf32>
    %1332 = arith.mulf %1233, %1233 : vector<8x128xf32>
    %1333 = arith.addf %1331, %1332 : vector<8x128xf32>
    %1334 = arith.addf %1330, %1333 : vector<8x128xf32>
    %1335 = arith.mulf %1242, %1242 : vector<8x128xf32>
    %1336 = arith.mulf %1245, %1245 : vector<8x128xf32>
    %1337 = arith.addf %1335, %1336 : vector<8x128xf32>
    %1338 = arith.addf %1334, %1337 : vector<8x128xf32>
    %1339 = arith.mulf %1254, %1254 : vector<8x128xf32>
    %1340 = arith.mulf %1257, %1257 : vector<8x128xf32>
    %1341 = arith.addf %1339, %1340 : vector<8x128xf32>
    %1342 = arith.addf %1338, %1341 : vector<8x128xf32>
    %cst_73 = arith.constant 1.000000e+00 : f32
    %1343 = vector.broadcast %cst_73 : f32 to vector<8x128xf32>
    %1344 = arith.addf %1343, %1342 : vector<8x128xf32>
    %cst_74 = arith.constant 4.500000e+01 : f32
    %1345 = vector.broadcast %cst_74 : f32 to vector<8x128xf32>
    %1346 = arith.mulf %1345, %1344 : vector<8x128xf32>
    %c1_75 = arith.constant 1 : index
    %c0_76 = arith.constant 0 : index
    %c0_77 = arith.constant 0 : index
    %c0_78 = arith.constant 0 : index
    %1347 = vector.load %arg3[%c1_75, %c0_76, %c0_77, %c0_78] : memref<4x1x8x128xf32, #tpu.memory_space<vmem>>, vector<1x1x8x128xf32>
    %1348 = vector.shape_cast %1347 : vector<1x1x8x128xf32> to vector<8x128xf32>
    %1349 = vector.shape_cast %1346 : vector<8x128xf32> to vector<1x1x8x128xf32>
    tpu.vector_store %arg3[%c1_75, %c0_76, %c0_77, %c0_78], %1349 {strides = array<i32>} : memref<4x1x8x128xf32, #tpu.memory_space<vmem>>, vector<1x1x8x128xf32>,
    %1350 = arith.mulf %1260, %1260 : vector<8x128xf32>
    %1351 = arith.mulf %1263, %1263 : vector<8x128xf32>
    %1352 = arith.addf %1350, %1351 : vector<8x128xf32>
    %1353 = arith.mulf %1272, %1272 : vector<8x128xf32>
    %1354 = arith.mulf %1275, %1275 : vector<8x128xf32>
    %1355 = arith.addf %1353, %1354 : vector<8x128xf32>
    %1356 = arith.addf %1352, %1355 : vector<8x128xf32>
    %1357 = arith.mulf %1284, %1284 : vector<8x128xf32>
    %1358 = arith.mulf %1287, %1287 : vector<8x128xf32>
    %1359 = arith.addf %1357, %1358 : vector<8x128xf32>
    %1360 = arith.addf %1356, %1359 : vector<8x128xf32>
    %1361 = arith.mulf %1296, %1296 : vector<8x128xf32>
    %1362 = arith.mulf %1299, %1299 : vector<8x128xf32>
    %1363 = arith.addf %1361, %1362 : vector<8x128xf32>
    %1364 = arith.addf %1360, %1363 : vector<8x128xf32>
    %cst_79 = arith.constant 1.000000e+00 : f32
    %1365 = vector.broadcast %cst_79 : f32 to vector<8x128xf32>
    %1366 = arith.addf %1365, %1364 : vector<8x128xf32>
    %cst_80 = arith.constant 4.500000e+01 : f32
    %1367 = vector.broadcast %cst_80 : f32 to vector<8x128xf32>
    %1368 = arith.mulf %1367, %1366 : vector<8x128xf32>
    %c2_81 = arith.constant 2 : index
    %c0_82 = arith.constant 0 : index
    %c0_83 = arith.constant 0 : index
    %c0_84 = arith.constant 0 : index
    %1369 = vector.load %arg3[%c2_81, %c0_82, %c0_83, %c0_84] : memref<4x1x8x128xf32, #tpu.memory_space<vmem>>, vector<1x1x8x128xf32>
    %1370 = vector.shape_cast %1369 : vector<1x1x8x128xf32> to vector<8x128xf32>
    %1371 = vector.shape_cast %1368 : vector<8x128xf32> to vector<1x1x8x128xf32>
    tpu.vector_store %arg3[%c2_81, %c0_82, %c0_83, %c0_84], %1371 {strides = array<i32>} : memref<4x1x8x128xf32, #tpu.memory_space<vmem>>, vector<1x1x8x128xf32>,
    %1372 = arith.mulf %1266, %1266 : vector<8x128xf32>
    %1373 = arith.mulf %1269, %1269 : vector<8x128xf32>
    %1374 = arith.addf %1372, %1373 : vector<8x128xf32>
    %1375 = arith.mulf %1278, %1278 : vector<8x128xf32>
    %1376 = arith.mulf %1281, %1281 : vector<8x128xf32>
    %1377 = arith.addf %1375, %1376 : vector<8x128xf32>
    %1378 = arith.addf %1374, %1377 : vector<8x128xf32>
    %1379 = arith.mulf %1290, %1290 : vector<8x128xf32>
    %1380 = arith.mulf %1293, %1293 : vector<8x128xf32>
    %1381 = arith.addf %1379, %1380 : vector<8x128xf32>
    %1382 = arith.addf %1378, %1381 : vector<8x128xf32>
    %1383 = arith.mulf %1302, %1302 : vector<8x128xf32>
    %1384 = arith.mulf %1305, %1305 : vector<8x128xf32>
    %1385 = arith.addf %1383, %1384 : vector<8x128xf32>
    %1386 = arith.addf %1382, %1385 : vector<8x128xf32>
    %cst_85 = arith.constant 1.000000e+00 : f32
    %1387 = vector.broadcast %cst_85 : f32 to vector<8x128xf32>
    %1388 = arith.addf %1387, %1386 : vector<8x128xf32>
    %cst_86 = arith.constant 4.500000e+01 : f32
    %1389 = vector.broadcast %cst_86 : f32 to vector<8x128xf32>
    %1390 = arith.mulf %1389, %1388 : vector<8x128xf32>
    %c3_87 = arith.constant 3 : index
    %c0_88 = arith.constant 0 : index
    %c0_89 = arith.constant 0 : index
    %c0_90 = arith.constant 0 : index
    %1391 = vector.load %arg3[%c3_87, %c0_88, %c0_89, %c0_90] : memref<4x1x8x128xf32, #tpu.memory_space<vmem>>, vector<1x1x8x128xf32>
    %1392 = vector.shape_cast %1391 : vector<1x1x8x128xf32> to vector<8x128xf32>
    %1393 = vector.shape_cast %1390 : vector<8x128xf32> to vector<1x1x8x128xf32>
    tpu.vector_store %arg3[%c3_87, %c0_88, %c0_89, %c0_90], %1393 {strides = array<i32>} : memref<4x1x8x128xf32, #tpu.memory_space<vmem>>, vector<1x1x8x128xf32>,
    return
  }
  func.func @transform_0(%arg0: i32) -> i32 {
    %c0_i32 = arith.constant 0 : i32
    %c0_i32_0 = arith.constant 0 : i32
    return %c0_i32 : i32
  }
  func.func @transform_1(%arg0: i32) -> (i32, i32, i32, i32) {
    %c0_i32 = arith.constant 0 : i32
    %c0_i32_0 = arith.constant 0 : i32
    %c0_i32_1 = arith.constant 0 : i32
    %c0_i32_2 = arith.constant 0 : i32
    return %c0_i32, %arg0, %c0_i32_0, %c0_i32_1 : i32, i32, i32, i32
  }
  func.func @transform_2(%arg0: i32) -> (i32, i32, i32, i32) {
    %c0_i32 = arith.constant 0 : i32
    %c0_i32_0 = arith.constant 0 : i32
    %c0_i32_1 = arith.constant 0 : i32
    %c0_i32_2 = arith.constant 0 : i32
    return %c0_i32, %arg0, %c0_i32_0, %c0_i32_1 : i32, i32, i32, i32
  }
}

</mosaic_0001>

<bundles_post_ra>
// kernel: tpu_custom_call.1
= control target key start
LH: loop header
LB: loop body
LE: loop exit
PB: predicated region body
PF: predicated region fallthrough
CT: control target
= control target key end

     0   :  { %7 = vsyncpa [#allocation5], 0  ;;  %s3506_s0 = inlined_call_operand.hbm [shape: f32[36], index: 0, kind: input, shape index: {}]   ;;  %s3507_s1 = inlined_call_operand.hbm [shape: f32[4,1,8,128], index: 1, kind: input, shape index: {}]   ;;  %s3508_s2 = inlined_call_operand.hbm [shape: f32[4,1,8,128], index: 2, kind: output, shape index: {}]  }
   0x1   :  { %8 = vsyncpa [#allocation3], 0 }
   0x2   :  { %9 = vsyncpa [#allocation4], 0  ;;  %s15_s11 = sshll.u32 %s3506_s0, 4  ;;  %s23_s14 = sshll.u32 %s3507_s1, 4  ;;  %s16_s11 = int_to_ptr.hbm [resolvable:$true] %s15_s11  ;;  %s24_s14 = int_to_ptr.hbm [resolvable:$true] %s23_s14 }
   0x3   :  { %s1625_s15 = smov [#allocation2]   ;;  %s1626_s16 = smov [#allocation6]  }
   0x4   :  { %18 = dma.hbm_to_smem %s16_s11, 16, %s1625_s15, [#allocation5]  }
   0x5   :  { %s25_s17 = sshll.u32 %s1626_s16, 4  ;;  %s1627_s18 = smov 128   ;;  %s26_s17 = int_to_ptr.vmem [resolvable:$true] %s25_s17 }
   0x6   :  { %s1628_s19 = smov 8  }
   0x7   :  { %31 = dma.hbm_to_vmem [thread:$0]  %s24_s14, 512, %s26_s17, [#allocation3], %s1627_s18, %s1627_s18, %s1628_s19  }
   0x8   :  { %1619 = dma.done.wait [#allocation5], 16  }
   0x9   :  { %1620 = vsyncadd [#allocation5], 4294967280 }
   0xa   :  { %1621 = dma.done.wait [#allocation3], 512  }
   0xb   :  { %1622 = vsyncadd [#allocation3], 4294966784 }
   0xc   :  { %40 = sfence }
   0xd   :  { %s42_s0 = sld [smem:[#allocation2]]  ;;  %v41_v0 = vld [vmem:[#allocation6] sm:$0xff]  ;;  %v90_v1 = vld [vmem:[#allocation6 + $0x8] sm:$0xff]  ;;  %v143_v3 = vld [vmem:[#allocation6 + $0x10] sm:$0xff]  ;;  %s1629_s14 = smov [#allocation7]  }
   0xe   :  { %s1507_s20 = sld [smem:[#allocation2 + $0x1]]  ;;  %v201_v6 = vld [vmem:[#allocation6 + $0x18] sm:$0xff]  ;;  %s1491_s15 = sshll.u32 %s1629_s14, 4  ;;  %s1492_s15 = int_to_ptr.vmem [resolvable:$true] %s1491_s15 }
   0xf   :  { %s1508_s1 = sld [smem:[#allocation2 + $0x2]] }
  0x10   :  { %s1509_s21 = sld [smem:[#allocation2 + $0x3]] }
  0x11   :  { %s1716_s22 = sld [smem:[#allocation2 + $0x4]] }
  0x12   :  { %s1718_s23 = sld [smem:[#allocation2 + $0x5]] }
  0x13   :  { %v43_v2 = vstv %s42_s0  ;;  %s1720_s24 = sld [smem:[#allocation2 + $0x6]]  ;;  %s1493_s0 = sshll.u32 %s3508_s2, 4  ;;  %s1494_s0 = int_to_ptr.hbm [resolvable:$true] %s1493_s0 }
  0x14   :  { %v1654_v4 = vmul.f32 %v43_v2, %v41_v0  ;;  %v92_v5 = vstv %s1507_s20  ;;  %s1513_s25 = sld [smem:[#allocation2 + $0x7]] }
  0x15   :  { %v1656_v7 = vmul.f32 %v92_v5, %v90_v1  ;;  %v145_v8 = vstv %s1508_s1  ;;  %s1889_s26 = sld [smem:[#allocation2 + $0x8]] }
  0x16   :  { %v45_v9 = vmul.f32 %v1654_v4, %v1654_v4  ;;  %v1660_v10 = vmul.f32 %v145_v8, %v143_v3  ;;  %v203_v11 = vstv %s1509_s21  ;;  %s1896_s27 = sld [smem:[#allocation2 + $0x9]] }
  0x17   :  { %v94_v12 = vmul.f32 %v1656_v7, %v1656_v7  ;;  %v1664_v13 = vmul.f32 %v203_v11, %v201_v6  ;;  %s1904_s28 = sld [smem:[#allocation2 + $0xa]] }
  0x18   :  { %v46_v14 = vadd.f32 1.0, %v45_v9  ;;  %v147_v15 = vmul.f32 %v1660_v10, %v1660_v10  ;;  %s1913_s29 = sld [smem:[#allocation2 + $0xb]] }
  0x19   :  { %v95_v16 = vadd.f32 1.0, %v94_v12  ;;  %v205_v17 = vmul.f32 %v1664_v13, %v1664_v13  ;;  %s2167_s30 = sld [smem:[#allocation2 + $0xc]] }
  0x1a   :  { %1535 = vrsqrt.f32 %v46_v14  ;;  %v148_v18 = vadd.f32 1.0, %v147_v15  ;;  %vm54_vm0 = vcmp.eq.f32.partialorder %v46_v14, inf  ;;  %vm56_vm1 = vcmp.eq.f32.partialorder %v46_v14, 0.0  ;;  %s2172_s3 = sld [smem:[#allocation2 + $0xd]] }
  0x1b   :  { %1537 = vrsqrt.f32 %v95_v16  ;;  %v206_v19 = vadd.f32 1.0, %v205_v17  ;;  %v57_v38 = vand.u32 2147483648, %v46_v14  ;;  %vm103_vm2 = vcmp.eq.f32.partialorder %v95_v16, inf  ;;  %s2182_s4 = sld [smem:[#allocation2 + $0xe]] }
  0x1c   :  { %1539 = vrsqrt.f32 %v148_v18  ;;  %v106_v42 = vand.u32 2147483648, %v95_v16  ;;  %vm105_vm3 = vcmp.eq.f32.partialorder %v95_v16, 0.0  ;;  %vm156_vm4 = vcmp.eq.f32.partialorder %v148_v18, inf  ;;  %s2189_s5 = sld [smem:[#allocation2 + $0xf]] }
  0x1d   :  { %1541 = vrsqrt.f32 %v206_v19  ;;  %v159_v54 = vand.u32 2147483648, %v148_v18  ;;  %vm214_vm5 = vcmp.eq.f32.partialorder %v206_v19, inf  ;;  %v217_v57 = vand.u32 2147483648, %v206_v19  ;;  %s2448_s6 = sld [smem:[#allocation2 + $0x10]] }
  0x1e   :  { %vm158_vm6 = vcmp.eq.f32.partialorder %v148_v18, 0.0  ;;  %vm216_vm7 = vcmp.eq.f32.partialorder %v206_v19, 0.0  ;;  %s2458_s7 = sld [smem:[#allocation2 + $0x11]] }
  0x1f   :  { %s2462_s8 = sld [smem:[#allocation2 + $0x12]] }
  0x20   :  { %v1536_v20 = vpop.eup %1535  ;;  %s2470_s9 = sld [smem:[#allocation2 + $0x13]] }
  0x21   :  { %v1538_v21 = vpop.eup %1537  ;;  %v48_v22 = vmul.f32 %v1536_v20, %v46_v14  ;;  %s3064_s10 = sld [smem:[#allocation2 + $0x14]] }
  0x22   :  { %v97_v23 = vmul.f32 %v1538_v21, %v95_v16  ;;  %v1540_v25 = vpop.eup %1539  ;;  %s3072_s11 = sld [smem:[#allocation2 + $0x15]] }
  0x23   :  { %v49_v24 = vmul.f32 %v1536_v20, %v48_v22  ;;  %v1542_v27 = vpop.eup %1541  ;;  %v150_v29 = vmul.f32 %v1540_v25, %v148_v18  ;;  %s3082_s12 = sld [smem:[#allocation2 + $0x18]] }
  0x24   :  { %v98_v26 = vmul.f32 %v1538_v21, %v97_v23  ;;  %v208_v31 = vmul.f32 %v1542_v27, %v206_v19  ;;  %s3247_s13 = sld [smem:[#allocation2 + $0x19]] }
  0x25   :  { %v50_v28 = vmul.f32 0.5, %v49_v24  ;;  %v151_v33 = vmul.f32 %v1540_v25, %v150_v29 }
  0x26   :  { %v99_v30 = vmul.f32 0.5, %v98_v26  ;;  %v209_v35 = vmul.f32 %v1542_v27, %v208_v31 }
  0x27   :  { %v51_v32 = vsub.f32 1.5, %v50_v28  ;;  %v152_v37 = vmul.f32 0.5, %v151_v33 }
  0x28   :  { %v100_v34 = vsub.f32 1.5, %v99_v30  ;;  %v210_v40 = vmul.f32 0.5, %v209_v35 }
  0x29   :  { %v52_v36 = vmul.f32 %v1536_v20, %v51_v32  ;;  %v153_v43 = vsub.f32 1.5, %v152_v37 }
  0x2a   :  { %v101_v39 = vmul.f32 %v1538_v21, %v100_v34  ;;  %v211_v45 = vsub.f32 1.5, %v210_v40 }
  0x2b   :  { %v53_v41 = vmul.f32 %v52_v36, %v46_v14  ;;  %v154_v47 = vmul.f32 %v1540_v25, %v153_v43 }
  0x2c   :  { %v102_v44 = vmul.f32 %v101_v39, %v95_v16  ;;  %v212_v50 = vmul.f32 %v1542_v27, %v211_v45 }
  0x2d   :  { %v55_v46 = vsel %vm54_vm0, %v46_v14, %v53_v41  ;;  %v155_v53 = vmul.f32 %v154_v47, %v148_v18 }
  0x2e   :  { %v58_v48 = vsel %vm56_vm1, %v57_v38, %v55_v46  ;;  %v104_v49 = vsel %vm103_vm2, %v95_v16, %v102_v44  ;;  %v213_v56 = vmul.f32 %v212_v50, %v206_v19 }
  0x2f   :  { %v59_v51 = vadd.f32 1.0, %v58_v48  ;;  %v107_v52 = vsel %vm105_vm3, %v106_v42, %v104_v49  ;;  %v157_v58 = vsel %vm156_vm4, %v148_v18, %v155_v53 }
  0x30   :  { %v108_v55 = vadd.f32 1.0, %v107_v52  ;;  %v215_v59 = vsel %vm214_vm5, %v206_v19, %v213_v56  ;;  %v160_v60 = vsel %vm158_vm6, %v159_v54, %v157_v58 }
  0x31   :  { %1543 = vrcp.f32 %v59_v51  ;;  %v218_v61 = vsel %vm216_vm7, %v217_v57, %v215_v59  ;;  %v161_v62 = vadd.f32 1.0, %v160_v60  ;;  %v69_v3 = vand.u32 2147483647, %v59_v51 }
  0x32   :  { %1545 = vrcp.f32 %v108_v55  ;;  %v219_v63 = vadd.f32 1.0, %v218_v61  ;;  %v71_v5 = vand.u32 2147483648, %v59_v51  ;;  %v118_v8 = vand.u32 2147483647, %v108_v55 }
  0x33   :  { %1547 = vrcp.f32 %v161_v62  ;;  %v120_v9 = vand.u32 2147483648, %v108_v55  ;;  %vm65_vm8 = vweird.f32 %v59_v51  ;;  %vm114_vm10 = vweird.f32 %v108_v55 }
  0x34   :  { %1549 = vrcp.f32 %v219_v63  ;;  %vm1670_vm12 = vcmp.eq.f32.partialorder %v69_v3, 8.507059e+37  ;;  %v72_v16 = vor.u32 1.1754944e-38, %v71_v5  ;;  %vm1678_vm14 = vcmp.eq.f32.partialorder %v118_v8, 8.507059e+37 }
  0x35   :  { %v121_v21 = vor.u32 1.1754944e-38, %v120_v9  ;;  %vm167_vm15 = vweird.f32 %v161_v62  ;;  %v171_v26 = vand.u32 2147483647, %v161_v62  ;;  %v173_v27 = vand.u32 2147483648, %v161_v62 }
  0x36   :  { %vm225_vm1 = vweird.f32 %v219_v63  ;;  %v229_v30 = vand.u32 2147483647, %v219_v63  ;;  %v231_v33 = vand.u32 2147483648, %v219_v63 }
  0x37   :  { %v1544_v0 = vpop.eup %1543  ;;  %v174_v41 = vor.u32 1.1754944e-38, %v173_v27  ;;  %vm172_vm5 = vcmp.eq.f32.partialorder %v171_v26, 8.507059e+37 }
  0x38   :  { %v1546_v1 = vpop.eup %1545  ;;  %v61_v2 = vmul.f32 %v1544_v0, %v59_v51  ;;  %vm66_vm9 = vweird.f32 %v1544_v0  ;;  %vm230_vm7 = vcmp.eq.f32.partialorder %v229_v30, 8.507059e+37 }
  0x39   :  { %v110_v6 = vmul.f32 %v1546_v1, %v108_v55  ;;  %vm115_vm11 = vweird.f32 %v1546_v1  ;;  %v1548_v17 = vpop.eup %1547  ;;  %vm1674_vm13 = vmor %vm65_vm8, %vm66_vm9 }
  0x3a   :  { %v62_v11 = vsub.f32 1.0, %v61_v2  ;;  %v1550_v22 = vpop.eup %1549  ;;  %vm1682_vm0 = vmor %vm114_vm10, %vm115_vm11  ;;  %v163_v25 = vmul.f32 %v1548_v17, %v161_v62  ;;  %vm168_vm2 = vweird.f32 %v1548_v17 }
  0x3b   :  { %v111_v12 = vsub.f32 1.0, %v110_v6  ;;  %v221_v29 = vmul.f32 %v1550_v22, %v219_v63  ;;  %vm226_vm3 = vweird.f32 %v1550_v22  ;;  %vm169_vm4 = vmor %vm167_vm15, %vm168_vm2 }
  0x3c   :  { %v63_v14 = vmul.f32 %v1544_v0, %v62_v11  ;;  %v164_v32 = vsub.f32 1.0, %v163_v25  ;;  %vm227_vm6 = vmor %vm225_vm1, %vm226_vm3 }
  0x3d   :  { %v112_v19 = vmul.f32 %v1546_v1, %v111_v12  ;;  %v222_v36 = vsub.f32 1.0, %v221_v29 }
  0x3e   :  { %v64_v23 = vadd.f32 %v1544_v0, %v63_v14  ;;  %v165_v39 = vmul.f32 %v1548_v17, %v164_v32  ;;  %v1745_v32 = vstv %s1718_s23 }
  0x3f   :  { %v113_v28 = vadd.f32 %v1546_v1, %v112_v19  ;;  %v223_v42 = vmul.f32 %v1550_v22, %v222_v36  ;;  %v1751_v36 = vstv %s1513_s25 }
  0x40   :  { %v68_v31 = vsel %vm1674_vm13, %v1544_v0, %v64_v23  ;;  %v166_v44 = vadd.f32 %v1548_v17, %v165_v39 }
  0x41   :  { %v73_v34 = vsel %vm1670_vm12, %v72_v16, %v68_v31  ;;  %v117_v35 = vsel %vm1682_vm0, %v1546_v1, %v113_v28  ;;  %v224_v46 = vadd.f32 %v1550_v22, %v223_v42  ;;  %v1742_v31 = vstv %s1716_s22 }
  0x42   :  { %v1693_v37 = vmul.f32 %v73_v34, %v1654_v4  ;;  %v122_v38 = vsel %vm1678_vm14, %v121_v21, %v117_v35  ;;  %v232_v4 = vor.u32 1.1754944e-38, %v231_v33  ;;  %v1749_v35 = vstv %s1720_s24 }
  0x43   :  { %v1698_v40 = vmul.f32 %v122_v38, %v1656_v7  ;;  %v170_v7 = vsel %vm169_vm4, %v1548_v17, %v166_v44  ;;  %v228_v50 = vsel %vm227_vm6, %v1550_v22, %v224_v46 }
  0x44   :  { %v75_v43 = vmul.f32 %v1693_v37, %v1693_v37  ;;  %v175_v49 = vsel %vm172_vm5, %v174_v41, %v170_v7  ;;  %v233_v52 = vsel %vm230_vm7, %v232_v4, %v228_v50 }
  0x45   :  { %v124_v45 = vmul.f32 %v1698_v40, %v1698_v40  ;;  %v1707_v51 = vmul.f32 %v175_v49, %v1660_v10  ;;  %v1710_v53 = vmul.f32 %v233_v52, %v1664_v13 }
  0x46   :  { %v76_v47 = vadd.f32 1.0, %v75_v43 }
  0x47   :  { %v125_v48 = vadd.f32 1.0, %v124_v45  ;;  %v177_v54 = vmul.f32 %v1707_v51, %v1707_v51  ;;  %v235_v55 = vmul.f32 %v1710_v53, %v1710_v53 }
  0x48   :  { %1551 = vrsqrt.f32 %v76_v47  ;;  %vm83_vm8 = vweird.f32 %v76_v47 }
  0x49   :  { %1553 = vrsqrt.f32 %v125_v48  ;;  %v178_v56 = vadd.f32 1.0, %v177_v54  ;;  %v236_v57 = vadd.f32 1.0, %v235_v55  ;;  %vm132_vm10 = vweird.f32 %v125_v48 }
  0x4b   :  { %1555 = vrsqrt.f32 %v178_v56  ;;  %vm185_vm14 = vweird.f32 %v178_v56  ;;  %vm243_vm0 = vweird.f32 %v236_v57 }
  0x4c   :  { %1557 = vrsqrt.f32 %v236_v57 }
  0x4e   :  { %v1552_v58 = vpop.eup %1551 }
  0x4f   :  { %v1554_v59 = vpop.eup %1553  ;;  %v78_v60 = vmul.f32 %v1552_v58, %v76_v47  ;;  %vm84_vm9 = vweird.f32 %v1552_v58 }
  0x50   :  { %v127_v10 = vmul.f32 %v1554_v59, %v125_v48  ;;  %vm133_vm11 = vweird.f32 %v1554_v59  ;;  %vm85_vm12 = vmor %vm83_vm8, %vm84_vm9 }
  0x51   :  { %v79_v61 = vmul.f32 %v1552_v58, %v78_v60  ;;  %v1556_v13 = vpop.eup %1555  ;;  %vm134_vm13 = vmor %vm132_vm10, %vm133_vm11 }
  0x52   :  { %v128_v62 = vmul.f32 %v1554_v59, %v127_v10  ;;  %v1558_v1 = vpop.eup %1557  ;;  %v180_v3 = vmul.f32 %v1556_v13, %v178_v56  ;;  %vm186_vm15 = vweird.f32 %v1556_v13 }
  0x53   :  { %v80_v63 = vmul.f32 0.5, %v79_v61  ;;  %v238_v6 = vmul.f32 %v1558_v1, %v236_v57  ;;  %vm244_vm1 = vweird.f32 %v1558_v1  ;;  %vm187_vm2 = vmor %vm185_vm14, %vm186_vm15 }
  0x54   :  { %v129_v0 = vmul.f32 0.5, %v128_v62  ;;  %v181_v9 = vmul.f32 %v1556_v13, %v180_v3  ;;  %vm245_vm3 = vmor %vm243_vm0, %vm244_vm1 }
  0x55   :  { %v81_v2 = vsub.f32 1.5, %v80_v63  ;;  %v239_v12 = vmul.f32 %v1558_v1, %v238_v6 }
  0x56   :  { %v130_v5 = vsub.f32 1.5, %v129_v0  ;;  %v182_v15 = vmul.f32 0.5, %v181_v9 }
  0x57   :  { %v82_v8 = vmul.f32 %v1552_v58, %v81_v2  ;;  %v240_v18 = vmul.f32 0.5, %v239_v12 }
  0x58   :  { %v131_v11 = vmul.f32 %v1554_v59, %v130_v5  ;;  %v183_v20 = vsub.f32 1.5, %v182_v15 }
  0x59   :  { %v1722_v14 = vsel %vm85_vm12, %v1552_v58, %v82_v8  ;;  %v241_v22 = vsub.f32 1.5, %v240_v18 }
  0x5a   :  { %v1726_v16 = vmul.f32 %v1722_v14, %v1693_v37  ;;  %v1728_v17 = vsel %vm134_vm13, %v1554_v59, %v131_v11  ;;  %v184_v25 = vmul.f32 %v1556_v13, %v183_v20 }
  0x5b   :  { %v1732_v19 = vmul.f32 %v1728_v17, %v1698_v40  ;;  %v137_v23 = vmul.f32 %v1728_v17, %v1722_v14  ;;  %v242_v28 = vmul.f32 %v1558_v1, %v241_v22 }
  0x5c   :  { %v88_v21 = vsub.f32 0.0, %v1726_v16  ;;  %v188_v30 = vsel %vm187_vm2, %v1556_v13, %v184_v25 }
  0x5d   :  { %v138_v24 = vmul.f32 %v1732_v19, %v1722_v14  ;;  %v189_v33 = vmul.f32 %v188_v30, %v1707_v51  ;;  %v190_v37 = vmul.f32 %v188_v30, %v137_v23  ;;  %v246_v40 = vsel %vm245_vm3, %v1558_v1, %v242_v28 }
  0x5e   :  { %v140_v26 = vmul.f32 %v1728_v17, %v88_v21  ;;  %v141_v27 = vmul.f32 %v1732_v19, %v88_v21  ;;  %v247_v4 = vmul.f32 %v246_v40, %v1710_v53 }
  0x5f   :  { %v139_v29 = vsub.f32 0.0, %v138_v24  ;;  %v191_v41 = vmul.f32 %v189_v33, %v137_v23  ;;  %v248_v45 = vmul.f32 %v246_v40, %v190_v37 }
  0x60   :  { %v195_v34 = vmul.f32 %v188_v30, %v140_v26  ;;  %v197_v39 = vmul.f32 %v188_v30, %v141_v27  ;;  %v196_v43 = vmul.f32 %v189_v33, %v140_v26  ;;  %v198_v44 = vmul.f32 %v189_v33, %v141_v27 }
  0x61   :  { %v193_v38 = vmul.f32 %v188_v30, %v139_v29  ;;  %v194_v42 = vmul.f32 %v189_v33, %v139_v29  ;;  %v192_v7 = vsub.f32 0.0, %v191_v41  ;;  %v249_v51 = vmul.f32 %v247_v4, %v190_v37 }
  0x62   :  { %v258_v47 = vmul.f32 %v246_v40, %v195_v34  ;;  %v199_v48 = vsub.f32 0.0, %v198_v44  ;;  %v260_v50 = vmul.f32 %v246_v40, %v196_v43  ;;  %v259_v55 = vmul.f32 %v247_v4, %v195_v34 }
  0x63   :  { %v1754_v46 = vmul.f32 %v246_v40, %v193_v38  ;;  %v1756_v49 = vmul.f32 %v246_v40, %v194_v42  ;;  %v1758_v52 = vmul.f32 %v247_v4, %v193_v38  ;;  %v1760_v54 = vmul.f32 %v247_v4, %v194_v42 }
  0x64   :  { %v251_v56 = vmul.f32 %v246_v40, %v192_v7  ;;  %v252_v57 = vmul.f32 %v247_v4, %v192_v7  ;;  %v261_v58 = vmul.f32 %v247_v4, %v196_v43  ;;  %v1762_v59 = vmul.f32 %v246_v40, %v197_v39 }
  0x65   :  { %v250_v53 = vsub.f32 0.0, %v249_v51  ;;  %v257_v60 = vsub.f32 0.0, %v1760_v54  ;;  %v1765_v10 = vmul.f32 %v247_v4, %v197_v39  ;;  %v1767_v61 = vmul.f32 %v246_v40, %v199_v48 }
  0x66   :  { %v262_v62 = vsub.f32 0.0, %v261_v58  ;;  %v1769_v63 = vmul.f32 %v247_v4, %v199_v48  ;;  %v276_v13 = vmul.f32 %v1742_v31, %v248_v45  ;;  %v277_v0 = vmul.f32 %v1745_v32, %v258_v47 }
  0x67   :  { %v265_v1 = vsub.f32 0.0, %v1765_v10  ;;  %v279_v2 = vmul.f32 %v1745_v32, %v248_v45  ;;  %v280_v3 = vmul.f32 %v1742_v31, %v258_v47  ;;  %v293_v5 = vmul.f32 %v1745_v32, %v259_v55 }
  0x68   :  { %v278_v6 = vsub.f32 0.0, %v277_v0  ;;  %v281_v8 = vmul.f32 %v276_v13, %v1749_v35  ;;  %v285_v9 = vmul.f32 %v276_v13, %v1751_v36  ;;  %v295_v11 = vmul.f32 %v1742_v31, %v250_v53 }
  0x69   :  { %v287_v12 = vmul.f32 %v279_v2, %v1749_v35  ;;  %v288_v15 = vmul.f32 %v280_v3, %v1751_v36  ;;  %v290_v18 = vmul.f32 %v280_v3, %v1749_v35  ;;  %v291_v20 = vmul.f32 %v279_v2, %v1751_v36 }
  0x6a   :  { %v282_v21 = vmul.f32 %v278_v6, %v1751_v36  ;;  %v284_v22 = vmul.f32 %v278_v6, %v1749_v35  ;;  %v294_v23 = vsub.f32 0.0, %v293_v5  ;;  %v296_v24 = vmul.f32 %v1742_v31, %v259_v55 }
  0x6b   :  { %v1787_v25 = vsub.f32 %v287_v12, %v288_v15  ;;  %v1789_v26 = vadd.f32 %v291_v20, %v290_v18  ;;  %v297_v27 = vmul.f32 %v1745_v32, %v250_v53  ;;  %v299_v28 = vmul.f32 %v295_v11, %v1751_v36 }
  0x6c   :  { %v1793_v29 = vadd.f32 %v282_v21, %v281_v8  ;;  %v1795_v30 = vsub.f32 %v284_v22, %v285_v9  ;;  %v298_v33 = vmul.f32 %v294_v23, %v1749_v35  ;;  %v301_v34 = vmul.f32 %v295_v11, %v1749_v35 }
  0x6d   :  { %v302_v37 = vmul.f32 %v294_v23, %v1751_v36  ;;  %v304_v38 = vmul.f32 %v296_v24, %v1749_v35  ;;  %v305_v39 = vmul.f32 %v297_v27, %v1751_v36  ;;  %v307_v40 = vmul.f32 %v297_v27, %v1749_v35 }
  0x6e   :  { %v1803_v41 = vadd.f32 %v299_v28, %v298_v33  ;;  %v308_v42 = vmul.f32 %v296_v24, %v1751_v36  ;;  %v310_v43 = vmul.f32 %v1745_v32, %v260_v50  ;;  %v312_v44 = vmul.f32 %v1742_v31, %v251_v56 }
  0x6f   :  { %v1808_v4 = vsub.f32 %v301_v34, %v302_v37  ;;  %v1810_v45 = vsub.f32 %v304_v38, %v305_v39  ;;  %v313_v47 = vmul.f32 %v1742_v31, %v260_v50  ;;  %v314_v7 = vmul.f32 %v1745_v32, %v251_v56 }
  0x70   :  { %v1814_v48 = vadd.f32 %v308_v42, %v307_v40  ;;  %v311_v51 = vsub.f32 0.0, %v310_v43  ;;  %v316_v55 = vmul.f32 %v312_v44, %v1751_v36  ;;  %v318_v58 = vmul.f32 %v312_v44, %v1749_v35 }
  0x71   :  { %v321_v53 = vmul.f32 %v313_v47, %v1749_v35  ;;  %v322_v13 = vmul.f32 %v314_v7, %v1751_v36  ;;  %v324_v0 = vmul.f32 %v314_v7, %v1749_v35  ;;  %v325_v2 = vmul.f32 %v313_v47, %v1751_v36 }
  0x72   :  { %v315_v3 = vmul.f32 %v311_v51, %v1749_v35  ;;  %v319_v50 = vmul.f32 %v311_v51, %v1751_v36  ;;  %v327_v56 = vmul.f32 %v1742_v31, %v252_v57  ;;  %v328_v5 = vmul.f32 %v1745_v32, %v262_v62 }
  0x73   :  { %v1826_v6 = vsub.f32 %v321_v53, %v322_v13  ;;  %v1828_v8 = vadd.f32 %v325_v2, %v324_v0  ;;  %v330_v9 = vmul.f32 %v1745_v32, %v252_v57  ;;  %v331_v11 = vmul.f32 %v1742_v31, %v262_v62 }
  0x74   :  { %v1832_v12 = vadd.f32 %v316_v55, %v315_v3  ;;  %v1834_v15 = vsub.f32 %v318_v58, %v319_v50  ;;  %v329_v18 = vsub.f32 0.0, %v328_v5  ;;  %v332_v20 = vmul.f32 %v327_v56, %v1749_v35 }
  0x75   :  { %v336_v21 = vmul.f32 %v327_v56, %v1751_v36  ;;  %v338_v22 = vmul.f32 %v330_v9, %v1749_v35  ;;  %v339_v23 = vmul.f32 %v331_v11, %v1751_v36  ;;  %v341_v24 = vmul.f32 %v331_v11, %v1749_v35 }
  0x76   :  { %v333_v27 = vmul.f32 %v329_v18, %v1751_v36  ;;  %v335_v57 = vmul.f32 %v329_v18, %v1749_v35  ;;  %v342_v62 = vmul.f32 %v330_v9, %v1751_v36  ;;  %v344_v28 = vmul.f32 %v1745_v32, %v1762_v59 }
  0x77   :  { %v1846_v33 = vsub.f32 %v338_v22, %v339_v23  ;;  %v346_v34 = vmul.f32 %v1742_v31, %v1754_v46  ;;  %v347_v37 = vmul.f32 %v1742_v31, %v1762_v59  ;;  %v348_v38 = vmul.f32 %v1745_v32, %v1754_v46 }
  0x78   :  { %v1854_v39 = vadd.f32 %v333_v27, %v332_v20  ;;  %v1856_v40 = vsub.f32 %v335_v57, %v336_v21  ;;  %v1858_v42 = vadd.f32 %v342_v62, %v341_v24  ;;  %v345_v43 = vsub.f32 0.0, %v344_v28 }
  0x79   :  { %v350_v44 = vmul.f32 %v346_v34, %v1751_v36  ;;  %v352_v47 = vmul.f32 %v346_v34, %v1749_v35  ;;  %v355_v7 = vmul.f32 %v347_v37, %v1749_v35  ;;  %v356_v51 = vmul.f32 %v348_v38, %v1751_v36 }
  0x7a   :  { %v349_v59 = vmul.f32 %v345_v43, %v1749_v35  ;;  %v353_v55 = vmul.f32 %v345_v43, %v1751_v36  ;;  %v358_v46 = vmul.f32 %v348_v38, %v1749_v35  ;;  %v359_v58 = vmul.f32 %v347_v37, %v1751_v36 }
  0x7b   :  { %v1868_v53 = vsub.f32 %v355_v7, %v356_v51  ;;  %v361_v13 = vmul.f32 %v1742_v31, %v1758_v52  ;;  %v362_v0 = vmul.f32 %v1745_v32, %v265_v1  ;;  %v364_v2 = vmul.f32 %v1745_v32, %v1758_v52 }
  0x7c   :  { %v1877_v3 = vadd.f32 %v350_v44, %v349_v59  ;;  %v1879_v50 = vsub.f32 %v352_v47, %v353_v55  ;;  %v1881_v56 = vadd.f32 %v359_v58, %v358_v46  ;;  %v365_v5 = vmul.f32 %v1742_v31, %v265_v1 }
  0x7d   :  { %v363_v9 = vsub.f32 0.0, %v362_v0  ;;  %v366_v11 = vmul.f32 %v361_v13, %v1749_v35  ;;  %v370_v18 = vmul.f32 %v361_v13, %v1751_v36  ;;  %v372_v20 = vmul.f32 %v364_v2, %v1749_v35 }
  0x7e   :  { %v373_v52 = vmul.f32 %v365_v5, %v1751_v36  ;;  %v375_v21 = vmul.f32 %v365_v5, %v1749_v35  ;;  %v376_v22 = vmul.f32 %v364_v2, %v1751_v36  ;;  %v378_v10 = vmul.f32 %v1742_v31, %v1756_v49 }
  0x7f   :  { %v367_v1 = vmul.f32 %v363_v9, %v1751_v36  ;;  %v369_v23 = vmul.f32 %v363_v9, %v1749_v35  ;;  %v379_v24 = vmul.f32 %v1745_v32, %v1767_v61  ;;  %v381_v27 = vmul.f32 %v1745_v32, %v1756_v49 }
  0x80   :  { %v1906_v57 = vsub.f32 %v372_v20, %v373_v52  ;;  %v1908_v62 = vadd.f32 %v376_v22, %v375_v21  ;;  %v382_v28 = vmul.f32 %v1742_v31, %v1767_v61  ;;  %v383_v34 = vmul.f32 %v378_v10, %v1749_v35 }
  0x81   :  { %v1915_v37 = vadd.f32 %v367_v1, %v366_v11  ;;  %v1917_v38 = vsub.f32 %v369_v23, %v370_v18  ;;  %v380_v43 = vsub.f32 0.0, %v379_v24  ;;  %v387_v49 = vmul.f32 %v378_v10, %v1751_v36 }
  0x82   :  { %v389_v44 = vmul.f32 %v381_v27, %v1749_v35  ;;  %v390_v47 = vmul.f32 %v382_v28, %v1751_v36  ;;  %v392_v7 = vmul.f32 %v382_v28, %v1749_v35  ;;  %v393_v51 = vmul.f32 %v381_v27, %v1751_v36 }
  0x83   :  { %v384_v61 = vmul.f32 %v380_v43, %v1751_v36  ;;  %v386_v59 = vmul.f32 %v380_v43, %v1749_v35  ;;  %v395_v55 = vmul.f32 %v1745_v32, %v1769_v63  ;;  %v397_v46 = vmul.f32 %v1742_v31, %v257_v60 }
  0x84   :  { %v1931_v58 = vsub.f32 %v389_v44, %v390_v47  ;;  %v1933_v13 = vadd.f32 %v393_v51, %v392_v7  ;;  %v398_v0 = vmul.f32 %v1742_v31, %v1769_v63  ;;  %v399_v2 = vmul.f32 %v1745_v32, %v257_v60 }
  0x85   :  { %v1940_v5 = vadd.f32 %v384_v61, %v383_v34  ;;  %v1942_v9 = vsub.f32 %v386_v59, %v387_v49  ;;  %v396_v11 = vsub.f32 0.0, %v395_v55  ;;  %v401_v18 = vmul.f32 %v397_v46, %v1751_v36 }
  0x86   :  { %v403_v20 = vmul.f32 %v397_v46, %v1749_v35  ;;  %v406_v52 = vmul.f32 %v398_v0, %v1749_v35  ;;  %v407_v21 = vmul.f32 %v399_v2, %v1751_v36  ;;  %v409_v31 = vmul.f32 %v399_v2, %v1749_v35 }
  0x87   :  { %v400_v54 = vmul.f32 %v396_v11, %v1749_v35  ;;  %v404_v32 = vmul.f32 %v396_v11, %v1751_v36  ;;  %v410_v60 = vmul.f32 %v398_v0, %v1751_v36  ;;  %v1953_v63 = vstv %s1889_s26 }
  0x88   :  { %v1955_v22 = vsub.f32 %v406_v52, %v407_v21  ;;  %v1958_v10 = vstv %s1896_s27  ;;  %v1961_v1 = vstv %s1904_s28  ;;  %v1964_v23 = vstv %s1913_s29 }
  0x89   :  { %v1966_v24 = vadd.f32 %v401_v18, %v400_v54  ;;  %v1968_v27 = vsub.f32 %v403_v20, %v404_v32  ;;  %v1970_v28 = vadd.f32 %v410_v60, %v409_v31  ;;  %v420_v35 = vmul.f32 %v1953_v63, %v1793_v29 }
  0x8a   :  { %v421_v36 = vmul.f32 %v1958_v10, %v1877_v3  ;;  %v423_v34 = vmul.f32 %v1953_v63, %v1795_v30  ;;  %v424_v43 = vmul.f32 %v1958_v10, %v1879_v50  ;;  %v426_v49 = vmul.f32 %v1958_v10, %v1793_v29 }
  0x8b   :  { %v427_v44 = vmul.f32 %v1953_v63, %v1877_v3  ;;  %v429_v47 = vmul.f32 %v1958_v10, %v1795_v30  ;;  %v430_v7 = vmul.f32 %v1953_v63, %v1879_v50  ;;  %v444_v51 = vmul.f32 %v1953_v63, %v1803_v41 }
  0x8c   :  { %v422_v61 = vsub.f32 %v420_v35, %v421_v36  ;;  %v425_v59 = vsub.f32 %v423_v34, %v424_v43  ;;  %v445_v55 = vmul.f32 %v1958_v10, %v1915_v37  ;;  %v447_v29 = vmul.f32 %v1953_v63, %v1808_v4 }
  0x8d   :  { %v428_v46 = vadd.f32 %v427_v44, %v426_v49  ;;  %v431_v0 = vadd.f32 %v430_v7, %v429_v47  ;;  %v448_v3 = vmul.f32 %v1958_v10, %v1917_v38  ;;  %v450_v30 = vmul.f32 %v1958_v10, %v1803_v41 }
  0x8e   :  { %v432_v50 = vmul.f32 %v422_v61, %v1961_v1  ;;  %v433_v2 = vmul.f32 %v425_v59, %v1964_v23  ;;  %v435_v11 = vmul.f32 %v425_v59, %v1961_v1  ;;  %v436_v18 = vmul.f32 %v422_v61, %v1964_v23 }
  0x8f   :  { %v438_v20 = vmul.f32 %v428_v46, %v1961_v1  ;;  %v439_v52 = vmul.f32 %v431_v0, %v1964_v23  ;;  %v441_v21 = vmul.f32 %v431_v0, %v1961_v1  ;;  %v442_v31 = vmul.f32 %v428_v46, %v1964_v23 }
  0x90   :  { %v2006_v54 = vadd.f32 %v433_v2, %v432_v50  ;;  %v2008_v32 = vsub.f32 %v435_v11, %v436_v18  ;;  %v446_v41 = vsub.f32 %v444_v51, %v445_v55  ;;  %v449_v60 = vsub.f32 %v447_v29, %v448_v3 }
  0x91   :  { %v2010_v35 = vsub.f32 %v438_v20, %v439_v52  ;;  %v2012_v36 = vadd.f32 %v442_v31, %v441_v21  ;;  %v451_v34 = vmul.f32 %v1953_v63, %v1915_v37  ;;  %v453_v43 = vmul.f32 %v1958_v10, %v1808_v4 }
  0x92   :  { %v454_v49 = vmul.f32 %v1953_v63, %v1917_v38  ;;  %v456_v44 = vmul.f32 %v446_v41, %v1961_v1  ;;  %v457_v47 = vmul.f32 %v449_v60, %v1964_v23  ;;  %v459_v7 = vmul.f32 %v449_v60, %v1961_v1 }
  0x93   :  { %v452_v51 = vadd.f32 %v451_v34, %v450_v30  ;;  %v460_v61 = vmul.f32 %v446_v41, %v1964_v23  ;;  %v468_v59 = vmul.f32 %v1953_v63, %v1832_v12  ;;  %v469_v37 = vmul.f32 %v1958_v10, %v1940_v5 }
  0x94   :  { %v455_v55 = vadd.f32 %v454_v49, %v453_v43  ;;  %v2028_v4 = vadd.f32 %v457_v47, %v456_v44  ;;  %v471_v38 = vmul.f32 %v1953_v63, %v1834_v15  ;;  %v472_v29 = vmul.f32 %v1958_v10, %v1942_v9 }
  0x95   :  { %v2034_v46 = vsub.f32 %v459_v7, %v460_v61  ;;  %v462_v0 = vmul.f32 %v452_v51, %v1961_v1  ;;  %v466_v3 = vmul.f32 %v452_v51, %v1964_v23  ;;  %v470_v30 = vsub.f32 %v468_v59, %v469_v37 }
  0x96   :  { %v463_v50 = vmul.f32 %v455_v55, %v1964_v23  ;;  %v465_v2 = vmul.f32 %v455_v55, %v1961_v1  ;;  %v473_v11 = vsub.f32 %v471_v38, %v472_v29  ;;  %v474_v18 = vmul.f32 %v1958_v10, %v1832_v12 }
  0x97   :  { %v475_v20 = vmul.f32 %v1953_v63, %v1940_v5  ;;  %v477_v52 = vmul.f32 %v1958_v10, %v1834_v15  ;;  %v478_v21 = vmul.f32 %v1953_v63, %v1942_v9  ;;  %v480_v31 = vmul.f32 %v470_v30, %v1961_v1 }
  0x98   :  { %v2049_v41 = vsub.f32 %v462_v0, %v463_v50  ;;  %v2051_v60 = vadd.f32 %v466_v3, %v465_v2  ;;  %v481_v34 = vmul.f32 %v473_v11, %v1964_v23  ;;  %v483_v43 = vmul.f32 %v473_v11, %v1961_v1 }
  0x99   :  { %v476_v12 = vadd.f32 %v475_v20, %v474_v18  ;;  %v479_v49 = vadd.f32 %v478_v21, %v477_v52  ;;  %v484_v5 = vmul.f32 %v470_v30, %v1964_v23  ;;  %v492_v15 = vmul.f32 %v1953_v63, %v1854_v39 }
  0x9a   :  { %v2058_v44 = vadd.f32 %v481_v34, %v480_v31  ;;  %v493_v9 = vmul.f32 %v1958_v10, %v1966_v24  ;;  %v495_v47 = vmul.f32 %v1953_v63, %v1856_v40  ;;  %v496_v7 = vmul.f32 %v1958_v10, %v1968_v27 }
  0x9b   :  { %v2066_v51 = vsub.f32 %v483_v43, %v484_v5  ;;  %v486_v61 = vmul.f32 %v476_v12, %v1961_v1  ;;  %v487_v59 = vmul.f32 %v479_v49, %v1964_v23  ;;  %v489_v37 = vmul.f32 %v479_v49, %v1961_v1 }
  0x9c   :  { %v490_v55 = vmul.f32 %v476_v12, %v1964_v23  ;;  %v494_v38 = vsub.f32 %v492_v15, %v493_v9  ;;  %v497_v29 = vsub.f32 %v495_v47, %v496_v7  ;;  %v498_v0 = vmul.f32 %v1958_v10, %v1854_v39 }
  0x9d   :  { %v2074_v3 = vsub.f32 %v486_v61, %v487_v59  ;;  %v499_v30 = vmul.f32 %v1953_v63, %v1966_v24  ;;  %v501_v50 = vmul.f32 %v1958_v10, %v1856_v40  ;;  %v502_v2 = vmul.f32 %v1953_v63, %v1968_v27 }
  0x9e   :  { %v2082_v11 = vadd.f32 %v490_v55, %v489_v37  ;;  %v504_v18 = vmul.f32 %v494_v38, %v1961_v1  ;;  %v505_v20 = vmul.f32 %v497_v29, %v1964_v23  ;;  %v507_v52 = vmul.f32 %v497_v29, %v1961_v1 }
  0x9f   :  { %v500_v39 = vadd.f32 %v499_v30, %v498_v0  ;;  %v503_v21 = vadd.f32 %v502_v2, %v501_v50  ;;  %v508_v31 = vmul.f32 %v494_v38, %v1964_v23  ;;  %v516_v24 = vmul.f32 %v1953_v63, %v1787_v25 }
  0xa0   :  { %v2090_v34 = vadd.f32 %v505_v20, %v504_v18  ;;  %v517_v40 = vmul.f32 %v1958_v10, %v1868_v53  ;;  %v519_v27 = vmul.f32 %v1953_v63, %v1789_v26  ;;  %v520_v43 = vmul.f32 %v1958_v10, %v1881_v56 }
  0xa1   :  { %v2098_v12 = vsub.f32 %v507_v52, %v508_v31  ;;  %v510_v49 = vmul.f32 %v500_v39, %v1961_v1  ;;  %v511_v5 = vmul.f32 %v503_v21, %v1964_v23  ;;  %v513_v15 = vmul.f32 %v503_v21, %v1961_v1 }
  0xa2   :  { %v514_v9 = vmul.f32 %v500_v39, %v1964_v23  ;;  %v518_v47 = vsub.f32 %v516_v24, %v517_v40  ;;  %v521_v7 = vsub.f32 %v519_v27, %v520_v43  ;;  %v522_v61 = vmul.f32 %v1958_v10, %v1787_v25 }
  0xa3   :  { %v2106_v59 = vsub.f32 %v510_v49, %v511_v5  ;;  %v523_v37 = vmul.f32 %v1953_v63, %v1868_v53  ;;  %v525_v55 = vmul.f32 %v1958_v10, %v1789_v26  ;;  %v526_v38 = vmul.f32 %v1953_v63, %v1881_v56 }
  0xa4   :  { %v2114_v29 = vadd.f32 %v514_v9, %v513_v15  ;;  %v528_v0 = vmul.f32 %v518_v47, %v1961_v1  ;;  %v529_v30 = vmul.f32 %v521_v7, %v1964_v23  ;;  %v531_v50 = vmul.f32 %v521_v7, %v1961_v1 }
  0xa5   :  { %v524_v25 = vadd.f32 %v523_v37, %v522_v61  ;;  %v527_v2 = vadd.f32 %v526_v38, %v525_v55  ;;  %v532_v18 = vmul.f32 %v518_v47, %v1964_v23  ;;  %v540_v53 = vmul.f32 %v1953_v63, %v1810_v45 }
  0xa6   :  { %v2122_v20 = vadd.f32 %v529_v30, %v528_v0  ;;  %v541_v26 = vmul.f32 %v1958_v10, %v1906_v57  ;;  %v543_v56 = vmul.f32 %v1953_v63, %v1814_v48  ;;  %v544_v52 = vmul.f32 %v1958_v10, %v1908_v62 }
  0xa7   :  { %v2130_v39 = vsub.f32 %v531_v50, %v532_v18  ;;  %v534_v21 = vmul.f32 %v524_v25, %v1961_v1  ;;  %v535_v31 = vmul.f32 %v527_v2, %v1964_v23  ;;  %v537_v24 = vmul.f32 %v527_v2, %v1961_v1 }
  0xa8   :  { %v538_v40 = vmul.f32 %v524_v25, %v1964_v23  ;;  %v542_v27 = vsub.f32 %v540_v53, %v541_v26  ;;  %v545_v43 = vsub.f32 %v543_v56, %v544_v52  ;;  %v546_v49 = vmul.f32 %v1958_v10, %v1810_v45 }
  0xa9   :  { %v2138_v5 = vsub.f32 %v534_v21, %v535_v31  ;;  %v547_v15 = vmul.f32 %v1953_v63, %v1906_v57  ;;  %v549_v9 = vmul.f32 %v1958_v10, %v1814_v48  ;;  %v550_v47 = vmul.f32 %v1953_v63, %v1908_v62 }
  0xaa   :  { %v2146_v7 = vadd.f32 %v538_v40, %v537_v24  ;;  %v552_v61 = vmul.f32 %v542_v27, %v1961_v1  ;;  %v553_v37 = vmul.f32 %v545_v43, %v1964_v23  ;;  %v555_v55 = vmul.f32 %v545_v43, %v1961_v1 }
  0xab   :  { %v548_v45 = vadd.f32 %v547_v15, %v546_v49  ;;  %v551_v38 = vadd.f32 %v550_v47, %v549_v9  ;;  %v556_v0 = vmul.f32 %v542_v27, %v1964_v23  ;;  %v564_v57 = vmul.f32 %v1953_v63, %v1826_v6 }
  0xac   :  { %v2154_v30 = vadd.f32 %v553_v37, %v552_v61  ;;  %v565_v48 = vmul.f32 %v1958_v10, %v1931_v58  ;;  %v567_v62 = vmul.f32 %v1953_v63, %v1828_v8  ;;  %v568_v50 = vmul.f32 %v1958_v10, %v1933_v13 }
  0xad   :  { %v2162_v25 = vsub.f32 %v555_v55, %v556_v0  ;;  %v558_v2 = vmul.f32 %v548_v45, %v1961_v1  ;;  %v559_v18 = vmul.f32 %v551_v38, %v1964_v23  ;;  %v561_v53 = vmul.f32 %v551_v38, %v1961_v1 }
  0xae   :  { %v562_v26 = vmul.f32 %v548_v45, %v1964_v23  ;;  %v566_v56 = vsub.f32 %v564_v57, %v565_v48  ;;  %v569_v52 = vsub.f32 %v567_v62, %v568_v50  ;;  %v570_v21 = vmul.f32 %v1958_v10, %v1826_v6 }
  0xaf   :  { %v2174_v31 = vsub.f32 %v558_v2, %v559_v18  ;;  %v571_v24 = vmul.f32 %v1953_v63, %v1931_v58  ;;  %v573_v40 = vmul.f32 %v1958_v10, %v1828_v8  ;;  %v574_v27 = vmul.f32 %v1953_v63, %v1933_v13 }
  0xb0   :  { %v2184_v43 = vadd.f32 %v562_v26, %v561_v53  ;;  %v576_v49 = vmul.f32 %v566_v56, %v1961_v1  ;;  %v577_v6 = vmul.f32 %v569_v52, %v1964_v23  ;;  %v579_v15 = vmul.f32 %v569_v52, %v1961_v1 }
  0xb1   :  { %v572_v9 = vadd.f32 %v571_v24, %v570_v21  ;;  %v575_v58 = vadd.f32 %v574_v27, %v573_v40  ;;  %v580_v47 = vmul.f32 %v566_v56, %v1964_v23  ;;  %v588_v8 = vmul.f32 %v1953_v63, %v1846_v33 }
  0xb2   :  { %v2194_v13 = vadd.f32 %v577_v6, %v576_v49  ;;  %v589_v61 = vmul.f32 %v1958_v10, %v1955_v22  ;;  %v591_v37 = vmul.f32 %v1953_v63, %v1858_v42  ;;  %v592_v55 = vmul.f32 %v1958_v10, %v1970_v28 }
  0xb3   :  { %v2202_v45 = vsub.f32 %v579_v15, %v580_v47  ;;  %v582_v38 = vmul.f32 %v572_v9, %v1961_v1  ;;  %v583_v0 = vmul.f32 %v575_v58, %v1964_v23  ;;  %v585_v57 = vmul.f32 %v575_v58, %v1961_v1 }
  0xb4   :  { %v586_v48 = vmul.f32 %v572_v9, %v1964_v23  ;;  %v590_v62 = vsub.f32 %v588_v8, %v589_v61  ;;  %v593_v50 = vsub.f32 %v591_v37, %v592_v55  ;;  %v594_v2 = vmul.f32 %v1958_v10, %v1846_v33 }
  0xb5   :  { %v2210_v18 = vsub.f32 %v582_v38, %v583_v0  ;;  %v595_v53 = vmul.f32 %v1953_v63, %v1955_v22  ;;  %v597_v26 = vmul.f32 %v1958_v10, %v1858_v42  ;;  %v598_v56 = vmul.f32 %v1953_v63, %v1970_v28 }
  0xb6   :  { %v2218_v52 = vadd.f32 %v586_v48, %v585_v57  ;;  %v600_v21 = vmul.f32 %v590_v62, %v1961_v1  ;;  %v601_v24 = vmul.f32 %v593_v50, %v1964_v23  ;;  %v603_v33 = vmul.f32 %v593_v50, %v1961_v1 }
  0xb7   :  { %v596_v40 = vadd.f32 %v595_v53, %v594_v2  ;;  %v599_v27 = vadd.f32 %v598_v56, %v597_v26  ;;  %v604_v49 = vmul.f32 %v590_v62, %v1964_v23  ;;  %v2225_v6 = vstv %s2167_s30 }
  0xb8   :  { %v2227_v22 = vadd.f32 %v601_v24, %v600_v21  ;;  %v2230_v42 = vstv %s2172_s3  ;;  %v2233_v10 = vstv %s2182_s4  ;;  %v2236_v63 = vstv %s2189_s5 }
  0xb9   :  { %v2238_v28 = vsub.f32 %v603_v33, %v604_v49  ;;  %v606_v15 = vmul.f32 %v596_v40, %v1961_v1  ;;  %v607_v9 = vmul.f32 %v599_v27, %v1964_v23  ;;  %v609_v58 = vmul.f32 %v599_v27, %v1961_v1 }
  0xba   :  { %v610_v47 = vmul.f32 %v596_v40, %v1964_v23  ;;  %v620_v8 = vmul.f32 %v2225_v6, %v2006_v54  ;;  %v621_v61 = vmul.f32 %v2230_v42, %v2058_v44  ;;  %v623_v37 = vmul.f32 %v2225_v6, %v2008_v32 }
  0xbb   :  { %v2250_v55 = vsub.f32 %v606_v15, %v607_v9  ;;  %v624_v38 = vmul.f32 %v2230_v42, %v2066_v51  ;;  %v626_v0 = vmul.f32 %v2230_v42, %v2006_v54  ;;  %v627_v1 = vmul.f32 %v2225_v6, %v2058_v44 }
  0xbc   :  { %v2258_v23 = vadd.f32 %v610_v47, %v609_v58  ;;  %v622_v57 = vsub.f32 %v620_v8, %v621_v61  ;;  %v629_v48 = vmul.f32 %v2230_v42, %v2008_v32  ;;  %v630_v62 = vmul.f32 %v2225_v6, %v2066_v51 }
  0xbd   :  { %v625_v50 = vsub.f32 %v623_v37, %v624_v38  ;;  %v628_v2 = vadd.f32 %v627_v1, %v626_v0  ;;  %v644_v53 = vmul.f32 %v2225_v6, %v2028_v4  ;;  %v645_v54 = vmul.f32 %v2230_v42, %v2090_v34 }
  0xbe   :  { %v631_v26 = vadd.f32 %v630_v62, %v629_v48  ;;  %v632_v44 = vmul.f32 %v622_v57, %v2233_v10  ;;  %v636_v56 = vmul.f32 %v622_v57, %v2236_v63  ;;  %v647_v21 = vmul.f32 %v2225_v6, %v2034_v46 }
  0xbf   :  { %v633_v32 = vmul.f32 %v625_v50, %v2236_v63  ;;  %v635_v51 = vmul.f32 %v625_v50, %v2233_v10  ;;  %v638_v24 = vmul.f32 %v628_v2, %v2233_v10  ;;  %v642_v33 = vmul.f32 %v628_v2, %v2236_v63 }
  0xc0   :  { %v639_v40 = vmul.f32 %v631_v26, %v2236_v63  ;;  %v641_v27 = vmul.f32 %v631_v26, %v2233_v10  ;;  %v646_v49 = vsub.f32 %v644_v53, %v645_v54  ;;  %v648_v15 = vmul.f32 %v2230_v42, %v2098_v12 }
  0xc1   :  { %v2280_v9 = vadd.f32 %v633_v32, %v632_v44  ;;  %v2282_v58 = vsub.f32 %v635_v51, %v636_v56  ;;  %v650_v47 = vmul.f32 %v2230_v42, %v2028_v4  ;;  %v651_v8 = vmul.f32 %v2225_v6, %v2090_v34 }
  0xc2   :  { %v2288_v61 = vsub.f32 %v638_v24, %v639_v40  ;;  %v2290_v37 = vadd.f32 %v642_v33, %v641_v27  ;;  %v649_v38 = vsub.f32 %v647_v21, %v648_v15  ;;  %v653_v0 = vmul.f32 %v2230_v42, %v2034_v46 }
  0xc3   :  { %v652_v1 = vadd.f32 %v651_v8, %v650_v47  ;;  %v654_v57 = vmul.f32 %v2225_v6, %v2098_v12  ;;  %v656_v48 = vmul.f32 %v646_v49, %v2233_v10  ;;  %v660_v62 = vmul.f32 %v646_v49, %v2236_v63 }
  0xc4   :  { %v657_v4 = vmul.f32 %v649_v38, %v2236_v63  ;;  %v659_v34 = vmul.f32 %v649_v38, %v2233_v10  ;;  %v668_v50 = vmul.f32 %v2225_v6, %v2010_v35  ;;  %v669_v2 = vmul.f32 %v2230_v42, %v2074_v3 }
  0xc5   :  { %v655_v53 = vadd.f32 %v654_v57, %v653_v0  ;;  %v662_v46 = vmul.f32 %v652_v1, %v2233_v10  ;;  %v666_v54 = vmul.f32 %v652_v1, %v2236_v63  ;;  %v671_v12 = vmul.f32 %v2225_v6, %v2012_v36 }
  0xc6   :  { %v2308_v26 = vadd.f32 %v657_v4, %v656_v48  ;;  %v2310_v44 = vsub.f32 %v659_v34, %v660_v62  ;;  %v670_v56 = vsub.f32 %v668_v50, %v669_v2  ;;  %v672_v21 = vmul.f32 %v2230_v42, %v2082_v11 }
  0xc7   :  { %v663_v32 = vmul.f32 %v655_v53, %v2236_v63  ;;  %v665_v51 = vmul.f32 %v655_v53, %v2233_v10  ;;  %v674_v24 = vmul.f32 %v2230_v42, %v2010_v35  ;;  %v675_v33 = vmul.f32 %v2225_v6, %v2074_v3 }
  0xc8   :  { %v673_v40 = vsub.f32 %v671_v12, %v672_v21  ;;  %v677_v27 = vmul.f32 %v2230_v42, %v2012_v36  ;;  %v678_v49 = vmul.f32 %v2225_v6, %v2082_v11  ;;  %v680_v15 = vmul.f32 %v670_v56, %v2233_v10 }
  0xc9   :  { %v2325_v47 = vsub.f32 %v662_v46, %v663_v32  ;;  %v2327_v8 = vadd.f32 %v666_v54, %v665_v51  ;;  %v676_v38 = vadd.f32 %v675_v33, %v674_v24  ;;  %v684_v0 = vmul.f32 %v670_v56, %v2236_v63 }
  0xca   :  { %v679_v35 = vadd.f32 %v678_v49, %v677_v27  ;;  %v681_v1 = vmul.f32 %v673_v40, %v2236_v63  ;;  %v683_v3 = vmul.f32 %v673_v40, %v2233_v10  ;;  %v692_v36 = vmul.f32 %v2225_v6, %v2049_v41 }
  0xcb   :  { %v686_v57 = vmul.f32 %v676_v38, %v2233_v10  ;;  %v690_v11 = vmul.f32 %v676_v38, %v2236_v63  ;;  %v693_v48 = vmul.f32 %v2230_v42, %v2106_v59  ;;  %v695_v62 = vmul.f32 %v2225_v6, %v2051_v60 }
  0xcc   :  { %v2340_v4 = vadd.f32 %v681_v1, %v680_v15  ;;  %v2342_v34 = vsub.f32 %v683_v3, %v684_v0  ;;  %v687_v50 = vmul.f32 %v679_v35, %v2236_v63  ;;  %v689_v2 = vmul.f32 %v679_v35, %v2233_v10 }
  0xcd   :  { %v694_v53 = vsub.f32 %v692_v36, %v693_v48  ;;  %v696_v46 = vmul.f32 %v2230_v42, %v2114_v29  ;;  %v698_v54 = vmul.f32 %v2230_v42, %v2049_v41  ;;  %v699_v12 = vmul.f32 %v2225_v6, %v2106_v59 }
  0xce   :  { %v2352_v56 = vsub.f32 %v686_v57, %v687_v50  ;;  %v2354_v21 = vadd.f32 %v690_v11, %v689_v2  ;;  %v701_v32 = vmul.f32 %v2230_v42, %v2051_v60  ;;  %v702_v51 = vmul.f32 %v2225_v6, %v2114_v29 }
  0xcf   :  { %v697_v24 = vsub.f32 %v695_v62, %v696_v46  ;;  %v700_v33 = vadd.f32 %v699_v12, %v698_v54  ;;  %v704_v40 = vmul.f32 %v694_v53, %v2233_v10  ;;  %v708_v27 = vmul.f32 %v694_v53, %v2236_v63 }
  0xd0   :  { %v703_v41 = vadd.f32 %v702_v51, %v701_v32  ;;  %v716_v59 = vmul.f32 %v2225_v6, %v2122_v20  ;;  %v717_v49 = vmul.f32 %v2230_v42, %v2194_v13  ;;  %v719_v15 = vmul.f32 %v2225_v6, %v2130_v39 }
  0xd1   :  { %v705_v60 = vmul.f32 %v697_v24, %v2236_v63  ;;  %v707_v29 = vmul.f32 %v697_v24, %v2233_v10  ;;  %v710_v38 = vmul.f32 %v700_v33, %v2233_v10  ;;  %v714_v0 = vmul.f32 %v700_v33, %v2236_v63 }
  0xd2   :  { %v711_v35 = vmul.f32 %v703_v41, %v2236_v63  ;;  %v713_v1 = vmul.f32 %v703_v41, %v2233_v10  ;;  %v718_v3 = vsub.f32 %v716_v59, %v717_v49  ;;  %v720_v36 = vmul.f32 %v2230_v42, %v2202_v45 }
  0xd3   :  { %v2376_v57 = vadd.f32 %v705_v60, %v704_v40  ;;  %v2378_v11 = vsub.f32 %v707_v29, %v708_v27  ;;  %v722_v48 = vmul.f32 %v2230_v42, %v2122_v20  ;;  %v723_v62 = vmul.f32 %v2225_v6, %v2194_v13 }
  0xd4   :  { %v2384_v50 = vsub.f32 %v710_v38, %v711_v35  ;;  %v2386_v2 = vadd.f32 %v714_v0, %v713_v1  ;;  %v721_v53 = vsub.f32 %v719_v15, %v720_v36  ;;  %v725_v46 = vmul.f32 %v2230_v42, %v2130_v39 }
  0xd5   :  { %v724_v54 = vadd.f32 %v723_v62, %v722_v48  ;;  %v726_v12 = vmul.f32 %v2225_v6, %v2202_v45  ;;  %v728_v32 = vmul.f32 %v718_v3, %v2233_v10  ;;  %v732_v51 = vmul.f32 %v718_v3, %v2236_v63 }
  0xd6   :  { %v729_v20 = vmul.f32 %v721_v53, %v2236_v63  ;;  %v731_v13 = vmul.f32 %v721_v53, %v2233_v10  ;;  %v740_v24 = vmul.f32 %v2225_v6, %v2154_v30  ;;  %v741_v33 = vmul.f32 %v2230_v42, %v2227_v22 }
  0xd7   :  { %v727_v40 = vadd.f32 %v726_v12, %v725_v46  ;;  %v734_v39 = vmul.f32 %v724_v54, %v2233_v10  ;;  %v738_v27 = vmul.f32 %v724_v54, %v2236_v63  ;;  %v743_v45 = vmul.f32 %v2225_v6, %v2162_v25 }
  0xd8   :  { %v2404_v41 = vadd.f32 %v729_v20, %v728_v32  ;;  %v2406_v59 = vsub.f32 %v731_v13, %v732_v51  ;;  %v742_v49 = vsub.f32 %v740_v24, %v741_v33  ;;  %v744_v15 = vmul.f32 %v2230_v42, %v2238_v28 }
  0xd9   :  { %v735_v60 = vmul.f32 %v727_v40, %v2236_v63  ;;  %v737_v29 = vmul.f32 %v727_v40, %v2233_v10  ;;  %v746_v38 = vmul.f32 %v2230_v42, %v2154_v30  ;;  %v747_v0 = vmul.f32 %v2225_v6, %v2227_v22 }
  0xda   :  { %v745_v35 = vsub.f32 %v743_v45, %v744_v15  ;;  %v749_v1 = vmul.f32 %v2230_v42, %v2162_v25  ;;  %v750_v3 = vmul.f32 %v2225_v6, %v2238_v28  ;;  %v752_v36 = vmul.f32 %v742_v49, %v2233_v10 }
  0xdb   :  { %v2421_v48 = vsub.f32 %v734_v39, %v735_v60  ;;  %v2423_v62 = vadd.f32 %v738_v27, %v737_v29  ;;  %v748_v53 = vadd.f32 %v747_v0, %v746_v38  ;;  %v756_v46 = vmul.f32 %v742_v49, %v2236_v63 }
  0xdc   :  { %v751_v30 = vadd.f32 %v750_v3, %v749_v1  ;;  %v753_v54 = vmul.f32 %v745_v35, %v2236_v63  ;;  %v755_v22 = vmul.f32 %v745_v35, %v2233_v10  ;;  %v764_v25 = vmul.f32 %v2225_v6, %v2138_v5 }
  0xdd   :  { %v758_v12 = vmul.f32 %v748_v53, %v2233_v10  ;;  %v762_v28 = vmul.f32 %v748_v53, %v2236_v63  ;;  %v765_v32 = vmul.f32 %v2230_v42, %v2210_v18  ;;  %v767_v51 = vmul.f32 %v2225_v6, %v2146_v7 }
  0xde   :  { %v2436_v20 = vadd.f32 %v753_v54, %v752_v36  ;;  %v2438_v13 = vsub.f32 %v755_v22, %v756_v46  ;;  %v759_v24 = vmul.f32 %v751_v30, %v2236_v63  ;;  %v761_v33 = vmul.f32 %v751_v30, %v2233_v10 }
  0xdf   :  { %v766_v40 = vsub.f32 %v764_v25, %v765_v32  ;;  %v768_v39 = vmul.f32 %v2230_v42, %v2218_v52  ;;  %v770_v27 = vmul.f32 %v2230_v42, %v2138_v5  ;;  %v771_v45 = vmul.f32 %v2225_v6, %v2210_v18 }
  0xe0   :  { %v2450_v49 = vsub.f32 %v758_v12, %v759_v24  ;;  %v2452_v15 = vadd.f32 %v762_v28, %v761_v33  ;;  %v773_v60 = vmul.f32 %v2230_v42, %v2146_v7  ;;  %v774_v29 = vmul.f32 %v2225_v6, %v2218_v52 }
  0xe1   :  { %v769_v38 = vsub.f32 %v767_v51, %v768_v39  ;;  %v772_v0 = vadd.f32 %v771_v45, %v770_v27  ;;  %v776_v5 = vmul.f32 %v766_v40, %v2233_v10  ;;  %v780_v18 = vmul.f32 %v766_v40, %v2236_v63 }
  0xe2   :  { %v775_v35 = vadd.f32 %v774_v29, %v773_v60  ;;  %v788_v1 = vmul.f32 %v2225_v6, %v2174_v31  ;;  %v789_v7 = vmul.f32 %v2230_v42, %v2250_v55  ;;  %v791_v52 = vmul.f32 %v2225_v6, %v2184_v43 }
  0xe3   :  { %v777_v3 = vmul.f32 %v769_v38, %v2236_v63  ;;  %v779_v36 = vmul.f32 %v769_v38, %v2233_v10  ;;  %v782_v53 = vmul.f32 %v772_v0, %v2233_v10  ;;  %v786_v46 = vmul.f32 %v772_v0, %v2236_v63 }
  0xe4   :  { %v783_v30 = vmul.f32 %v775_v35, %v2236_v63  ;;  %v785_v54 = vmul.f32 %v775_v35, %v2233_v10  ;;  %v790_v22 = vsub.f32 %v788_v1, %v789_v7  ;;  %v792_v25 = vmul.f32 %v2230_v42, %v2258_v23 }
  0xe5   :  { %v2480_v12 = vadd.f32 %v777_v3, %v776_v5  ;;  %v2482_v28 = vsub.f32 %v779_v36, %v780_v18  ;;  %v794_v32 = vmul.f32 %v2230_v42, %v2174_v31  ;;  %v795_v51 = vmul.f32 %v2225_v6, %v2250_v55 }
  0xe6   :  { %v2488_v24 = vsub.f32 %v782_v53, %v783_v30  ;;  %v2490_v33 = vadd.f32 %v786_v46, %v785_v54  ;;  %v793_v40 = vsub.f32 %v791_v52, %v792_v25  ;;  %v797_v39 = vmul.f32 %v2230_v42, %v2184_v43 }
  0xe7   :  { %v796_v27 = vadd.f32 %v795_v51, %v794_v32  ;;  %v798_v45 = vmul.f32 %v2225_v6, %v2258_v23  ;;  %v800_v60 = vmul.f32 %v790_v22, %v2233_v10  ;;  %v804_v31 = vmul.f32 %v790_v22, %v2236_v63 }
  0xe8   :  { %v801_v55 = vmul.f32 %v793_v40, %v2236_v63  ;;  %v803_v29 = vmul.f32 %v793_v40, %v2233_v10  ;;  %v2501_v38 = vstv %s2448_s6  ;;  %v2504_v0 = vstv %s2458_s7 }
  0xe9   :  { %v799_v5 = vadd.f32 %v798_v45, %v797_v39  ;;  %v806_v18 = vmul.f32 %v796_v27, %v2233_v10  ;;  %v810_v43 = vmul.f32 %v796_v27, %v2236_v63  ;;  %v2509_v42 = vstv %s2462_s8 }
  0xea   :  { %v2511_v6 = vadd.f32 %v801_v55, %v800_v60  ;;  %v2513_v23 = vsub.f32 %v803_v29, %v804_v31  ;;  %v2516_v35 = vstv %s2470_s9  ;;  %v820_v1 = vmul.f32 %v2501_v38, %v2280_v9 }
  0xeb   :  { %v807_v7 = vmul.f32 %v799_v5, %v2236_v63  ;;  %v809_v52 = vmul.f32 %v799_v5, %v2233_v10  ;;  %v821_v3 = vmul.f32 %v2504_v0, %v2308_v26  ;;  %v823_v36 = vmul.f32 %v2501_v38, %v2282_v58 }
  0xec   :  { %v824_v53 = vmul.f32 %v2504_v0, %v2310_v44  ;;  %v826_v46 = vmul.f32 %v2504_v0, %v2280_v9  ;;  %v827_v30 = vmul.f32 %v2501_v38, %v2308_v26  ;;  %v829_v63 = vmul.f32 %v2504_v0, %v2282_v58 }
  0xed   :  { %v2534_v54 = vsub.f32 %v806_v18, %v807_v7  ;;  %v2536_v10 = vadd.f32 %v810_v43, %v809_v52  ;;  %v822_v22 = vsub.f32 %v820_v1, %v821_v3  ;;  %v830_v25 = vmul.f32 %v2501_v38, %v2310_v44 }
  0xee   :  { %v825_v32 = vsub.f32 %v823_v36, %v824_v53  ;;  %v828_v51 = vadd.f32 %v827_v30, %v826_v46  ;;  %v844_v40 = vmul.f32 %v2501_v38, %v2288_v61  ;;  %v845_v9 = vmul.f32 %v2504_v0, %v2325_v47 }
  0xef   :  { %v831_v26 = vadd.f32 %v830_v25, %v829_v63  ;;  %v832_v39 = vmul.f32 %v822_v22, %v2509_v42  ;;  %v836_v58 = vmul.f32 %v822_v22, %v2516_v35  ;;  %v847_v27 = vmul.f32 %v2501_v38, %v2290_v37 }
  0xf0   :  { %v833_v45 = vmul.f32 %v825_v32, %v2516_v35  ;;  %v835_v44 = vmul.f32 %v825_v32, %v2509_v42  ;;  %v838_v60 = vmul.f32 %v828_v51, %v2509_v42  ;;  %v842_v31 = vmul.f32 %v828_v51, %v2516_v35 }
  0xf1   :  { %v839_v55 = vmul.f32 %v831_v26, %v2516_v35  ;;  %v841_v29 = vmul.f32 %v831_v26, %v2509_v42  ;;  %v846_v5 = vsub.f32 %v844_v40, %v845_v9  ;;  %v848_v18 = vmul.f32 %v2504_v0, %v2327_v8 }
  0xf2   :  { %v2556_v43 = vadd.f32 %v833_v45, %v832_v39  ;;  %v2558_v1 = vsub.f32 %v835_v44, %v836_v58  ;;  %v850_v7 = vmul.f32 %v2504_v0, %v2288_v61  ;;  %v851_v52 = vmul.f32 %v2501_v38, %v2325_v47 }
  0xf3   :  { %v2564_v3 = vsub.f32 %v838_v60, %v839_v55  ;;  %v2566_v36 = vadd.f32 %v842_v31, %v841_v29  ;;  %v849_v53 = vsub.f32 %v847_v27, %v848_v18  ;;  %v853_v46 = vmul.f32 %v2504_v0, %v2290_v37 }
  0xf4   :  { %v852_v30 = vadd.f32 %v851_v52, %v850_v7  ;;  %v854_v63 = vmul.f32 %v2501_v38, %v2327_v8  ;;  %v856_v22 = vmul.f32 %v846_v5, %v2509_v42  ;;  %v860_v25 = vmul.f32 %v846_v5, %v2516_v35 }
  0xf5   :  { %v857_v61 = vmul.f32 %v849_v53, %v2516_v35  ;;  %v859_v47 = vmul.f32 %v849_v53, %v2509_v42  ;;  %v868_v32 = vmul.f32 %v2501_v38, %v2340_v4  ;;  %v869_v51 = vmul.f32 %v2504_v0, %v2376_v57 }
  0xf6   :  { %v855_v40 = vadd.f32 %v854_v63, %v853_v46  ;;  %v2581_v37 = vmul.f32 %v852_v30, %v2509_v42  ;;  %v866_v8 = vmul.f32 %v852_v30, %v2516_v35  ;;  %v871_v9 = vmul.f32 %v2501_v38, %v2342_v34 }
  0xf7   :  { %v2586_v26 = vadd.f32 %v857_v61, %v856_v22  ;;  %v2588_v39 = vsub.f32 %v859_v47, %v860_v25  ;;  %v870_v58 = vsub.f32 %v868_v32, %v869_v51  ;;  %v872_v27 = vmul.f32 %v2504_v0, %v2378_v11 }
  0xf8   :  { %v2593_v45 = vmul.f32 %v855_v40, %v2516_v35  ;;  %v865_v44 = vmul.f32 %v855_v40, %v2509_v42  ;;  %v874_v60 = vmul.f32 %v2504_v0, %v2340_v4  ;;  %v875_v31 = vmul.f32 %v2501_v38, %v2376_v57 }
  0xf9   :  { %v873_v55 = vsub.f32 %v871_v9, %v872_v27  ;;  %v877_v29 = vmul.f32 %v2504_v0, %v2342_v34  ;;  %v878_v5 = vmul.f32 %v2501_v38, %v2378_v11  ;;  %v880_v18 = vmul.f32 %v870_v58, %v2509_v42 }
  0xfa   :  { %v864_v7 = vsub.f32 %v2581_v37, %v2593_v45  ;;  %v2607_v52 = vadd.f32 %v866_v8, %v865_v44  ;;  %v876_v53 = vadd.f32 %v875_v31, %v874_v60  ;;  %v884_v4 = vmul.f32 %v870_v58, %v2516_v35 }
  0xfb   :  { %v879_v46 = vadd.f32 %v878_v5, %v877_v29  ;;  %v881_v57 = vmul.f32 %v873_v55, %v2516_v35  ;;  %v883_v30 = vmul.f32 %v873_v55, %v2509_v42  ;;  %v892_v34 = vmul.f32 %v2501_v38, %v2352_v56 }
  0xfc   :  { %v886_v11 = vmul.f32 %v876_v53, %v2509_v42  ;;  %v890_v63 = vmul.f32 %v876_v53, %v2516_v35  ;;  %v893_v22 = vmul.f32 %v2504_v0, %v2384_v50  ;;  %v895_v25 = vmul.f32 %v2501_v38, %v2354_v21 }
  0xfd   :  { %v2620_v61 = vadd.f32 %v881_v57, %v880_v18  ;;  %v2622_v47 = vsub.f32 %v883_v30, %v884_v4  ;;  %v887_v32 = vmul.f32 %v879_v46, %v2516_v35  ;;  %v889_v51 = vmul.f32 %v879_v46, %v2509_v42 }
  0xfe   :  { %v894_v40 = vsub.f32 %v892_v34, %v893_v22  ;;  %v896_v8 = vmul.f32 %v2504_v0, %v2386_v2  ;;  %v898_v9 = vmul.f32 %v2504_v0, %v2352_v56  ;;  %v899_v58 = vmul.f32 %v2501_v38, %v2384_v50 }
  0xff   :  { %v2632_v27 = vsub.f32 %v886_v11, %v887_v32  ;;  %v2634_v44 = vadd.f32 %v890_v63, %v889_v51  ;;  %v901_v60 = vmul.f32 %v2504_v0, %v2354_v21  ;;  %v902_v31 = vmul.f32 %v2501_v38, %v2386_v2 }
 0x100   :  { %v897_v55 = vsub.f32 %v895_v25, %v896_v8  ;;  %v900_v29 = vadd.f32 %v899_v58, %v898_v9  ;;  %v904_v5 = vmul.f32 %v894_v40, %v2509_v42  ;;  %v2642_v18 = vmul.f32 %v894_v40, %v2516_v35 }
 0x101   :  { %v903_v56 = vadd.f32 %v902_v31, %v901_v60  ;;  %v916_v50 = vmul.f32 %v2501_v38, %v2404_v41  ;;  %v917_v53 = vmul.f32 %v2504_v0, %v2436_v20  ;;  %v919_v21 = vmul.f32 %v2501_v38, %v2406_v59 }
 0x102   :  { %v905_v4 = vmul.f32 %v897_v55, %v2516_v35  ;;  %v2652_v2 = vmul.f32 %v897_v55, %v2509_v42  ;;  %v910_v46 = vmul.f32 %v900_v29, %v2509_v42  ;;  %v914_v57 = vmul.f32 %v900_v29, %v2516_v35 }
 0x103   :  { %v911_v30 = vmul.f32 %v903_v56, %v2516_v35  ;;  %v913_v34 = vmul.f32 %v903_v56, %v2509_v42  ;;  %v918_v11 = vsub.f32 %v916_v50, %v917_v53  ;;  %v920_v63 = vmul.f32 %v2504_v0, %v2438_v13 }
 0x104   :  { %v2660_v22 = vadd.f32 %v905_v4, %v904_v5  ;;  %v909_v25 = vsub.f32 %v2652_v2, %v2642_v18  ;;  %v922_v32 = vmul.f32 %v2504_v0, %v2404_v41  ;;  %v923_v51 = vmul.f32 %v2501_v38, %v2436_v20 }
 0x105   :  { %v2668_v40 = vsub.f32 %v910_v46, %v911_v30  ;;  %v2670_v8 = vadd.f32 %v914_v57, %v913_v34  ;;  %v921_v9 = vsub.f32 %v919_v21, %v920_v63  ;;  %v925_v58 = vmul.f32 %v2504_v0, %v2406_v59 }
 0x106   :  { %v924_v60 = vadd.f32 %v923_v51, %v922_v32  ;;  %v926_v31 = vmul.f32 %v2501_v38, %v2438_v13  ;;  %v928_v55 = vmul.f32 %v918_v11, %v2509_v42  ;;  %v932_v29 = vmul.f32 %v918_v11, %v2516_v35 }
 0x107   :  { %v929_v41 = vmul.f32 %v921_v9, %v2516_v35  ;;  %v931_v20 = vmul.f32 %v921_v9, %v2509_v42  ;;  %v940_v5 = vmul.f32 %v2501_v38, %v2421_v48  ;;  %v941_v56 = vmul.f32 %v2504_v0, %v2450_v49 }
 0x108   :  { %v927_v50 = vadd.f32 %v926_v31, %v925_v58  ;;  %v2685_v59 = vmul.f32 %v924_v60, %v2509_v42  ;;  %v938_v13 = vmul.f32 %v924_v60, %v2516_v35  ;;  %v943_v53 = vmul.f32 %v2501_v38, %v2423_v62 }
 0x109   :  { %v2690_v21 = vadd.f32 %v929_v41, %v928_v55  ;;  %v2692_v4 = vsub.f32 %v931_v20, %v932_v29  ;;  %v942_v46 = vsub.f32 %v940_v5, %v941_v56  ;;  %v944_v57 = vmul.f32 %v2504_v0, %v2452_v15 }
 0x10a   :  { %v2697_v30 = vmul.f32 %v927_v50, %v2516_v35  ;;  %v937_v34 = vmul.f32 %v927_v50, %v2509_v42  ;;  %v946_v11 = vmul.f32 %v2504_v0, %v2421_v48  ;;  %v947_v63 = vmul.f32 %v2501_v38, %v2450_v49 }
 0x10b   :  { %v945_v32 = vsub.f32 %v943_v53, %v944_v57  ;;  %v949_v51 = vmul.f32 %v2504_v0, %v2423_v62  ;;  %v950_v9 = vmul.f32 %v2501_v38, %v2452_v15  ;;  %v952_v58 = vmul.f32 %v942_v46, %v2509_v42 }
 0x10c   :  { %v936_v60 = vsub.f32 %v2685_v59, %v2697_v30  ;;  %v2711_v31 = vadd.f32 %v938_v13, %v937_v34  ;;  %v948_v55 = vadd.f32 %v947_v63, %v946_v11  ;;  %v956_v48 = vmul.f32 %v942_v46, %v2516_v35 }
 0x10d   :  { %v951_v29 = vadd.f32 %v950_v9, %v949_v51  ;;  %v953_v49 = vmul.f32 %v945_v32, %v2516_v35  ;;  %v955_v41 = vmul.f32 %v945_v32, %v2509_v42  ;;  %v964_v62 = vmul.f32 %v2501_v38, %v2480_v12 }
 0x10e   :  { %v958_v15 = vmul.f32 %v948_v55, %v2509_v42  ;;  %v962_v20 = vmul.f32 %v948_v55, %v2516_v35  ;;  %v965_v5 = vmul.f32 %v2504_v0, %v2511_v6  ;;  %v967_v56 = vmul.f32 %v2501_v38, %v2482_v28 }
 0x10f   :  { %v2724_v50 = vadd.f32 %v953_v49, %v952_v58  ;;  %v2726_v59 = vsub.f32 %v955_v41, %v956_v48  ;;  %v959_v13 = vmul.f32 %v951_v29, %v2516_v35  ;;  %v961_v53 = vmul.f32 %v951_v29, %v2509_v42 }
 0x110   :  { %v966_v46 = vsub.f32 %v964_v62, %v965_v5  ;;  %v968_v57 = vmul.f32 %v2504_v0, %v2513_v23  ;;  %v970_v30 = vmul.f32 %v2504_v0, %v2480_v12  ;;  %v971_v34 = vmul.f32 %v2501_v38, %v2511_v6 }
 0x111   :  { %v2736_v11 = vsub.f32 %v958_v15, %v959_v13  ;;  %v2738_v63 = vadd.f32 %v962_v20, %v961_v53  ;;  %v973_v32 = vmul.f32 %v2504_v0, %v2482_v28  ;;  %v974_v51 = vmul.f32 %v2501_v38, %v2513_v23 }
 0x112   :  { %v969_v9 = vsub.f32 %v967_v56, %v968_v57  ;;  %v972_v58 = vadd.f32 %v971_v34, %v970_v30  ;;  %v976_v55 = vmul.f32 %v966_v46, %v2509_v42  ;;  %v980_v48 = vmul.f32 %v966_v46, %v2516_v35 }
 0x113   :  { %v975_v12 = vadd.f32 %v974_v51, %v973_v32  ;;  %v988_v6 = vmul.f32 %v2501_v38, %v2488_v24  ;;  %v989_v29 = vmul.f32 %v2504_v0, %v2534_v54  ;;  %v991_v49 = vmul.f32 %v2501_v38, %v2490_v33 }
 0x114   :  { %v977_v28 = vmul.f32 %v969_v9, %v2516_v35  ;;  %v979_v23 = vmul.f32 %v969_v9, %v2509_v42  ;;  %v982_v41 = vmul.f32 %v972_v58, %v2509_v42  ;;  %v986_v62 = vmul.f32 %v972_v58, %v2516_v35 }
 0x115   :  { %v983_v15 = vmul.f32 %v975_v12, %v2516_v35  ;;  %v985_v20 = vmul.f32 %v975_v12, %v2509_v42  ;;  %v990_v5 = vsub.f32 %v988_v6, %v989_v29  ;;  %v992_v56 = vmul.f32 %v2504_v0, %v2536_v10 }
 0x116   :  { %v2760_v13 = vadd.f32 %v977_v28, %v976_v55  ;;  %v981_v53 = vsub.f32 %v979_v23, %v980_v48  ;;  %v994_v46 = vmul.f32 %v2504_v0, %v2488_v24  ;;  %v995_v57 = vmul.f32 %v2501_v38, %v2534_v54 }
 0x117   :  { %v2766_v30 = vsub.f32 %v982_v41, %v983_v15  ;;  %v2768_v34 = vadd.f32 %v986_v62, %v985_v20  ;;  %v993_v32 = vsub.f32 %v991_v49, %v992_v56  ;;  %v997_v51 = vmul.f32 %v2504_v0, %v2490_v33 }
 0x118   :  { %v996_v9 = vadd.f32 %v995_v57, %v994_v46  ;;  %v998_v58 = vmul.f32 %v2501_v38, %v2536_v10  ;;  %v1000_v55 = vmul.f32 %v990_v5, %v2509_v42  ;;  %v1004_v48 = vmul.f32 %v990_v5, %v2516_v35 }
 0x119   :  { %v1001_v24 = vmul.f32 %v993_v32, %v2516_v35  ;;  %v1003_v54 = vmul.f32 %v993_v32, %v2509_v42  ;;  %v1012_v12 = vsub.f32 0.0, %v864_v7  ;;  %v1013_v6 = vsub.f32 0.0, %v2607_v52 }
 0x11a   :  { %v999_v29 = vadd.f32 %v998_v58, %v997_v51  ;;  %v1006_v33 = vmul.f32 %v996_v9, %v2509_v42  ;;  %v1010_v0 = vmul.f32 %v996_v9, %v2516_v35  ;;  %v1014_v38 = vsub.f32 0.0, %v2660_v22 }
 0x11b   :  { %v2785_v10 = vadd.f32 %v1001_v24, %v1000_v55  ;;  %v2787_v49 = vsub.f32 %v1003_v54, %v1004_v48  ;;  %v2792_v28 = vsub.f32 0.0, %v909_v25  ;;  %v1016_v37 = vsub.f32 0.0, %v936_v60 }
 0x11c   :  { %v1007_v45 = vmul.f32 %v999_v29, %v2516_v35  ;;  %v1009_v7 = vmul.f32 %v999_v29, %v2509_v42  ;;  %v1017_v52 = vsub.f32 0.0, %v2711_v31  ;;  %v1018_v23 = vsub.f32 0.0, %v2760_v13 }
 0x11d   :  { %v1019_v41 = vsub.f32 0.0, %v981_v53  ;;  %v1020_v62 = vmul.f32 %v2556_v43, %v1722_v14  ;;  %v1021_v15 = vmul.f32 %v2692_v4, %v1726_v16  ;;  %v1023_v18 = vmul.f32 %v2558_v1, %v1722_v14 }
 0x11e   :  { %v2804_v2 = vsub.f32 %v1006_v33, %v1007_v45  ;;  %v2806_v25 = vadd.f32 %v1010_v0, %v1009_v7  ;;  %v1024_v42 = vmul.f32 %v2690_v21, %v1726_v16  ;;  %v1026_v35 = vmul.f32 %v2690_v21, %v1722_v14 }
 0x11f   :  { %v2812_v60 = vadd.f32 %v1021_v15, %v1020_v62  ;;  %v1027_v31 = vmul.f32 %v2558_v1, %v1726_v16  ;;  %v1029_v20 = vmul.f32 %v2692_v4, %v1722_v14  ;;  %v1030_v5 = vmul.f32 %v2556_v43, %v1726_v16 }
 0x120   :  { %v2820_v56 = vsub.f32 %v1023_v18, %v1024_v42  ;;  %v1032_v13 = vmul.f32 %v2564_v3, %v1722_v14  ;;  %v1033_v53 = vmul.f32 %v1017_v52, %v1726_v16  ;;  %v1035_v21 = vmul.f32 %v2566_v36, %v1722_v14 }
 0x121   :  { %v2827_v46 = vadd.f32 %v1027_v31, %v1026_v35  ;;  %v2829_v57 = vsub.f32 %v1029_v20, %v1030_v5  ;;  %v1036_v1 = vmul.f32 %v1016_v37, %v1726_v16  ;;  %v1038_v4 = vmul.f32 %v1016_v37, %v1722_v14 }
 0x122   :  { %v2833_v32 = vadd.f32 %v1033_v53, %v1032_v13  ;;  %v1039_v43 = vmul.f32 %v2566_v36, %v1726_v16  ;;  %v1041_v51 = vmul.f32 %v1017_v52, %v1722_v14  ;;  %v1042_v9 = vmul.f32 %v2564_v3, %v1726_v16 }
 0x123   :  { %v2840_v58 = vsub.f32 %v1035_v21, %v1036_v1  ;;  %v1044_v55 = vmul.f32 %v2586_v26, %v1722_v14  ;;  %v1045_v48 = vmul.f32 %v2726_v59, %v1726_v16  ;;  %v1047_v24 = vmul.f32 %v2588_v39, %v1722_v14 }
 0x124   :  { %v2848_v54 = vadd.f32 %v1039_v43, %v1038_v4  ;;  %v2850_v29 = vsub.f32 %v1041_v51, %v1042_v9  ;;  %v1048_v36 = vmul.f32 %v2724_v50, %v1726_v16  ;;  %v1050_v3 = vmul.f32 %v2724_v50, %v1722_v14 }
 0x125   :  { %v2856_v33 = vadd.f32 %v1045_v48, %v1044_v55  ;;  %v1051_v0 = vmul.f32 %v2588_v39, %v1726_v16  ;;  %v1053_v37 = vmul.f32 %v2726_v59, %v1722_v14  ;;  %v1054_v45 = vmul.f32 %v2586_v26, %v1726_v16 }
 0x126   :  { %v2864_v7 = vsub.f32 %v1047_v24, %v1048_v36  ;;  %v1056_v52 = vmul.f32 %v1012_v12, %v1722_v14  ;;  %v1057_v62 = vmul.f32 %v2738_v63, %v1726_v16  ;;  %v1059_v50 = vmul.f32 %v1013_v6, %v1722_v14 }
 0x127   :  { %v2870_v15 = vadd.f32 %v1051_v0, %v1050_v3  ;;  %v2872_v18 = vsub.f32 %v1053_v37, %v1054_v45  ;;  %v1060_v39 = vmul.f32 %v2736_v11, %v1726_v16  ;;  %v1062_v59 = vmul.f32 %v2736_v11, %v1722_v14 }
 0x128   :  { %v2878_v26 = vadd.f32 %v1057_v62, %v1056_v52  ;;  %v1063_v42 = vmul.f32 %v1013_v6, %v1726_v16  ;;  %v1065_v35 = vmul.f32 %v2738_v63, %v1722_v14  ;;  %v1066_v31 = vmul.f32 %v1012_v12, %v1726_v16 }
 0x129   :  { %v2884_v20 = vsub.f32 %v1059_v50, %v1060_v39  ;;  %v1068_v5 = vmul.f32 %v2620_v61, %v1722_v14  ;;  %v1069_v13 = vmul.f32 %v1019_v41, %v1726_v16  ;;  %v1071_v53 = vmul.f32 %v2622_v47, %v1722_v14 }
 0x12a   :  { %v2891_v11 = vadd.f32 %v1063_v42, %v1062_v59  ;;  %v2893_v21 = vsub.f32 %v1065_v35, %v1066_v31  ;;  %v1072_v6 = vmul.f32 %v1018_v23, %v1726_v16  ;;  %v1074_v63 = vmul.f32 %v1018_v23, %v1722_v14 }
 0x12b   :  { %v1070_v1 = vadd.f32 %v1069_v13, %v1068_v5  ;;  %v1075_v12 = vmul.f32 %v2622_v47, %v1726_v16  ;;  %v1077_v4 = vmul.f32 %v1019_v41, %v1722_v14  ;;  %v1078_v43 = vmul.f32 %v2620_v61, %v1726_v16 }
 0x12c   :  { %v1073_v51 = vsub.f32 %v1071_v53, %v1072_v6  ;;  %v1080_v9 = vmul.f32 %v2632_v27, %v1722_v14  ;;  %v1081_v55 = vmul.f32 %v2768_v34, %v1726_v16  ;;  %v1083_v48 = vmul.f32 %v2634_v44, %v1722_v14 }
 0x12d   :  { %v2908_v23 = vadd.f32 %v1075_v12, %v1074_v63  ;;  %v2910_v24 = vsub.f32 %v1077_v4, %v1078_v43  ;;  %v1084_v47 = vmul.f32 %v2766_v30, %v1726_v16  ;;  %v1086_v61 = vmul.f32 %v2766_v30, %v1722_v14 }
 0x12e   :  { %v1082_v41 = vadd.f32 %v1081_v55, %v1080_v9  ;;  %v1087_v36 = vmul.f32 %v2634_v44, %v1726_v16  ;;  %v1089_v3 = vmul.f32 %v2768_v34, %v1722_v14  ;;  %v1090_v0 = vmul.f32 %v2632_v27, %v1726_v16 }
 0x12f   :  { %v1085_v37 = vsub.f32 %v1083_v48, %v1084_v47  ;;  %v1092_v45 = vmul.f32 %v1014_v38, %v1722_v14  ;;  %v1093_v52 = vmul.f32 %v2787_v49, %v1726_v16  ;;  %v1095_v30 = vmul.f32 %v2792_v28, %v1722_v14 }
 0x130   :  { %v2929_v62 = vadd.f32 %v1087_v36, %v1086_v61  ;;  %v2931_v44 = vsub.f32 %v1089_v3, %v1090_v0  ;;  %v1096_v34 = vmul.f32 %v2785_v10, %v1726_v16  ;;  %v1098_v27 = vmul.f32 %v2785_v10, %v1722_v14 }
 0x131   :  { %v1094_v50 = vadd.f32 %v1093_v52, %v1092_v45  ;;  %v1099_v39 = vmul.f32 %v2792_v28, %v1726_v16  ;;  %v1101_v59 = vmul.f32 %v2787_v49, %v1722_v14  ;;  %v1102_v42 = vmul.f32 %v1014_v38, %v1726_v16 }
 0x132   :  { %v1097_v35 = vsub.f32 %v1095_v30, %v1096_v34  ;;  %v1104_v31 = vmul.f32 %v2668_v40, %v1722_v14  ;;  %v1105_v5 = vmul.f32 %v2806_v25, %v1726_v16  ;;  %v1107_v10 = vmul.f32 %v2670_v8, %v1722_v14 }
 0x133   :  { %v2950_v13 = vadd.f32 %v1099_v39, %v1098_v27  ;;  %v2952_v28 = vsub.f32 %v1101_v59, %v1102_v42  ;;  %v1108_v49 = vmul.f32 %v2804_v2, %v1726_v16  ;;  %v1110_v22 = vmul.f32 %v2804_v2, %v1722_v14 }
 0x134   :  { %v1106_v38 = vadd.f32 %v1105_v5, %v1104_v31  ;;  %v1111_v53 = vmul.f32 %v2670_v8, %v1726_v16  ;;  %v1113_v6 = vmul.f32 %v2806_v25, %v1722_v14  ;;  %v1114_v63 = vmul.f32 %v2668_v40, %v1726_v16 }
 0x135   :  { %v1109_v12 = vsub.f32 %v1107_v10, %v1108_v49  ;;  %v1116_v4 = vmul.f32 %v2812_v60, %v1728_v17  ;;  %v1117_v43 = vmul.f32 %v1073_v51, %v1732_v19  ;;  %v1119_v9 = vmul.f32 %v2820_v56, %v1728_v17 }
 0x136   :  { %v2969_v2 = vadd.f32 %v1111_v53, %v1110_v22  ;;  %v2971_v55 = vsub.f32 %v1113_v6, %v1114_v63  ;;  %v1120_v8 = vmul.f32 %v1070_v1, %v1732_v19  ;;  %v1122_v14 = vmul.f32 %v1070_v1, %v1728_v17 }
 0x137   :  { %v2975_v25 = vadd.f32 %v1117_v43, %v1116_v4  ;;  %v1123_v16 = vmul.f32 %v2820_v56, %v1732_v19  ;;  %v1125_v40 = vmul.f32 %v1073_v51, %v1728_v17  ;;  %v1126_v48 = vmul.f32 %v2812_v60, %v1732_v19 }
 0x138   :  { %v2982_v47 = vsub.f32 %v1119_v9, %v1120_v8  ;;  %v1128_v61 = vmul.f32 %v2833_v32, %v1728_v17  ;;  %v1129_v36 = vmul.f32 %v1085_v37, %v1732_v19  ;;  %v1131_v1 = vmul.f32 %v2840_v58, %v1728_v17 }
 0x139   :  { %v2989_v3 = vadd.f32 %v1123_v16, %v1122_v14  ;;  %v2991_v0 = vsub.f32 %v1125_v40, %v1126_v48  ;;  %v1132_v56 = vmul.f32 %v1082_v41, %v1732_v19  ;;  %v1134_v51 = vmul.f32 %v1082_v41, %v1728_v17 }
 0x13a   :  { %v2995_v45 = vadd.f32 %v1129_v36, %v1128_v61  ;;  %v1135_v60 = vmul.f32 %v2840_v58, %v1732_v19  ;;  %v1137_v52 = vmul.f32 %v1085_v37, %v1728_v17  ;;  %v1138_v30 = vmul.f32 %v2833_v32, %v1732_v19 }
 0x13b   :  { %v3002_v34 = vsub.f32 %v1131_v1, %v1132_v56  ;;  %v1140_v27 = vmul.f32 %v2856_v33, %v1728_v17  ;;  %v1141_v39 = vmul.f32 %v1097_v35, %v1732_v19  ;;  %v1143_v41 = vmul.f32 %v2864_v7, %v1728_v17 }
 0x13c   :  { %v3009_v59 = vadd.f32 %v1135_v60, %v1134_v51  ;;  %v3011_v42 = vsub.f32 %v1137_v52, %v1138_v30  ;;  %v1144_v58 = vmul.f32 %v1094_v50, %v1732_v19  ;;  %v1146_v37 = vmul.f32 %v1094_v50, %v1728_v17 }
 0x13d   :  { %v3015_v31 = vadd.f32 %v1141_v39, %v1140_v27  ;;  %v1147_v32 = vmul.f32 %v2864_v7, %v1732_v19  ;;  %v1149_v5 = vmul.f32 %v1097_v35, %v1728_v17  ;;  %v1150_v10 = vmul.f32 %v2856_v33, %v1732_v19 }
 0x13e   :  { %v3022_v49 = vsub.f32 %v1143_v41, %v1144_v58  ;;  %v1152_v22 = vmul.f32 %v2878_v26, %v1728_v17  ;;  %v1153_v53 = vmul.f32 %v1109_v12, %v1732_v19  ;;  %v1155_v50 = vmul.f32 %v2884_v20, %v1728_v17 }
 0x13f   :  { %v3029_v6 = vadd.f32 %v1147_v32, %v1146_v37  ;;  %v3031_v63 = vsub.f32 %v1149_v5, %v1150_v10  ;;  %v1156_v7 = vmul.f32 %v1106_v38, %v1732_v19  ;;  %v1158_v35 = vmul.f32 %v1106_v38, %v1728_v17 }
 0x140   :  { %v3035_v4 = vadd.f32 %v1153_v53, %v1152_v22  ;;  %v1159_v33 = vmul.f32 %v2884_v20, %v1732_v19  ;;  %v1161_v43 = vmul.f32 %v1109_v12, %v1728_v17  ;;  %v1162_v9 = vmul.f32 %v2878_v26, %v1732_v19 }
 0x141   :  { %v3042_v8 = vsub.f32 %v1155_v50, %v1156_v7  ;;  %v1164_v14 = vmul.f32 %v2827_v46, %v1728_v17  ;;  %v1165_v16 = vmul.f32 %v2910_v24, %v1732_v19  ;;  %v1167_v38 = vmul.f32 %v2829_v57, %v1728_v17 }
 0x142   :  { %v3050_v40 = vadd.f32 %v1159_v33, %v1158_v35  ;;  %v3052_v48 = vsub.f32 %v1161_v43, %v1162_v9  ;;  %v1168_v20 = vmul.f32 %v2908_v23, %v1732_v19  ;;  %v1170_v26 = vmul.f32 %v2908_v23, %v1728_v17 }
 0x143   :  { %v1166_v12 = vadd.f32 %v1165_v16, %v1164_v14  ;;  %v1171_v61 = vmul.f32 %v2829_v57, %v1732_v19  ;;  %v1173_v36 = vmul.f32 %v2910_v24, %v1728_v17  ;;  %v1174_v1 = vmul.f32 %v2827_v46, %v1732_v19 }
 0x144   :  { %v1169_v56 = vsub.f32 %v1167_v38, %v1168_v20  ;;  %v1176_v51 = vmul.f32 %v2848_v54, %v1728_v17  ;;  %v1177_v60 = vmul.f32 %v2931_v44, %v1732_v19  ;;  %v1179_v23 = vmul.f32 %v2850_v29, %v1728_v17 }
 0x145   :  { %v3074_v57 = vadd.f32 %v1171_v61, %v1170_v26  ;;  %v3076_v24 = vsub.f32 %v1173_v36, %v1174_v1  ;;  %v1180_v46 = vmul.f32 %v2929_v62, %v1732_v19  ;;  %v1182_v52 = vmul.f32 %v2929_v62, %v1728_v17 }
 0x146   :  { %v1178_v30 = vadd.f32 %v1177_v60, %v1176_v51  ;;  %v1183_v27 = vmul.f32 %v2850_v29, %v1732_v19  ;;  %v1185_v39 = vmul.f32 %v2931_v44, %v1728_v17  ;;  %v1186_v41 = vmul.f32 %v2848_v54, %v1732_v19 }
 0x147   :  { %v1181_v58 = vsub.f32 %v1179_v23, %v1180_v46  ;;  %v1188_v37 = vmul.f32 %v2870_v15, %v1728_v17  ;;  %v1189_v32 = vmul.f32 %v2952_v28, %v1732_v19  ;;  %v1191_v62 = vmul.f32 %v2872_v18, %v1728_v17 }
 0x148   :  { %v3096_v5 = vadd.f32 %v1183_v27, %v1182_v52  ;;  %v3098_v10 = vsub.f32 %v1185_v39, %v1186_v41  ;;  %v1192_v29 = vmul.f32 %v2950_v13, %v1732_v19  ;;  %v1194_v54 = vmul.f32 %v2950_v13, %v1728_v17 }
 0x149   :  { %v1190_v44 = vadd.f32 %v1189_v32, %v1188_v37  ;;  %v1195_v22 = vmul.f32 %v2872_v18, %v1732_v19  ;;  %v1197_v53 = vmul.f32 %v2952_v28, %v1728_v17  ;;  %v1198_v50 = vmul.f32 %v2870_v15, %v1732_v19 }
 0x14a   :  { %v1193_v7 = vsub.f32 %v1191_v62, %v1192_v29  ;;  %v1200_v35 = vmul.f32 %v2891_v11, %v1728_v17  ;;  %v1201_v13 = vmul.f32 %v2971_v55, %v1732_v19  ;;  %v1203_v33 = vmul.f32 %v2893_v21, %v1728_v17 }
 0x14b   :  { %v3116_v18 = vadd.f32 %v1195_v22, %v1194_v54  ;;  %v3118_v43 = vsub.f32 %v1197_v53, %v1198_v50  ;;  %v1204_v28 = vmul.f32 %v2969_v2, %v1732_v19  ;;  %v1206_v15 = vmul.f32 %v2969_v2, %v1728_v17 }
 0x14c   :  { %v1202_v9 = vadd.f32 %v1201_v13, %v1200_v35  ;;  %v1207_v14 = vmul.f32 %v2893_v21, %v1732_v19  ;;  %v1209_v16 = vmul.f32 %v2971_v55, %v1728_v17  ;;  %v1210_v38 = vmul.f32 %v2891_v11, %v1732_v19 }
 0x14d   :  { %v1205_v20 = vsub.f32 %v1203_v33, %v1204_v28  ;;  %v3131_v26 = vstv %s3064_s10  ;;  %v3134_v61 = vstv %s3072_s11  ;;  %v3137_v36 = vstv %s3082_s12 }
 0x14e   :  { %v3139_v1 = vadd.f32 %v1207_v14, %v1206_v15  ;;  %v3141_v2 = vsub.f32 %v1209_v16, %v1210_v38  ;;  %v1216_v21 = vmul.f32 %v3131_v26, %v2975_v25  ;;  %v1217_v51 = vmul.f32 %v3134_v61, %v1166_v12 }
 0x14f   :  { %v1219_v17 = vmul.f32 %v3131_v26, %v2982_v47  ;;  %v1220_v19 = vmul.f32 %v3134_v61, %v1169_v56  ;;  %v1222_v11 = vmul.f32 %v3134_v61, %v2975_v25  ;;  %v1223_v55 = vmul.f32 %v3131_v26, %v1166_v12 }
 0x150   :  { %v3152_v60 = vsub.f32 %v1216_v21, %v1217_v51  ;;  %v1225_v23 = vmul.f32 %v3134_v61, %v2982_v47  ;;  %v1226_v46 = vmul.f32 %v3131_v26, %v1169_v56  ;;  %v1228_v52 = vmul.f32 %v3131_v26, %v2995_v45 }
 0x151   :  { %v3159_v27 = vsub.f32 %v1219_v17, %v1220_v19  ;;  %v3161_v39 = vadd.f32 %v1223_v55, %v1222_v11  ;;  %v1229_v41 = vmul.f32 %v3134_v61, %v1178_v30  ;;  %v1231_v25 = vmul.f32 %v3131_v26, %v3002_v34 }
 0x152   :  { %v3166_v12 = vadd.f32 %v1226_v46, %v1225_v23  ;;  %v1232_v37 = vmul.f32 %v3134_v61, %v1181_v58  ;;  %v1234_v47 = vmul.f32 %v3134_v61, %v2995_v45  ;;  %v1235_v56 = vmul.f32 %v3131_v26, %v1178_v30 }
 0x153   :  { %v3172_v32 = vsub.f32 %v1228_v52, %v1229_v41  ;;  %v1237_v62 = vmul.f32 %v3134_v61, %v3002_v34  ;;  %v1238_v29 = vmul.f32 %v3131_v26, %v1181_v58  ;;  %v1240_v54 = vmul.f32 %v3131_v26, %v3015_v31 }
 0x154   :  { %v3179_v22 = vsub.f32 %v1231_v25, %v1232_v37  ;;  %v3181_v53 = vadd.f32 %v1235_v56, %v1234_v47  ;;  %v1241_v50 = vmul.f32 %v3134_v61, %v1190_v44  ;;  %v1243_v45 = vmul.f32 %v3131_v26, %v3022_v49 }
 0x155   :  { %v3186_v30 = vadd.f32 %v1238_v29, %v1237_v62  ;;  %v1244_v35 = vmul.f32 %v3134_v61, %v1193_v7  ;;  %v1246_v34 = vmul.f32 %v3134_v61, %v3015_v31  ;;  %v1247_v58 = vmul.f32 %v3131_v26, %v1190_v44 }
 0x156   :  { %v3192_v13 = vsub.f32 %v1240_v54, %v1241_v50  ;;  %v1249_v33 = vmul.f32 %v3134_v61, %v3022_v49  ;;  %v1250_v28 = vmul.f32 %v3131_v26, %v1193_v7  ;;  %v1252_v15 = vmul.f32 %v3131_v26, %v3035_v4 }
 0x157   :  { %v3199_v14 = vsub.f32 %v1243_v45, %v1244_v35  ;;  %v3201_v16 = vadd.f32 %v1247_v58, %v1246_v34  ;;  %v1253_v38 = vmul.f32 %v3134_v61, %v1202_v9  ;;  %v1255_v31 = vmul.f32 %v3131_v26, %v3042_v8 }
 0x158   :  { %v3206_v44 = vadd.f32 %v1250_v28, %v1249_v33  ;;  %v1256_v21 = vmul.f32 %v3134_v61, %v1205_v20  ;;  %v1258_v49 = vmul.f32 %v3134_v61, %v3035_v4  ;;  %v1259_v7 = vmul.f32 %v3131_v26, %v1202_v9 }
 0x159   :  { %v3212_v51 = vsub.f32 %v1252_v15, %v1253_v38  ;;  %v1261_v17 = vmul.f32 %v3134_v61, %v3042_v8  ;;  %v1262_v19 = vmul.f32 %v3131_v26, %v1205_v20  ;;  %v1264_v11 = vmul.f32 %v3131_v26, %v2989_v3 }
 0x15a   :  { %v3219_v55 = vsub.f32 %v1255_v31, %v1256_v21  ;;  %v3221_v23 = vadd.f32 %v1259_v7, %v1258_v49  ;;  %v1265_v46 = vmul.f32 %v3134_v61, %v3074_v57  ;;  %v1267_v4 = vmul.f32 %v3131_v26, %v2991_v0 }
 0x15b   :  { %v3227_v9 = vadd.f32 %v1262_v19, %v1261_v17  ;;  %v1268_v8 = vmul.f32 %v3134_v61, %v3076_v24  ;;  %v1270_v20 = vmul.f32 %v3134_v61, %v2989_v3  ;;  %v1271_v52 = vmul.f32 %v3131_v26, %v3074_v57 }
 0x15c   :  { %v1266_v41 = vsub.f32 %v1264_v11, %v1265_v46  ;;  %v1273_v25 = vmul.f32 %v3134_v61, %v2991_v0  ;;  %v1274_v37 = vmul.f32 %v3131_v26, %v3076_v24  ;;  %v1276_v47 = vmul.f32 %v3131_v26, %v3009_v59 }
 0x15d   :  { %v1269_v56 = vsub.f32 %v1267_v4, %v1268_v8  ;;  %v3241_v62 = vadd.f32 %v1271_v52, %v1270_v20  ;;  %v1277_v29 = vmul.f32 %v3134_v61, %v3096_v5  ;;  %v1279_v3 = vmul.f32 %v3131_v26, %v3011_v42 }
 0x15e   :  { %v3249_v57 = vadd.f32 %v1274_v37, %v1273_v25  ;;  %v1280_v0 = vmul.f32 %v3134_v61, %v3098_v10  ;;  %v1282_v24 = vmul.f32 %v3134_v61, %v3009_v59  ;;  %v1283_v54 = vmul.f32 %v3131_v26, %v3096_v5 }
 0x15f   :  { %v1278_v50 = vsub.f32 %v1276_v47, %v1277_v29  ;;  %v1285_v45 = vmul.f32 %v3134_v61, %v3011_v42  ;;  %v1286_v35 = vmul.f32 %v3131_v26, %v3098_v10  ;;  %v1288_v34 = vmul.f32 %v3131_v26, %v3029_v6 }
 0x160   :  { %v1281_v58 = vsub.f32 %v1279_v3, %v1280_v0  ;;  %v3263_v33 = vadd.f32 %v1283_v54, %v1282_v24  ;;  %v1289_v28 = vmul.f32 %v3134_v61, %v3116_v18  ;;  %v1291_v59 = vmul.f32 %v3131_v26, %v3031_v63 }
 0x161   :  { %v3269_v5 = vadd.f32 %v1286_v35, %v1285_v45  ;;  %v1292_v42 = vmul.f32 %v3134_v61, %v3118_v43  ;;  %v1294_v10 = vmul.f32 %v3134_v61, %v3029_v6  ;;  %v1295_v15 = vmul.f32 %v3131_v26, %v3116_v18 }
 0x162   :  { %v1290_v38 = vsub.f32 %v1288_v34, %v1289_v28  ;;  %v1297_v31 = vmul.f32 %v3134_v61, %v3031_v63  ;;  %v1298_v21 = vmul.f32 %v3131_v26, %v3118_v43  ;;  %v1300_v49 = vmul.f32 %v3131_v26, %v3050_v40 }
 0x163   :  { %v1293_v7 = vsub.f32 %v1291_v59, %v1292_v42  ;;  %v3283_v17 = vadd.f32 %v1295_v15, %v1294_v10  ;;  %v1301_v6 = vmul.f32 %v3134_v61, %v3139_v1  ;;  %v1303_v18 = vmul.f32 %v3131_v26, %v3052_v48 }
 0x164   :  { %v3289_v19 = vadd.f32 %v1298_v21, %v1297_v31  ;;  %v1304_v63 = vmul.f32 %v3134_v61, %v3141_v2  ;;  %v1306_v43 = vmul.f32 %v3134_v61, %v3050_v40  ;;  %v1307_v11 = vmul.f32 %v3131_v26, %v3139_v1 }
 0x165   :  { %v1302_v46 = vsub.f32 %v1300_v49, %v1301_v6  ;;  %v1309_v4 = vmul.f32 %v3134_v61, %v3052_v48  ;;  %v1310_v8 = vmul.f32 %v3131_v26, %v3141_v2  ;;  %v3302_v20 = vstv %s3247_s13 }
 0x166   :  { %v1305_v52 = vsub.f32 %v1303_v18, %v1304_v63  ;;  %v3304_v25 = vadd.f32 %v1307_v11, %v1306_v43  ;;  %v1316_v37 = vmul.f32 %v3137_v36, %v3152_v60  ;;  %v1317_v40 = vmul.f32 %v3302_v20, %v1266_v41 }
 0x167   :  { %v3309_v47 = vadd.f32 %v1310_v8, %v1309_v4  ;;  %v1319_v1 = vmul.f32 %v3137_v36, %v3159_v27  ;;  %v1320_v48 = vmul.f32 %v3302_v20, %v1269_v56  ;;  %v1322_v26 = vmul.f32 %v3302_v20, %v3152_v60 }
 0x168   :  { %v3316_v61 = vsub.f32 %v1316_v37, %v1317_v40  ;;  %v1323_v2 = vmul.f32 %v3137_v36, %v1266_v41  ;;  %v1325_v29 = vmul.f32 %v3302_v20, %v3159_v27  ;;  %v1326_v3 = vmul.f32 %v3137_v36, %v1269_v56 }
 0x169   :  { %v3322_v0 = vsub.f32 %v1319_v1, %v1320_v48  ;;  %v1328_v24 = vmul.f32 %v3137_v36, %v3172_v32  ;;  %v1329_v54 = vmul.f32 %v3302_v20, %v1278_v50  ;;  %v1331_v45 = vmul.f32 %v3137_v36, %v3179_v22 }
 0x16a   :  { %v3329_v60 = vadd.f32 %v1323_v2, %v1322_v26  ;;  %v3331_v35 = vadd.f32 %v1326_v3, %v1325_v29  ;;  %v1332_v41 = vmul.f32 %v3302_v20, %v1281_v58  ;;  %v1334_v27 = vmul.f32 %v3302_v20, %v3172_v32 }
 0x16b   :  { %v3336_v56 = vsub.f32 %v1328_v24, %v1329_v54  ;;  %v1335_v34 = vmul.f32 %v3137_v36, %v1278_v50  ;;  %v1337_v28 = vmul.f32 %v3302_v20, %v3179_v22  ;;  %v1338_v59 = vmul.f32 %v3137_v36, %v1281_v58 }
 0x16c   :  { %v3342_v42 = vsub.f32 %v1331_v45, %v1332_v41  ;;  %v1340_v10 = vmul.f32 %v3137_v36, %v3192_v13  ;;  %v1341_v15 = vmul.f32 %v3302_v20, %v1290_v38  ;;  %v1343_v31 = vmul.f32 %v3137_v36, %v3199_v14 }
 0x16d   :  { %v3349_v32 = vadd.f32 %v1335_v34, %v1334_v27  ;;  %v3351_v21 = vadd.f32 %v1338_v59, %v1337_v28  ;;  %v1344_v50 = vmul.f32 %v3302_v20, %v1293_v7  ;;  %v1346_v22 = vmul.f32 %v3302_v20, %v3192_v13 }
 0x16e   :  { %v3356_v58 = vsub.f32 %v1340_v10, %v1341_v15  ;;  %v1347_v49 = vmul.f32 %v3137_v36, %v1290_v38  ;;  %v1349_v6 = vmul.f32 %v3302_v20, %v3199_v14  ;;  %v1350_v18 = vmul.f32 %v3137_v36, %v1293_v7 }
 0x16f   :  { %v3362_v63 = vsub.f32 %v1343_v31, %v1344_v50  ;;  %v1352_v43 = vmul.f32 %v3137_v36, %v3212_v51  ;;  %v1353_v11 = vmul.f32 %v3302_v20, %v1302_v46  ;;  %v1355_v4 = vmul.f32 %v3137_v36, %v3219_v55 }
 0x170   :  { %v3369_v13 = vadd.f32 %v1347_v49, %v1346_v22  ;;  %v3371_v8 = vadd.f32 %v1350_v18, %v1349_v6  ;;  %v1356_v38 = vmul.f32 %v3302_v20, %v1305_v52  ;;  %v1358_v14 = vmul.f32 %v3302_v20, %v3212_v51 }
 0x171   :  { %v1354_v7 = vsub.f32 %v1352_v43, %v1353_v11  ;;  %v1359_v37 = vmul.f32 %v3137_v36, %v1302_v46  ;;  %v1361_v40 = vmul.f32 %v3302_v20, %v3219_v55  ;;  %v1362_v1 = vmul.f32 %v3137_v36, %v1305_v52 }
 0x172   :  { %v1357_v48 = vsub.f32 %v1355_v4, %v1356_v38  ;;  %v1364_v26 = vmul.f32 %v3137_v36, %v3161_v39  ;;  %v1365_v2 = vmul.f32 %v3302_v20, %v3241_v62  ;;  %v1367_v29 = vmul.f32 %v3137_v36, %v3166_v12 }
 0x173   :  { %v3386_v3 = vadd.f32 %v1359_v37, %v1358_v14  ;;  %v3388_v51 = vadd.f32 %v1362_v1, %v1361_v40  ;;  %v1368_v46 = vmul.f32 %v3302_v20, %v3249_v57  ;;  %v1370_v55 = vmul.f32 %v3302_v20, %v3161_v39 }
 0x174   :  { %v3394_v52 = vsub.f32 %v1364_v26, %v1365_v2  ;;  %v1371_v24 = vmul.f32 %v3137_v36, %v3241_v62  ;;  %v1373_v54 = vmul.f32 %v3302_v20, %v3166_v12  ;;  %v1374_v45 = vmul.f32 %v3137_v36, %v3249_v57 }
 0x175   :  { %v3402_v41 = vsub.f32 %v1367_v29, %v1368_v46  ;;  %v1376_v27 = vmul.f32 %v3137_v36, %v3181_v53  ;;  %v1377_v34 = vmul.f32 %v3302_v20, %v3263_v33  ;;  %v1379_v39 = vmul.f32 %v3137_v36, %v3186_v30 }
 0x176   :  { %v3410_v28 = vadd.f32 %v1371_v24, %v1370_v55  ;;  %v3412_v62 = vadd.f32 %v1374_v45, %v1373_v54  ;;  %v1380_v12 = vmul.f32 %v3302_v20, %v3269_v5  ;;  %v1382_v57 = vmul.f32 %v3302_v20, %v3181_v53 }
 0x177   :  { %v1378_v59 = vsub.f32 %v1376_v27, %v1377_v34  ;;  %v1383_v10 = vmul.f32 %v3137_v36, %v3263_v33  ;;  %v1385_v15 = vmul.f32 %v3302_v20, %v3186_v30  ;;  %v1386_v31 = vmul.f32 %v3137_v36, %v3269_v5 }
 0x178   :  { %v1381_v50 = vsub.f32 %v1379_v39, %v1380_v12  ;;  %v1388_v22 = vmul.f32 %v3137_v36, %v3201_v16  ;;  %v1389_v49 = vmul.f32 %v3302_v20, %v3283_v17  ;;  %v1391_v53 = vmul.f32 %v3137_v36, %v3206_v44 }
 0x179   :  { %v3430_v6 = vadd.f32 %v1383_v10, %v1382_v57  ;;  %v3432_v18 = vadd.f32 %v1386_v31, %v1385_v15  ;;  %v1392_v30 = vmul.f32 %v3302_v20, %v3289_v19  ;;  %v1394_v33 = vmul.f32 %v3302_v20, %v3201_v16 }
 0x17a   :  { %v1390_v5 = vsub.f32 %v1388_v22, %v1389_v49  ;;  %v1395_v43 = vmul.f32 %v3137_v36, %v3283_v17  ;;  %v1397_v11 = vmul.f32 %v3302_v20, %v3206_v44  ;;  %v1398_v4 = vmul.f32 %v3137_v36, %v3289_v19 }
 0x17b   :  { %v1393_v38 = vsub.f32 %v1391_v53, %v1392_v30  ;;  %v1400_v14 = vmul.f32 %v3137_v36, %v3221_v23  ;;  %v1401_v37 = vmul.f32 %v3302_v20, %v3304_v25  ;;  %v1403_v16 = vmul.f32 %v3137_v36, %v3227_v9 }
 0x17c   :  { %v1396_v40 = vadd.f32 %v1395_v43, %v1394_v33  ;;  %v1399_v1 = vadd.f32 %v1398_v4, %v1397_v11  ;;  %v1404_v17 = vmul.f32 %v3302_v20, %v3309_v47  ;;  %v1406_v44 = vmul.f32 %v3302_v20, %v3221_v23 }
 0x17d   :  { %v1402_v26 = vsub.f32 %v1400_v14, %v1401_v37  ;;  %v1407_v19 = vmul.f32 %v3137_v36, %v3304_v25  ;;  %v1409_v2 = vmul.f32 %v3302_v20, %v3227_v9  ;;  %v1410_v29 = vmul.f32 %v3137_v36, %v3309_v47 }
 0x17e   :  { %v1405_v46 = vsub.f32 %v1403_v16, %v1404_v17  ;;  %v1412_v55 = vmul.f32 %v3316_v61, %v3316_v61  ;;  %v1413_v24 = vmul.f32 %v3322_v0, %v3322_v0  ;;  %v1415_v23 = vmul.f32 %v3336_v56, %v3336_v56 }
 0x17f   :  { %v1408_v54 = vadd.f32 %v1407_v19, %v1406_v44  ;;  %v1411_v45 = vadd.f32 %v1410_v29, %v1409_v2  ;;  %v1416_v25 = vmul.f32 %v3342_v42, %v3342_v42  ;;  %v1419_v9 = vmul.f32 %v3356_v58, %v3356_v58 }
 0x180   :  { %v1414_v20 = vadd.f32 %v1413_v24, %v1412_v55  ;;  %v1420_v36 = vmul.f32 %v3362_v63, %v3362_v63  ;;  %v1423_v47 = vmul.f32 %v1354_v7, %v1354_v7  ;;  %v1424_v61 = vmul.f32 %v1357_v48, %v1357_v48 }
 0x181   :  { %v1417_v27 = vadd.f32 %v1416_v25, %v1415_v23  ;;  %v1430_v0 = vmul.f32 %v3329_v60, %v3329_v60  ;;  %v1431_v56 = vmul.f32 %v3331_v35, %v3331_v35  ;;  %v1433_v34 = vmul.f32 %v3349_v32, %v3349_v32 }
 0x182   :  { %v1421_v42 = vadd.f32 %v1420_v36, %v1419_v9  ;;  %v1425_v39 = vadd.f32 %v1424_v61, %v1423_v47  ;;  %v1434_v58 = vmul.f32 %v3351_v21, %v3351_v21  ;;  %v1437_v63 = vmul.f32 %v3369_v13, %v3369_v13 }
 0x183   :  { %v1418_v7 = vadd.f32 %v1417_v27, %v1414_v20  ;;  %v1432_v48 = vadd.f32 %v1431_v56, %v1430_v0  ;;  %v1438_v12 = vmul.f32 %v3371_v8, %v3371_v8  ;;  %v1441_v60 = vmul.f32 %v3386_v3, %v3386_v3 }
 0x184   :  { %v1435_v35 = vadd.f32 %v1434_v58, %v1433_v34  ;;  %v1442_v32 = vmul.f32 %v3388_v51, %v3388_v51  ;;  %v1449_v57 = vmul.f32 %v3394_v52, %v3394_v52  ;;  %v1450_v21 = vmul.f32 %v3402_v41, %v3402_v41 }
 0x185   :  { %v1422_v10 = vadd.f32 %v1421_v42, %v1418_v7  ;;  %v1439_v13 = vadd.f32 %v1438_v12, %v1437_v63  ;;  %v1452_v15 = vmul.f32 %v1378_v59, %v1378_v59  ;;  %v1453_v31 = vmul.f32 %v1381_v50, %v1381_v50 }
 0x186   :  { %v1436_v22 = vadd.f32 %v1435_v35, %v1432_v48  ;;  %v1443_v49 = vadd.f32 %v1442_v32, %v1441_v60  ;;  %v1451_v8 = vadd.f32 %v1450_v21, %v1449_v57  ;;  %v1456_v53 = vmul.f32 %v1390_v5, %v1390_v5 }
 0x187   :  { %v1426_v30 = vadd.f32 %v1425_v39, %v1422_v10  ;;  %v1454_v3 = vadd.f32 %v1453_v31, %v1452_v15  ;;  %v1457_v33 = vmul.f32 %v1393_v38, %v1393_v38  ;;  %v1460_v43 = vmul.f32 %v1402_v26, %v1402_v26 }
 0x188   :  { %v1440_v11 = vadd.f32 %v1439_v13, %v1436_v22  ;;  %v1461_v51 = vmul.f32 %v1405_v46, %v1405_v46  ;;  %v1468_v52 = vmul.f32 %v3410_v28, %v3410_v28  ;;  %v1469_v41 = vmul.f32 %v3412_v62, %v3412_v62 }
 0x189   :  { %v1427_v4 = vadd.f32 1.0, %v1426_v30  ;;  %v1455_v14 = vadd.f32 %v1454_v3, %v1451_v8  ;;  %v1458_v59 = vadd.f32 %v1457_v33, %v1456_v53  ;;  %v1471_v50 = vmul.f32 %v3430_v6, %v3430_v6 }
 0x18a   :  { %v1444_v37 = vadd.f32 %v1443_v49, %v1440_v11  ;;  %v1462_v5 = vadd.f32 %v1461_v51, %v1460_v43  ;;  %v1470_v16 = vadd.f32 %v1469_v41, %v1468_v52  ;;  %v1472_v38 = vmul.f32 %v3432_v18, %v3432_v18 }
 0x18b   :  { %v1428_v17 = vmul.f32 45.0, %v1427_v4  ;;  %v1459_v44 = vadd.f32 %v1458_v59, %v1455_v14  ;;  %v1475_v26 = vmul.f32 %v1396_v40, %v1396_v40  ;;  %v1476_v19 = vmul.f32 %v1399_v1, %v1399_v1 }
 0x18c   :  { %v1445_v28 = vadd.f32 1.0, %v1444_v37  ;;  %v1473_v2 = vadd.f32 %v1472_v38, %v1471_v50  ;;  %v1479_v29 = vmul.f32 %v1408_v54, %v1408_v54  ;;  %v1480_v62 = vmul.f32 %v1411_v45, %v1411_v45 }
 0x18d   :  { %1429 = vst [vmem:[#allocation7] sm:$0xff] %v1428_v17  ;;  %v1463_v46 = vadd.f32 %v1462_v5, %v1459_v44  ;;  %v1477_v55 = vadd.f32 %v1476_v19, %v1475_v26 }
 0x18e   :  { %v1446_v24 = vmul.f32 45.0, %v1445_v28  ;;  %v1474_v23 = vadd.f32 %v1473_v2, %v1470_v16  ;;  %v1481_v6 = vadd.f32 %v1480_v62, %v1479_v29 }
 0x18f   :  { %v1464_v25 = vadd.f32 1.0, %v1463_v46 }
 0x190   :  { %1448 = vst [vmem:[#allocation7 + $0x8] sm:$0xff] %v1446_v24  ;;  %v1478_v9 = vadd.f32 %v1477_v55, %v1474_v23 }
 0x191   :  { %v1465_v20 = vmul.f32 45.0, %v1464_v25 }
 0x192   :  { %v1482_v36 = vadd.f32 %v1481_v6, %v1478_v9 }
 0x193   :  { %1467 = vst [vmem:[#allocation7 + $0x10] sm:$0xff] %v1465_v20 }
 0x194   :  { %v1483_v18 = vadd.f32 1.0, %v1482_v36 }
 0x196   :  { %v1484_v40 = vmul.f32 45.0, %v1483_v18 }
 0x198   :  { %1486 = vst [vmem:[#allocation7 + $0x18] sm:$0xff] %v1484_v40 }
 0x199   :  { %1499 = dma.vmem_to_hbm [thread:$0]  %s1492_s15, 512, %s1494_s0, [#allocation4], %s1627_s18, %s1627_s18, %s1628_s19  }
 0x19a   :  { %1623 = dma.done.wait [#allocation4], 512  }
 0x19b   :  { %1624 = vsyncadd [#allocation4], 4294966784 }
 0x19c   :  { %1504 = vsyncpa [#allocation3], 1 }
 0x19d   :  { %1505 = vsyncpa [#allocation4], 1 }
 0x19e   :  { %1506 = vsyncpa [#allocation5], 1 }

</bundles_post_ra>
